<compile_context>
chip_gen: v7x
topology: tpu7x:2x2x1
jax: 0.10.0
libtpu: 0.0.40
codegen_flags: <defaults>
</compile_context>

<pallas_src>
import functools

import jax
import jax.numpy as jnp
from jax import lax
from jax.experimental import pallas as pl
from jax.experimental.pallas import tpu as pltpu

_LANE = 128
_SUBLANE = 8


def _round_up(x, m):
    return ((x + m - 1) // m) * m


# ----------------------------------------------------------------------------
# Fused kernel: encoder LSTM -> decoder LSTM -> FC
# ----------------------------------------------------------------------------
def lstm_ae_kernel(
    seq_len,
    batch_pad,
    # inputs
    x_ref,          # (T*Bp, F)    mxu_dtype
    enc_w_ih_ref,   # (F, 4*Ep)    mxu_dtype
    enc_w_hh_ref,   # (Ep, 4*Ep)   mxu_dtype
    enc_b_ref,      # (1, 4*Ep)    f32
    dec_w_ih_ref,   # (Ep, 4*Hp)   mxu_dtype
    dec_w_hh_ref,   # (Hp, 4*Hp)   mxu_dtype
    dec_b_ref,      # (1, 4*Hp)    f32
    fc_w_ref,       # (Hp, Op)     mxu_dtype
    fc_b_ref,       # (1, Op)      f32
    # outputs
    enc_out_ref,    # (Bp, Ep)     f32  (lane-dense)
    dec_out_ref,    # (T*Bp, Op)   f32  (lane-dense, Op = 128)
    # scratch
    gx_ref,         # VMEM (T*Bp, 4*Ep) f32
    hs_ref,         # VMEM (T*Bp, Hp)   f32
):
    T, Bp = seq_len, batch_pad
    Ep = enc_w_hh_ref.shape[0]
    Hp = dec_w_hh_ref.shape[0]
    mxu_dtype = enc_w_hh_ref.dtype  # f32 on v5e, bf16 on v6e/v7x

    def lstm_step(gates_x, h, c, w_hh, hp):
        # One LSTM cell. Gate slices are 128-lane aligned (hp % 128 == 0).
        # Accumulation and elementwise math stay f32; only MXU operands may
        # be bf16.
        gates = gates_x + jnp.dot(
            h.astype(mxu_dtype), w_hh, preferred_element_type=jnp.float32)
        i = jax.nn.sigmoid(gates[:, 0 * hp:1 * hp])
        f = jax.nn.sigmoid(gates[:, 1 * hp:2 * hp])
        g = jnp.tanh(gates[:, 2 * hp:3 * hp])
        o = jax.nn.sigmoid(gates[:, 3 * hp:4 * hp])
        c_new = f * c + i * g
        h_new = o * jnp.tanh(c_new)
        return h_new, c_new

    # ---------------- Encoder --------------------------------------------
    # All timesteps' input projection in one MXU matmul (+ bias broadcast once).
    gx_ref[...] = (
        jnp.dot(x_ref[...], enc_w_ih_ref[...], preferred_element_type=jnp.float32)
        + enc_b_ref[...]
    )
    enc_w_hh = enc_w_hh_ref[...]
    # TODO(synk): if the bundle dump shows Mosaic re-pushing w_hh into the MXU
    # every unrolled step, switch to explicit pltpu.matmul_push_rhs /
    # matmul_acc_lhs / matmul_pop to keep the RHS resident across the T steps
    # (per-gate-block per-MXU on v5e).
    h = jnp.zeros((Bp, Ep), jnp.float32)
    c = jnp.zeros((Bp, Ep), jnp.float32)
    for t in range(T):  # static trip count -> fully unrolled
        h, c = lstm_step(gx_ref[t * Bp:(t + 1) * Bp, :], h, c, enc_w_hh, Ep)
    enc_out_ref[...] = h  # lane-dense (Bp, Ep) store

    # ---------------- Decoder --------------------------------------------
    # The repeated decoder input equals the encoded vector at every step:
    # project it once and reuse.
    dec_gx = (
        jnp.dot(h.astype(mxu_dtype), dec_w_ih_ref[...],
                preferred_element_type=jnp.float32)
        + dec_b_ref[...]
    )
    dec_w_hh = dec_w_hh_ref[...]
    hd = jnp.zeros((Bp, Hp), jnp.float32)
    cd = jnp.zeros((Bp, Hp), jnp.float32)
    for t in range(T):
        hd, cd = lstm_step(dec_gx, hd, cd, dec_w_hh, Hp)
        hs_ref[t * Bp:(t + 1) * Bp, :] = hd  # stash hidden states in VMEM

    # FC hoisted out of the loop: one (T*Bp, Hp) @ (Hp, Op) matmul + one
    # lane-dense bulk store (Op = 128; real O columns are sliced outside).
    dec_out_ref[...] = (
        jnp.dot(hs_ref[...].astype(mxu_dtype), fc_w_ref[...],
                preferred_element_type=jnp.float32)
        + fc_b_ref[...]
    )


# ----------------------------------------------------------------------------
# Wrapper: padding to (sublane, lane) friendly shapes + pallas_call
# ----------------------------------------------------------------------------
def _pad_gate_cols(w, h_real, h_pad):
    """Pad each of the 4 gate blocks along the last axis from h_real to h_pad."""
    lead = w.shape[:-1]
    w4 = w.reshape(lead + (4, h_real))
    pad = [(0, 0)] * len(lead) + [(0, 0), (0, h_pad - h_real)]
    return jnp.pad(w4, pad).reshape(lead + (4 * h_pad,))


def _pad_rows(w, n_real, n_pad):
    return jnp.pad(w, ((0, n_pad - n_real),) + ((0, 0),) * (w.ndim - 1))


def _pad_cols(w, n_real, n_pad):
    return jnp.pad(w, ((0, 0),) * (w.ndim - 1) + ((0, n_pad - n_real),))


@functools.partial(jax.jit, static_argnames=("mxu_dtype",))
def lstm_ae_forward(x, params, *, mxu_dtype=jnp.float32):
    """x: (B, T, F) batch_first. Returns (encoded (B, E), decoded (B, T, F))."""
    B, T, F = x.shape
    E = params["enc_w_hh"].shape[0]  # embedding_dim
    H = params["dec_w_hh"].shape[0]  # 2 * embedding_dim
    O = params["fc_w"].shape[1]      # no_features

    Ep = max(_round_up(E, _LANE), _LANE)
    Hp = max(_round_up(H, _LANE), _LANE)
    Op = max(_round_up(O, _LANE), _LANE)   # lane-dense decoder output
    Bp = max(_round_up(B, _SUBLANE), _SUBLANE)

    f32 = jnp.float32
    # time-major, batch padded to a full sublane tile, flattened (T*Bp, F)
    x_tm = jnp.transpose(x, (1, 0, 2)).astype(f32)           # (T, B, F)
    x_tm = jnp.pad(x_tm, ((0, 0), (0, Bp - B), (0, 0)))       # (T, Bp, F)
    x_flat = x_tm.reshape(T * Bp, F).astype(mxu_dtype)

    # Zero-pad weights so every gate block sits in its own 128-lane tile.
    # MXU operands use mxu_dtype (bf16 on v6e/v7x, f32 on v5e); biases stay f32.
    enc_w_ih = _pad_gate_cols(params["enc_w_ih"].astype(f32), E, Ep).astype(mxu_dtype)
    enc_w_hh = _pad_gate_cols(
        _pad_rows(params["enc_w_hh"].astype(f32), E, Ep), E, Ep).astype(mxu_dtype)
    enc_b = _pad_gate_cols(params["enc_b"].astype(f32), E, Ep)
    dec_w_ih = _pad_gate_cols(
        _pad_rows(params["dec_w_ih"].astype(f32), E, Ep), H, Hp).astype(mxu_dtype)
    dec_w_hh = _pad_gate_cols(
        _pad_rows(params["dec_w_hh"].astype(f32), H, Hp), H, Hp).astype(mxu_dtype)
    dec_b = _pad_gate_cols(params["dec_b"].astype(f32), H, Hp)
    fc_w = _pad_cols(
        _pad_rows(params["fc_w"].astype(f32), H, Hp), O, Op).astype(mxu_dtype)
    fc_b = _pad_cols(params["fc_b"].astype(f32), O, Op)

    operands = (x_flat, enc_w_ih, enc_w_hh, enc_b,
                dec_w_ih, dec_w_hh, dec_b, fc_w, fc_b)

    # Advisory cost estimate so XLA schedules the wrapper-side transpose/pad/
    # slice ops around the custom call.
    flops = int(
        2 * T * Bp * F * (4 * Ep)          # encoder input projection
        + T * 2 * Bp * Ep * (4 * Ep)       # encoder recurrence
        + 2 * Bp * Ep * (4 * Hp)           # decoder input projection (once)
        + T * 2 * Bp * Hp * (4 * Hp)       # decoder recurrence
        + 2 * T * Bp * Hp * Op             # fc
    )
    transcendentals = int(T * Bp * 5 * (Ep + Hp))  # 3 sigmoid + 2 tanh / cell
    bytes_accessed = int(
        sum(a.size * jnp.dtype(a.dtype).itemsize for a in operands)
        + (Bp * Ep + T * Bp * Op) * 4
    )

    vmem = pl.BlockSpec(memory_space=pltpu.MemorySpace.VMEM)
    # TODO(synk): once real batch exceeds one sublane tile, add a batch-tile
    # grid axis (dimension_semantics=("parallel",)) so v7x's second TensorCore
    # is used and the gx scratch is sized per batch tile (v7x VMEM is 64 MiB).
    enc_pad, dec_flat = pl.pallas_call(
        functools.partial(lstm_ae_kernel, T, Bp),
        out_shape=(
            jax.ShapeDtypeStruct((Bp, Ep), f32),
            jax.ShapeDtypeStruct((T * Bp, Op), f32),
        ),
        in_specs=[vmem] * 9,
        out_specs=(vmem, vmem),
        scratch_shapes=[
            pltpu.VMEM((T * Bp, 4 * Ep), f32),  # encoder input-projection
            pltpu.VMEM((T * Bp, Hp), f32),      # decoder hidden states
        ],
        cost_estimate=pl.CostEstimate(
            flops=flops,
            transcendentals=transcendentals,
            bytes_accessed=bytes_accessed,
        ),
    )(*operands)

    encoded = enc_pad[:B, :E]
    decoded = jnp.transpose(dec_flat.reshape(T, Bp, Op), (1, 0, 2))[:B, :, :O]
    return encoded, decoded


def _pick_mxu_dtype():
    """bf16 MXU operands on v6e/v7x; f32 on v5e (no bf16 VPU/EUP) and unknown."""
    try:
        kind = jax.devices()[0].device_kind.lower()
    except Exception:
        return jnp.float32
    if "v6" in kind or "v7" in kind:
        return jnp.bfloat16
    return jnp.float32


# ----------------------------------------------------------------------------
# Pure-JAX reference (sanity check)
# ----------------------------------------------------------------------------
def _ref_cell(x_t, h, c, w_ih, w_hh, b, hidden):
    gates = (
        jnp.dot(x_t, w_ih, preferred_element_type=jnp.float32)
        + jnp.dot(h, w_hh, preferred_element_type=jnp.float32)
        + b
    )
    i = jax.nn.sigmoid(gates[:, 0 * hidden:1 * hidden])
    f = jax.nn.sigmoid(gates[:, 1 * hidden:2 * hidden])
    g = jnp.tanh(gates[:, 2 * hidden:3 * hidden])
    o = jax.nn.sigmoid(gates[:, 3 * hidden:4 * hidden])
    c_new = f * c + i * g
    h_new = o * jnp.tanh(c_new)
    return h_new, c_new


def _ref_lstm(x_tm, w_ih, w_hh, b, hidden):
    B = x_tm.shape[1]

    def step(carry, x_t):
        h, c = carry
        h, c = _ref_cell(x_t, h, c, w_ih, w_hh, b, hidden)
        return (h, c), h

    (h_T, _), hs = lax.scan(
        step, (jnp.zeros((B, hidden)), jnp.zeros((B, hidden))), x_tm
    )
    return h_T, hs


def lstm_ae_reference(x, params, seq_len):
    E = params["enc_w_hh"].shape[0]
    H = params["dec_w_hh"].shape[0]
    x_tm = jnp.transpose(x, (1, 0, 2)).astype(jnp.float32)
    enc, _ = _ref_lstm(x_tm, params["enc_w_ih"], params["enc_w_hh"], params["enc_b"], E)
    dec_in = jnp.broadcast_to(enc[None], (seq_len,) + enc.shape)
    _, hs = _ref_lstm(dec_in, params["dec_w_ih"], params["dec_w_hh"], params["dec_b"], H)
    out = jnp.einsum("tbh,ho->tbo", hs, params["fc_w"]) + params["fc_b"]
    return enc, jnp.transpose(out, (1, 0, 2))


# ----------------------------------------------------------------------------
# Deterministic parameter init (shapes follow nn.LSTM / nn.Linear in the module)
# ----------------------------------------------------------------------------
def init_params(key, no_features, embedding_dim):
    E = embedding_dim
    H = 2 * embedding_dim
    O = no_features
    ks = jax.random.split(key, 8)
    s_e = 1.0 / jnp.sqrt(E)
    s_h = 1.0 / jnp.sqrt(H)
    u = lambda k, shape, s: jax.random.uniform(k, shape, jnp.float32, -s, s)
    return {
        # encoder LSTM(F -> E); weights stored transposed: (in, 4H)
        "enc_w_ih": u(ks[0], (no_features, 4 * E), s_e),
        "enc_w_hh": u(ks[1], (E, 4 * E), s_e),
        "enc_b": u(ks[2], (1, 4 * E), s_e),          # bias_ih + bias_hh folded
        # decoder LSTM(E -> 2E)
        "dec_w_ih": u(ks[3], (E, 4 * H), s_h),
        "dec_w_hh": u(ks[4], (H, 4 * H), s_h),
        "dec_b": u(ks[5], (1, 4 * H), s_h),
        # fc: Linear(2E -> F)
        "fc_w": u(ks[6], (H, O), s_h),
        "fc_b": u(ks[7], (1, O), s_h),
    }


# ----------------------------------------------------------------------------
if __name__ == "__main__":
    SEQ_LEN = 8
    NO_FEATURES = 4
    EMBEDDING_DIM = 32
    BATCH = 2

    key = jax.random.PRNGKey(0)
    k_x, k_p = jax.random.split(key)
    x = jax.random.normal(k_x, (BATCH, SEQ_LEN, NO_FEATURES), jnp.float32)
    params = init_params(k_p, NO_FEATURES, EMBEDDING_DIM)

    mxu_dtype = _pick_mxu_dtype()
    encoded, decoded = lstm_ae_forward(x, params, mxu_dtype=mxu_dtype)
    jax.block_until_ready((encoded, decoded))

    enc_ref, dec_ref = lstm_ae_reference(x, params, SEQ_LEN)
    tol = 1e-4 if mxu_dtype == jnp.float32 else 5e-2  # bf16 weight rounding
    assert encoded.shape == (BATCH, EMBEDDING_DIM)
    assert decoded.shape == (BATCH, SEQ_LEN, NO_FEATURES)
    assert jnp.allclose(encoded, enc_ref, atol=tol, rtol=tol)
    assert jnp.allclose(decoded, dec_ref, atol=tol, rtol=tol)

    print("KERNEL_OK")
</pallas_src>

<mosaic_0001>
module attributes {stable_mosaic.version = 11 : i64} {
  func.func @lstm_ae_kernel(%arg0: memref<64x4xf32, #tpu.memory_space<vmem>>, %arg1: memref<4x512xf32, #tpu.memory_space<vmem>>, %arg2: memref<128x512xf32, #tpu.memory_space<vmem>>, %arg3: memref<1x512xf32, #tpu.memory_space<vmem>>, %arg4: memref<128x512xf32, #tpu.memory_space<vmem>>, %arg5: memref<128x512xf32, #tpu.memory_space<vmem>>, %arg6: memref<1x512xf32, #tpu.memory_space<vmem>>, %arg7: memref<128x128xf32, #tpu.memory_space<vmem>>, %arg8: memref<1x128xf32, #tpu.memory_space<vmem>>, %arg9: memref<8x128xf32, #tpu.memory_space<vmem>>, %arg10: memref<64x128xf32, #tpu.memory_space<vmem>>, %arg11: memref<64x512xf32, #tpu.memory_space<vmem>>, %arg12: memref<64x128xf32, #tpu.memory_space<vmem>>) attributes {dimension_semantics = [], scalar_prefetch = 0 : i64, scratch_operands = 2 : i64, tpu.core_type = #tpu.core_type<tc>} {
    %c0 = arith.constant 0 : index
    %c0_0 = arith.constant 0 : index
    %0 = vector.load %arg0[%c0, %c0_0] : memref<64x4xf32, #tpu.memory_space<vmem>>, vector<64x4xf32>
    %c0_1 = arith.constant 0 : index
    %c0_2 = arith.constant 0 : index
    %1 = vector.load %arg1[%c0_1, %c0_2] : memref<4x512xf32, #tpu.memory_space<vmem>>, vector<4x512xf32>
    %cst = arith.constant dense<0.000000e+00> : vector<64x512xf32>
    %2 = tpu.matmul %0, %1, %cst {dimension_numbers = #tpu.dot_dimension_numbers<[1], [0], [0], [1], [0, 0, 1, 1], [], []>} : vector<64x4xf32>, vector<4x512xf32>, vector<64x512xf32> -> vector<64x512xf32>
    %c0_3 = arith.constant 0 : index
    %c0_4 = arith.constant 0 : index
    %3 = vector.load %arg3[%c0_3, %c0_4] : memref<1x512xf32, #tpu.memory_space<vmem>>, vector<1x512xf32>
    %4 = vector.broadcast %3 : vector<1x512xf32> to vector<64x512xf32>
    %5 = arith.addf %2, %4 : vector<64x512xf32>
    %c0_5 = arith.constant 0 : index
    %c0_6 = arith.constant 0 : index
    %6 = vector.load %arg11[%c0_5, %c0_6] : memref<64x512xf32, #tpu.memory_space<vmem>>, vector<64x512xf32>
    tpu.vector_store %arg11[%c0_5, %c0_6], %5 {strides = array<i32>} : memref<64x512xf32, #tpu.memory_space<vmem>>, vector<64x512xf32>,
    %c0_7 = arith.constant 0 : index
    %c0_8 = arith.constant 0 : index
    %7 = vector.load %arg2[%c0_7, %c0_8] : memref<128x512xf32, #tpu.memory_space<vmem>>, vector<128x512xf32>
    %cst_9 = arith.constant 0.000000e+00 : f32
    %8 = vector.broadcast %cst_9 : f32 to vector<8x128xf32>
    %cst_10 = arith.constant 0.000000e+00 : f32
    %9 = vector.broadcast %cst_10 : f32 to vector<8x128xf32>
    %c0_11 = arith.constant 0 : index
    %c0_12 = arith.constant 0 : index
    %10 = vector.load %arg11[%c0_11, %c0_12] : memref<64x512xf32, #tpu.memory_space<vmem>>, vector<8x512xf32>
    %cst_13 = arith.constant dense<0.000000e+00> : vector<8x512xf32>
    %11 = tpu.matmul %8, %7, %cst_13 {dimension_numbers = #tpu.dot_dimension_numbers<[1], [0], [0], [1], [0, 0, 1, 1], [], []>} : vector<8x128xf32>, vector<128x512xf32>, vector<8x512xf32> -> vector<8x512xf32>
    %12 = arith.addf %10, %11 : vector<8x512xf32>
    %13 = vector.extract_strided_slice %12 {offsets = [0, 0], sizes = [8, 128], strides = [1, 1]} : vector<8x512xf32> to vector<8x128xf32>
    %14 = arith.negf %13 : vector<8x128xf32>
    %15 = math.exp %14 : vector<8x128xf32>
    %cst_14 = arith.constant 1.000000e+00 : f32
    %16 = vector.broadcast %cst_14 : f32 to vector<8x128xf32>
    %17 = arith.addf %16, %15 : vector<8x128xf32>
    %18 = arith.divf %16, %17 : vector<8x128xf32>
    %19 = vector.extract_strided_slice %12 {offsets = [0, 128], sizes = [8, 128], strides = [1, 1]} : vector<8x512xf32> to vector<8x128xf32>
    %20 = arith.negf %19 : vector<8x128xf32>
    %21 = math.exp %20 : vector<8x128xf32>
    %cst_15 = arith.constant 1.000000e+00 : f32
    %22 = vector.broadcast %cst_15 : f32 to vector<8x128xf32>
    %23 = arith.addf %22, %21 : vector<8x128xf32>
    %24 = arith.divf %22, %23 : vector<8x128xf32>
    %25 = vector.extract_strided_slice %12 {offsets = [0, 256], sizes = [8, 128], strides = [1, 1]} : vector<8x512xf32> to vector<8x128xf32>
    %26 = math.tanh %25 : vector<8x128xf32>
    %27 = vector.extract_strided_slice %12 {offsets = [0, 384], sizes = [8, 128], strides = [1, 1]} : vector<8x512xf32> to vector<8x128xf32>
    %28 = arith.negf %27 : vector<8x128xf32>
    %29 = math.exp %28 : vector<8x128xf32>
    %cst_16 = arith.constant 1.000000e+00 : f32
    %30 = vector.broadcast %cst_16 : f32 to vector<8x128xf32>
    %31 = arith.addf %30, %29 : vector<8x128xf32>
    %32 = arith.divf %30, %31 : vector<8x128xf32>
    %33 = arith.mulf %24, %9 : vector<8x128xf32>
    %34 = arith.mulf %18, %26 : vector<8x128xf32>
    %35 = arith.addf %33, %34 : vector<8x128xf32>
    %36 = math.tanh %35 : vector<8x128xf32>
    %37 = arith.mulf %32, %36 : vector<8x128xf32>
    %c8 = arith.constant 8 : index
    %c0_17 = arith.constant 0 : index
    %38 = vector.load %arg11[%c8, %c0_17] : memref<64x512xf32, #tpu.memory_space<vmem>>, vector<8x512xf32>
    %cst_18 = arith.constant dense<0.000000e+00> : vector<8x512xf32>
    %39 = tpu.matmul %37, %7, %cst_18 {dimension_numbers = #tpu.dot_dimension_numbers<[1], [0], [0], [1], [0, 0, 1, 1], [], []>} : vector<8x128xf32>, vector<128x512xf32>, vector<8x512xf32> -> vector<8x512xf32>
    %40 = arith.addf %38, %39 : vector<8x512xf32>
    %41 = vector.extract_strided_slice %40 {offsets = [0, 0], sizes = [8, 128], strides = [1, 1]} : vector<8x512xf32> to vector<8x128xf32>
    %42 = arith.negf %41 : vector<8x128xf32>
    %43 = math.exp %42 : vector<8x128xf32>
    %cst_19 = arith.constant 1.000000e+00 : f32
    %44 = vector.broadcast %cst_19 : f32 to vector<8x128xf32>
    %45 = arith.addf %44, %43 : vector<8x128xf32>
    %46 = arith.divf %44, %45 : vector<8x128xf32>
    %47 = vector.extract_strided_slice %40 {offsets = [0, 128], sizes = [8, 128], strides = [1, 1]} : vector<8x512xf32> to vector<8x128xf32>
    %48 = arith.negf %47 : vector<8x128xf32>
    %49 = math.exp %48 : vector<8x128xf32>
    %cst_20 = arith.constant 1.000000e+00 : f32
    %50 = vector.broadcast %cst_20 : f32 to vector<8x128xf32>
    %51 = arith.addf %50, %49 : vector<8x128xf32>
    %52 = arith.divf %50, %51 : vector<8x128xf32>
    %53 = vector.extract_strided_slice %40 {offsets = [0, 256], sizes = [8, 128], strides = [1, 1]} : vector<8x512xf32> to vector<8x128xf32>
    %54 = math.tanh %53 : vector<8x128xf32>
    %55 = vector.extract_strided_slice %40 {offsets = [0, 384], sizes = [8, 128], strides = [1, 1]} : vector<8x512xf32> to vector<8x128xf32>
    %56 = arith.negf %55 : vector<8x128xf32>
    %57 = math.exp %56 : vector<8x128xf32>
    %cst_21 = arith.constant 1.000000e+00 : f32
    %58 = vector.broadcast %cst_21 : f32 to vector<8x128xf32>
    %59 = arith.addf %58, %57 : vector<8x128xf32>
    %60 = arith.divf %58, %59 : vector<8x128xf32>
    %61 = arith.mulf %52, %35 : vector<8x128xf32>
    %62 = arith.mulf %46, %54 : vector<8x128xf32>
    %63 = arith.addf %61, %62 : vector<8x128xf32>
    %64 = math.tanh %63 : vector<8x128xf32>
    %65 = arith.mulf %60, %64 : vector<8x128xf32>
    %c16 = arith.constant 16 : index
    %c0_22 = arith.constant 0 : index
    %66 = vector.load %arg11[%c16, %c0_22] : memref<64x512xf32, #tpu.memory_space<vmem>>, vector<8x512xf32>
    %cst_23 = arith.constant dense<0.000000e+00> : vector<8x512xf32>
    %67 = tpu.matmul %65, %7, %cst_23 {dimension_numbers = #tpu.dot_dimension_numbers<[1], [0], [0], [1], [0, 0, 1, 1], [], []>} : vector<8x128xf32>, vector<128x512xf32>, vector<8x512xf32> -> vector<8x512xf32>
    %68 = arith.addf %66, %67 : vector<8x512xf32>
    %69 = vector.extract_strided_slice %68 {offsets = [0, 0], sizes = [8, 128], strides = [1, 1]} : vector<8x512xf32> to vector<8x128xf32>
    %70 = arith.negf %69 : vector<8x128xf32>
    %71 = math.exp %70 : vector<8x128xf32>
    %cst_24 = arith.constant 1.000000e+00 : f32
    %72 = vector.broadcast %cst_24 : f32 to vector<8x128xf32>
    %73 = arith.addf %72, %71 : vector<8x128xf32>
    %74 = arith.divf %72, %73 : vector<8x128xf32>
    %75 = vector.extract_strided_slice %68 {offsets = [0, 128], sizes = [8, 128], strides = [1, 1]} : vector<8x512xf32> to vector<8x128xf32>
    %76 = arith.negf %75 : vector<8x128xf32>
    %77 = math.exp %76 : vector<8x128xf32>
    %cst_25 = arith.constant 1.000000e+00 : f32
    %78 = vector.broadcast %cst_25 : f32 to vector<8x128xf32>
    %79 = arith.addf %78, %77 : vector<8x128xf32>
    %80 = arith.divf %78, %79 : vector<8x128xf32>
    %81 = vector.extract_strided_slice %68 {offsets = [0, 256], sizes = [8, 128], strides = [1, 1]} : vector<8x512xf32> to vector<8x128xf32>
    %82 = math.tanh %81 : vector<8x128xf32>
    %83 = vector.extract_strided_slice %68 {offsets = [0, 384], sizes = [8, 128], strides = [1, 1]} : vector<8x512xf32> to vector<8x128xf32>
    %84 = arith.negf %83 : vector<8x128xf32>
    %85 = math.exp %84 : vector<8x128xf32>
    %cst_26 = arith.constant 1.000000e+00 : f32
    %86 = vector.broadcast %cst_26 : f32 to vector<8x128xf32>
    %87 = arith.addf %86, %85 : vector<8x128xf32>
    %88 = arith.divf %86, %87 : vector<8x128xf32>
    %89 = arith.mulf %80, %63 : vector<8x128xf32>
    %90 = arith.mulf %74, %82 : vector<8x128xf32>
    %91 = arith.addf %89, %90 : vector<8x128xf32>
    %92 = math.tanh %91 : vector<8x128xf32>
    %93 = arith.mulf %88, %92 : vector<8x128xf32>
    %c24 = arith.constant 24 : index
    %c0_27 = arith.constant 0 : index
    %94 = vector.load %arg11[%c24, %c0_27] : memref<64x512xf32, #tpu.memory_space<vmem>>, vector<8x512xf32>
    %cst_28 = arith.constant dense<0.000000e+00> : vector<8x512xf32>
    %95 = tpu.matmul %93, %7, %cst_28 {dimension_numbers = #tpu.dot_dimension_numbers<[1], [0], [0], [1], [0, 0, 1, 1], [], []>} : vector<8x128xf32>, vector<128x512xf32>, vector<8x512xf32> -> vector<8x512xf32>
    %96 = arith.addf %94, %95 : vector<8x512xf32>
    %97 = vector.extract_strided_slice %96 {offsets = [0, 0], sizes = [8, 128], strides = [1, 1]} : vector<8x512xf32> to vector<8x128xf32>
    %98 = arith.negf %97 : vector<8x128xf32>
    %99 = math.exp %98 : vector<8x128xf32>
    %cst_29 = arith.constant 1.000000e+00 : f32
    %100 = vector.broadcast %cst_29 : f32 to vector<8x128xf32>
    %101 = arith.addf %100, %99 : vector<8x128xf32>
    %102 = arith.divf %100, %101 : vector<8x128xf32>
    %103 = vector.extract_strided_slice %96 {offsets = [0, 128], sizes = [8, 128], strides = [1, 1]} : vector<8x512xf32> to vector<8x128xf32>
    %104 = arith.negf %103 : vector<8x128xf32>
    %105 = math.exp %104 : vector<8x128xf32>
    %cst_30 = arith.constant 1.000000e+00 : f32
    %106 = vector.broadcast %cst_30 : f32 to vector<8x128xf32>
    %107 = arith.addf %106, %105 : vector<8x128xf32>
    %108 = arith.divf %106, %107 : vector<8x128xf32>
    %109 = vector.extract_strided_slice %96 {offsets = [0, 256], sizes = [8, 128], strides = [1, 1]} : vector<8x512xf32> to vector<8x128xf32>
    %110 = math.tanh %109 : vector<8x128xf32>
    %111 = vector.extract_strided_slice %96 {offsets = [0, 384], sizes = [8, 128], strides = [1, 1]} : vector<8x512xf32> to vector<8x128xf32>
    %112 = arith.negf %111 : vector<8x128xf32>
    %113 = math.exp %112 : vector<8x128xf32>
    %cst_31 = arith.constant 1.000000e+00 : f32
    %114 = vector.broadcast %cst_31 : f32 to vector<8x128xf32>
    %115 = arith.addf %114, %113 : vector<8x128xf32>
    %116 = arith.divf %114, %115 : vector<8x128xf32>
    %117 = arith.mulf %108, %91 : vector<8x128xf32>
    %118 = arith.mulf %102, %110 : vector<8x128xf32>
    %119 = arith.addf %117, %118 : vector<8x128xf32>
    %120 = math.tanh %119 : vector<8x128xf32>
    %121 = arith.mulf %116, %120 : vector<8x128xf32>
    %c32 = arith.constant 32 : index
    %c0_32 = arith.constant 0 : index
    %122 = vector.load %arg11[%c32, %c0_32] : memref<64x512xf32, #tpu.memory_space<vmem>>, vector<8x512xf32>
    %cst_33 = arith.constant dense<0.000000e+00> : vector<8x512xf32>
    %123 = tpu.matmul %121, %7, %cst_33 {dimension_numbers = #tpu.dot_dimension_numbers<[1], [0], [0], [1], [0, 0, 1, 1], [], []>} : vector<8x128xf32>, vector<128x512xf32>, vector<8x512xf32> -> vector<8x512xf32>
    %124 = arith.addf %122, %123 : vector<8x512xf32>
    %125 = vector.extract_strided_slice %124 {offsets = [0, 0], sizes = [8, 128], strides = [1, 1]} : vector<8x512xf32> to vector<8x128xf32>
    %126 = arith.negf %125 : vector<8x128xf32>
    %127 = math.exp %126 : vector<8x128xf32>
    %cst_34 = arith.constant 1.000000e+00 : f32
    %128 = vector.broadcast %cst_34 : f32 to vector<8x128xf32>
    %129 = arith.addf %128, %127 : vector<8x128xf32>
    %130 = arith.divf %128, %129 : vector<8x128xf32>
    %131 = vector.extract_strided_slice %124 {offsets = [0, 128], sizes = [8, 128], strides = [1, 1]} : vector<8x512xf32> to vector<8x128xf32>
    %132 = arith.negf %131 : vector<8x128xf32>
    %133 = math.exp %132 : vector<8x128xf32>
    %cst_35 = arith.constant 1.000000e+00 : f32
    %134 = vector.broadcast %cst_35 : f32 to vector<8x128xf32>
    %135 = arith.addf %134, %133 : vector<8x128xf32>
    %136 = arith.divf %134, %135 : vector<8x128xf32>
    %137 = vector.extract_strided_slice %124 {offsets = [0, 256], sizes = [8, 128], strides = [1, 1]} : vector<8x512xf32> to vector<8x128xf32>
    %138 = math.tanh %137 : vector<8x128xf32>
    %139 = vector.extract_strided_slice %124 {offsets = [0, 384], sizes = [8, 128], strides = [1, 1]} : vector<8x512xf32> to vector<8x128xf32>
    %140 = arith.negf %139 : vector<8x128xf32>
    %141 = math.exp %140 : vector<8x128xf32>
    %cst_36 = arith.constant 1.000000e+00 : f32
    %142 = vector.broadcast %cst_36 : f32 to vector<8x128xf32>
    %143 = arith.addf %142, %141 : vector<8x128xf32>
    %144 = arith.divf %142, %143 : vector<8x128xf32>
    %145 = arith.mulf %136, %119 : vector<8x128xf32>
    %146 = arith.mulf %130, %138 : vector<8x128xf32>
    %147 = arith.addf %145, %146 : vector<8x128xf32>
    %148 = math.tanh %147 : vector<8x128xf32>
    %149 = arith.mulf %144, %148 : vector<8x128xf32>
    %c40 = arith.constant 40 : index
    %c0_37 = arith.constant 0 : index
    %150 = vector.load %arg11[%c40, %c0_37] : memref<64x512xf32, #tpu.memory_space<vmem>>, vector<8x512xf32>
    %cst_38 = arith.constant dense<0.000000e+00> : vector<8x512xf32>
    %151 = tpu.matmul %149, %7, %cst_38 {dimension_numbers = #tpu.dot_dimension_numbers<[1], [0], [0], [1], [0, 0, 1, 1], [], []>} : vector<8x128xf32>, vector<128x512xf32>, vector<8x512xf32> -> vector<8x512xf32>
    %152 = arith.addf %150, %151 : vector<8x512xf32>
    %153 = vector.extract_strided_slice %152 {offsets = [0, 0], sizes = [8, 128], strides = [1, 1]} : vector<8x512xf32> to vector<8x128xf32>
    %154 = arith.negf %153 : vector<8x128xf32>
    %155 = math.exp %154 : vector<8x128xf32>
    %cst_39 = arith.constant 1.000000e+00 : f32
    %156 = vector.broadcast %cst_39 : f32 to vector<8x128xf32>
    %157 = arith.addf %156, %155 : vector<8x128xf32>
    %158 = arith.divf %156, %157 : vector<8x128xf32>
    %159 = vector.extract_strided_slice %152 {offsets = [0, 128], sizes = [8, 128], strides = [1, 1]} : vector<8x512xf32> to vector<8x128xf32>
    %160 = arith.negf %159 : vector<8x128xf32>
    %161 = math.exp %160 : vector<8x128xf32>
    %cst_40 = arith.constant 1.000000e+00 : f32
    %162 = vector.broadcast %cst_40 : f32 to vector<8x128xf32>
    %163 = arith.addf %162, %161 : vector<8x128xf32>
    %164 = arith.divf %162, %163 : vector<8x128xf32>
    %165 = vector.extract_strided_slice %152 {offsets = [0, 256], sizes = [8, 128], strides = [1, 1]} : vector<8x512xf32> to vector<8x128xf32>
    %166 = math.tanh %165 : vector<8x128xf32>
    %167 = vector.extract_strided_slice %152 {offsets = [0, 384], sizes = [8, 128], strides = [1, 1]} : vector<8x512xf32> to vector<8x128xf32>
    %168 = arith.negf %167 : vector<8x128xf32>
    %169 = math.exp %168 : vector<8x128xf32>
    %cst_41 = arith.constant 1.000000e+00 : f32
    %170 = vector.broadcast %cst_41 : f32 to vector<8x128xf32>
    %171 = arith.addf %170, %169 : vector<8x128xf32>
    %172 = arith.divf %170, %171 : vector<8x128xf32>
    %173 = arith.mulf %164, %147 : vector<8x128xf32>
    %174 = arith.mulf %158, %166 : vector<8x128xf32>
    %175 = arith.addf %173, %174 : vector<8x128xf32>
    %176 = math.tanh %175 : vector<8x128xf32>
    %177 = arith.mulf %172, %176 : vector<8x128xf32>
    %c48 = arith.constant 48 : index
    %c0_42 = arith.constant 0 : index
    %178 = vector.load %arg11[%c48, %c0_42] : memref<64x512xf32, #tpu.memory_space<vmem>>, vector<8x512xf32>
    %cst_43 = arith.constant dense<0.000000e+00> : vector<8x512xf32>
    %179 = tpu.matmul %177, %7, %cst_43 {dimension_numbers = #tpu.dot_dimension_numbers<[1], [0], [0], [1], [0, 0, 1, 1], [], []>} : vector<8x128xf32>, vector<128x512xf32>, vector<8x512xf32> -> vector<8x512xf32>
    %180 = arith.addf %178, %179 : vector<8x512xf32>
    %181 = vector.extract_strided_slice %180 {offsets = [0, 0], sizes = [8, 128], strides = [1, 1]} : vector<8x512xf32> to vector<8x128xf32>
    %182 = arith.negf %181 : vector<8x128xf32>
    %183 = math.exp %182 : vector<8x128xf32>
    %cst_44 = arith.constant 1.000000e+00 : f32
    %184 = vector.broadcast %cst_44 : f32 to vector<8x128xf32>
    %185 = arith.addf %184, %183 : vector<8x128xf32>
    %186 = arith.divf %184, %185 : vector<8x128xf32>
    %187 = vector.extract_strided_slice %180 {offsets = [0, 128], sizes = [8, 128], strides = [1, 1]} : vector<8x512xf32> to vector<8x128xf32>
    %188 = arith.negf %187 : vector<8x128xf32>
    %189 = math.exp %188 : vector<8x128xf32>
    %cst_45 = arith.constant 1.000000e+00 : f32
    %190 = vector.broadcast %cst_45 : f32 to vector<8x128xf32>
    %191 = arith.addf %190, %189 : vector<8x128xf32>
    %192 = arith.divf %190, %191 : vector<8x128xf32>
    %193 = vector.extract_strided_slice %180 {offsets = [0, 256], sizes = [8, 128], strides = [1, 1]} : vector<8x512xf32> to vector<8x128xf32>
    %194 = math.tanh %193 : vector<8x128xf32>
    %195 = vector.extract_strided_slice %180 {offsets = [0, 384], sizes = [8, 128], strides = [1, 1]} : vector<8x512xf32> to vector<8x128xf32>
    %196 = arith.negf %195 : vector<8x128xf32>
    %197 = math.exp %196 : vector<8x128xf32>
    %cst_46 = arith.constant 1.000000e+00 : f32
    %198 = vector.broadcast %cst_46 : f32 to vector<8x128xf32>
    %199 = arith.addf %198, %197 : vector<8x128xf32>
    %200 = arith.divf %198, %199 : vector<8x128xf32>
    %201 = arith.mulf %192, %175 : vector<8x128xf32>
    %202 = arith.mulf %186, %194 : vector<8x128xf32>
    %203 = arith.addf %201, %202 : vector<8x128xf32>
    %204 = math.tanh %203 : vector<8x128xf32>
    %205 = arith.mulf %200, %204 : vector<8x128xf32>
    %c56 = arith.constant 56 : index
    %c0_47 = arith.constant 0 : index
    %206 = vector.load %arg11[%c56, %c0_47] : memref<64x512xf32, #tpu.memory_space<vmem>>, vector<8x512xf32>
    %cst_48 = arith.constant dense<0.000000e+00> : vector<8x512xf32>
    %207 = tpu.matmul %205, %7, %cst_48 {dimension_numbers = #tpu.dot_dimension_numbers<[1], [0], [0], [1], [0, 0, 1, 1], [], []>} : vector<8x128xf32>, vector<128x512xf32>, vector<8x512xf32> -> vector<8x512xf32>
    %208 = arith.addf %206, %207 : vector<8x512xf32>
    %209 = vector.extract_strided_slice %208 {offsets = [0, 0], sizes = [8, 128], strides = [1, 1]} : vector<8x512xf32> to vector<8x128xf32>
    %210 = arith.negf %209 : vector<8x128xf32>
    %211 = math.exp %210 : vector<8x128xf32>
    %cst_49 = arith.constant 1.000000e+00 : f32
    %212 = vector.broadcast %cst_49 : f32 to vector<8x128xf32>
    %213 = arith.addf %212, %211 : vector<8x128xf32>
    %214 = arith.divf %212, %213 : vector<8x128xf32>
    %215 = vector.extract_strided_slice %208 {offsets = [0, 128], sizes = [8, 128], strides = [1, 1]} : vector<8x512xf32> to vector<8x128xf32>
    %216 = arith.negf %215 : vector<8x128xf32>
    %217 = math.exp %216 : vector<8x128xf32>
    %cst_50 = arith.constant 1.000000e+00 : f32
    %218 = vector.broadcast %cst_50 : f32 to vector<8x128xf32>
    %219 = arith.addf %218, %217 : vector<8x128xf32>
    %220 = arith.divf %218, %219 : vector<8x128xf32>
    %221 = vector.extract_strided_slice %208 {offsets = [0, 256], sizes = [8, 128], strides = [1, 1]} : vector<8x512xf32> to vector<8x128xf32>
    %222 = math.tanh %221 : vector<8x128xf32>
    %223 = vector.extract_strided_slice %208 {offsets = [0, 384], sizes = [8, 128], strides = [1, 1]} : vector<8x512xf32> to vector<8x128xf32>
    %224 = arith.negf %223 : vector<8x128xf32>
    %225 = math.exp %224 : vector<8x128xf32>
    %cst_51 = arith.constant 1.000000e+00 : f32
    %226 = vector.broadcast %cst_51 : f32 to vector<8x128xf32>
    %227 = arith.addf %226, %225 : vector<8x128xf32>
    %228 = arith.divf %226, %227 : vector<8x128xf32>
    %229 = arith.mulf %220, %203 : vector<8x128xf32>
    %230 = arith.mulf %214, %222 : vector<8x128xf32>
    %231 = arith.addf %229, %230 : vector<8x128xf32>
    %232 = math.tanh %231 : vector<8x128xf32>
    %233 = arith.mulf %228, %232 : vector<8x128xf32>
    %c0_52 = arith.constant 0 : index
    %c0_53 = arith.constant 0 : index
    %234 = vector.load %arg9[%c0_52, %c0_53] : memref<8x128xf32, #tpu.memory_space<vmem>>, vector<8x128xf32>
    tpu.vector_store %arg9[%c0_52, %c0_53], %233 {strides = array<i32>} : memref<8x128xf32, #tpu.memory_space<vmem>>, vector<8x128xf32>,
    %c0_54 = arith.constant 0 : index
    %c0_55 = arith.constant 0 : index
    %235 = vector.load %arg4[%c0_54, %c0_55] : memref<128x512xf32, #tpu.memory_space<vmem>>, vector<128x512xf32>
    %cst_56 = arith.constant dense<0.000000e+00> : vector<8x512xf32>
    %236 = tpu.matmul %233, %235, %cst_56 {dimension_numbers = #tpu.dot_dimension_numbers<[1], [0], [0], [1], [0, 0, 1, 1], [], []>} : vector<8x128xf32>, vector<128x512xf32>, vector<8x512xf32> -> vector<8x512xf32>
    %c0_57 = arith.constant 0 : index
    %c0_58 = arith.constant 0 : index
    %237 = vector.load %arg6[%c0_57, %c0_58] : memref<1x512xf32, #tpu.memory_space<vmem>>, vector<1x512xf32>
    %238 = vector.broadcast %237 : vector<1x512xf32> to vector<8x512xf32>
    %239 = arith.addf %236, %238 : vector<8x512xf32>
    %c0_59 = arith.constant 0 : index
    %c0_60 = arith.constant 0 : index
    %240 = vector.load %arg5[%c0_59, %c0_60] : memref<128x512xf32, #tpu.memory_space<vmem>>, vector<128x512xf32>
    %cst_61 = arith.constant 0.000000e+00 : f32
    %241 = vector.broadcast %cst_61 : f32 to vector<8x128xf32>
    %cst_62 = arith.constant 0.000000e+00 : f32
    %242 = vector.broadcast %cst_62 : f32 to vector<8x128xf32>
    %cst_63 = arith.constant dense<0.000000e+00> : vector<8x512xf32>
    %243 = tpu.matmul %241, %240, %cst_63 {dimension_numbers = #tpu.dot_dimension_numbers<[1], [0], [0], [1], [0, 0, 1, 1], [], []>} : vector<8x128xf32>, vector<128x512xf32>, vector<8x512xf32> -> vector<8x512xf32>
    %244 = arith.addf %239, %243 : vector<8x512xf32>
    %245 = vector.extract_strided_slice %244 {offsets = [0, 0], sizes = [8, 128], strides = [1, 1]} : vector<8x512xf32> to vector<8x128xf32>
    %246 = arith.negf %245 : vector<8x128xf32>
    %247 = math.exp %246 : vector<8x128xf32>
    %cst_64 = arith.constant 1.000000e+00 : f32
    %248 = vector.broadcast %cst_64 : f32 to vector<8x128xf32>
    %249 = arith.addf %248, %247 : vector<8x128xf32>
    %250 = arith.divf %248, %249 : vector<8x128xf32>
    %251 = vector.extract_strided_slice %244 {offsets = [0, 128], sizes = [8, 128], strides = [1, 1]} : vector<8x512xf32> to vector<8x128xf32>
    %252 = arith.negf %251 : vector<8x128xf32>
    %253 = math.exp %252 : vector<8x128xf32>
    %cst_65 = arith.constant 1.000000e+00 : f32
    %254 = vector.broadcast %cst_65 : f32 to vector<8x128xf32>
    %255 = arith.addf %254, %253 : vector<8x128xf32>
    %256 = arith.divf %254, %255 : vector<8x128xf32>
    %257 = vector.extract_strided_slice %244 {offsets = [0, 256], sizes = [8, 128], strides = [1, 1]} : vector<8x512xf32> to vector<8x128xf32>
    %258 = math.tanh %257 : vector<8x128xf32>
    %259 = vector.extract_strided_slice %244 {offsets = [0, 384], sizes = [8, 128], strides = [1, 1]} : vector<8x512xf32> to vector<8x128xf32>
    %260 = arith.negf %259 : vector<8x128xf32>
    %261 = math.exp %260 : vector<8x128xf32>
    %cst_66 = arith.constant 1.000000e+00 : f32
    %262 = vector.broadcast %cst_66 : f32 to vector<8x128xf32>
    %263 = arith.addf %262, %261 : vector<8x128xf32>
    %264 = arith.divf %262, %263 : vector<8x128xf32>
    %265 = arith.mulf %256, %242 : vector<8x128xf32>
    %266 = arith.mulf %250, %258 : vector<8x128xf32>
    %267 = arith.addf %265, %266 : vector<8x128xf32>
    %268 = math.tanh %267 : vector<8x128xf32>
    %269 = arith.mulf %264, %268 : vector<8x128xf32>
    %c0_67 = arith.constant 0 : index
    %c0_68 = arith.constant 0 : index
    %270 = vector.load %arg12[%c0_67, %c0_68] : memref<64x128xf32, #tpu.memory_space<vmem>>, vector<8x128xf32>
    tpu.vector_store %arg12[%c0_67, %c0_68], %269 {strides = array<i32>} : memref<64x128xf32, #tpu.memory_space<vmem>>, vector<8x128xf32>,
    %cst_69 = arith.constant dense<0.000000e+00> : vector<8x512xf32>
    %271 = tpu.matmul %269, %240, %cst_69 {dimension_numbers = #tpu.dot_dimension_numbers<[1], [0], [0], [1], [0, 0, 1, 1], [], []>} : vector<8x128xf32>, vector<128x512xf32>, vector<8x512xf32> -> vector<8x512xf32>
    %272 = arith.addf %239, %271 : vector<8x512xf32>
    %273 = vector.extract_strided_slice %272 {offsets = [0, 0], sizes = [8, 128], strides = [1, 1]} : vector<8x512xf32> to vector<8x128xf32>
    %274 = arith.negf %273 : vector<8x128xf32>
    %275 = math.exp %274 : vector<8x128xf32>
    %cst_70 = arith.constant 1.000000e+00 : f32
    %276 = vector.broadcast %cst_70 : f32 to vector<8x128xf32>
    %277 = arith.addf %276, %275 : vector<8x128xf32>
    %278 = arith.divf %276, %277 : vector<8x128xf32>
    %279 = vector.extract_strided_slice %272 {offsets = [0, 128], sizes = [8, 128], strides = [1, 1]} : vector<8x512xf32> to vector<8x128xf32>
    %280 = arith.negf %279 : vector<8x128xf32>
    %281 = math.exp %280 : vector<8x128xf32>
    %cst_71 = arith.constant 1.000000e+00 : f32
    %282 = vector.broadcast %cst_71 : f32 to vector<8x128xf32>
    %283 = arith.addf %282, %281 : vector<8x128xf32>
    %284 = arith.divf %282, %283 : vector<8x128xf32>
    %285 = vector.extract_strided_slice %272 {offsets = [0, 256], sizes = [8, 128], strides = [1, 1]} : vector<8x512xf32> to vector<8x128xf32>
    %286 = math.tanh %285 : vector<8x128xf32>
    %287 = vector.extract_strided_slice %272 {offsets = [0, 384], sizes = [8, 128], strides = [1, 1]} : vector<8x512xf32> to vector<8x128xf32>
    %288 = arith.negf %287 : vector<8x128xf32>
    %289 = math.exp %288 : vector<8x128xf32>
    %cst_72 = arith.constant 1.000000e+00 : f32
    %290 = vector.broadcast %cst_72 : f32 to vector<8x128xf32>
    %291 = arith.addf %290, %289 : vector<8x128xf32>
    %292 = arith.divf %290, %291 : vector<8x128xf32>
    %293 = arith.mulf %284, %267 : vector<8x128xf32>
    %294 = arith.mulf %278, %286 : vector<8x128xf32>
    %295 = arith.addf %293, %294 : vector<8x128xf32>
    %296 = math.tanh %295 : vector<8x128xf32>
    %297 = arith.mulf %292, %296 : vector<8x128xf32>
    %c8_73 = arith.constant 8 : index
    %c0_74 = arith.constant 0 : index
    %298 = vector.load %arg12[%c8_73, %c0_74] : memref<64x128xf32, #tpu.memory_space<vmem>>, vector<8x128xf32>
    tpu.vector_store %arg12[%c8_73, %c0_74], %297 {strides = array<i32>} : memref<64x128xf32, #tpu.memory_space<vmem>>, vector<8x128xf32>,
    %cst_75 = arith.constant dense<0.000000e+00> : vector<8x512xf32>
    %299 = tpu.matmul %297, %240, %cst_75 {dimension_numbers = #tpu.dot_dimension_numbers<[1], [0], [0], [1], [0, 0, 1, 1], [], []>} : vector<8x128xf32>, vector<128x512xf32>, vector<8x512xf32> -> vector<8x512xf32>
    %300 = arith.addf %239, %299 : vector<8x512xf32>
    %301 = vector.extract_strided_slice %300 {offsets = [0, 0], sizes = [8, 128], strides = [1, 1]} : vector<8x512xf32> to vector<8x128xf32>
    %302 = arith.negf %301 : vector<8x128xf32>
    %303 = math.exp %302 : vector<8x128xf32>
    %cst_76 = arith.constant 1.000000e+00 : f32
    %304 = vector.broadcast %cst_76 : f32 to vector<8x128xf32>
    %305 = arith.addf %304, %303 : vector<8x128xf32>
    %306 = arith.divf %304, %305 : vector<8x128xf32>
    %307 = vector.extract_strided_slice %300 {offsets = [0, 128], sizes = [8, 128], strides = [1, 1]} : vector<8x512xf32> to vector<8x128xf32>
    %308 = arith.negf %307 : vector<8x128xf32>
    %309 = math.exp %308 : vector<8x128xf32>
    %cst_77 = arith.constant 1.000000e+00 : f32
    %310 = vector.broadcast %cst_77 : f32 to vector<8x128xf32>
    %311 = arith.addf %310, %309 : vector<8x128xf32>
    %312 = arith.divf %310, %311 : vector<8x128xf32>
    %313 = vector.extract_strided_slice %300 {offsets = [0, 256], sizes = [8, 128], strides = [1, 1]} : vector<8x512xf32> to vector<8x128xf32>
    %314 = math.tanh %313 : vector<8x128xf32>
    %315 = vector.extract_strided_slice %300 {offsets = [0, 384], sizes = [8, 128], strides = [1, 1]} : vector<8x512xf32> to vector<8x128xf32>
    %316 = arith.negf %315 : vector<8x128xf32>
    %317 = math.exp %316 : vector<8x128xf32>
    %cst_78 = arith.constant 1.000000e+00 : f32
    %318 = vector.broadcast %cst_78 : f32 to vector<8x128xf32>
    %319 = arith.addf %318, %317 : vector<8x128xf32>
    %320 = arith.divf %318, %319 : vector<8x128xf32>
    %321 = arith.mulf %312, %295 : vector<8x128xf32>
    %322 = arith.mulf %306, %314 : vector<8x128xf32>
    %323 = arith.addf %321, %322 : vector<8x128xf32>
    %324 = math.tanh %323 : vector<8x128xf32>
    %325 = arith.mulf %320, %324 : vector<8x128xf32>
    %c16_79 = arith.constant 16 : index
    %c0_80 = arith.constant 0 : index
    %326 = vector.load %arg12[%c16_79, %c0_80] : memref<64x128xf32, #tpu.memory_space<vmem>>, vector<8x128xf32>
    tpu.vector_store %arg12[%c16_79, %c0_80], %325 {strides = array<i32>} : memref<64x128xf32, #tpu.memory_space<vmem>>, vector<8x128xf32>,
    %cst_81 = arith.constant dense<0.000000e+00> : vector<8x512xf32>
    %327 = tpu.matmul %325, %240, %cst_81 {dimension_numbers = #tpu.dot_dimension_numbers<[1], [0], [0], [1], [0, 0, 1, 1], [], []>} : vector<8x128xf32>, vector<128x512xf32>, vector<8x512xf32> -> vector<8x512xf32>
    %328 = arith.addf %239, %327 : vector<8x512xf32>
    %329 = vector.extract_strided_slice %328 {offsets = [0, 0], sizes = [8, 128], strides = [1, 1]} : vector<8x512xf32> to vector<8x128xf32>
    %330 = arith.negf %329 : vector<8x128xf32>
    %331 = math.exp %330 : vector<8x128xf32>
    %cst_82 = arith.constant 1.000000e+00 : f32
    %332 = vector.broadcast %cst_82 : f32 to vector<8x128xf32>
    %333 = arith.addf %332, %331 : vector<8x128xf32>
    %334 = arith.divf %332, %333 : vector<8x128xf32>
    %335 = vector.extract_strided_slice %328 {offsets = [0, 128], sizes = [8, 128], strides = [1, 1]} : vector<8x512xf32> to vector<8x128xf32>
    %336 = arith.negf %335 : vector<8x128xf32>
    %337 = math.exp %336 : vector<8x128xf32>
    %cst_83 = arith.constant 1.000000e+00 : f32
    %338 = vector.broadcast %cst_83 : f32 to vector<8x128xf32>
    %339 = arith.addf %338, %337 : vector<8x128xf32>
    %340 = arith.divf %338, %339 : vector<8x128xf32>
    %341 = vector.extract_strided_slice %328 {offsets = [0, 256], sizes = [8, 128], strides = [1, 1]} : vector<8x512xf32> to vector<8x128xf32>
    %342 = math.tanh %341 : vector<8x128xf32>
    %343 = vector.extract_strided_slice %328 {offsets = [0, 384], sizes = [8, 128], strides = [1, 1]} : vector<8x512xf32> to vector<8x128xf32>
    %344 = arith.negf %343 : vector<8x128xf32>
    %345 = math.exp %344 : vector<8x128xf32>
    %cst_84 = arith.constant 1.000000e+00 : f32
    %346 = vector.broadcast %cst_84 : f32 to vector<8x128xf32>
    %347 = arith.addf %346, %345 : vector<8x128xf32>
    %348 = arith.divf %346, %347 : vector<8x128xf32>
    %349 = arith.mulf %340, %323 : vector<8x128xf32>
    %350 = arith.mulf %334, %342 : vector<8x128xf32>
    %351 = arith.addf %349, %350 : vector<8x128xf32>
    %352 = math.tanh %351 : vector<8x128xf32>
    %353 = arith.mulf %348, %352 : vector<8x128xf32>
    %c24_85 = arith.constant 24 : index
    %c0_86 = arith.constant 0 : index
    %354 = vector.load %arg12[%c24_85, %c0_86] : memref<64x128xf32, #tpu.memory_space<vmem>>, vector<8x128xf32>
    tpu.vector_store %arg12[%c24_85, %c0_86], %353 {strides = array<i32>} : memref<64x128xf32, #tpu.memory_space<vmem>>, vector<8x128xf32>,
    %cst_87 = arith.constant dense<0.000000e+00> : vector<8x512xf32>
    %355 = tpu.matmul %353, %240, %cst_87 {dimension_numbers = #tpu.dot_dimension_numbers<[1], [0], [0], [1], [0, 0, 1, 1], [], []>} : vector<8x128xf32>, vector<128x512xf32>, vector<8x512xf32> -> vector<8x512xf32>
    %356 = arith.addf %239, %355 : vector<8x512xf32>
    %357 = vector.extract_strided_slice %356 {offsets = [0, 0], sizes = [8, 128], strides = [1, 1]} : vector<8x512xf32> to vector<8x128xf32>
    %358 = arith.negf %357 : vector<8x128xf32>
    %359 = math.exp %358 : vector<8x128xf32>
    %cst_88 = arith.constant 1.000000e+00 : f32
    %360 = vector.broadcast %cst_88 : f32 to vector<8x128xf32>
    %361 = arith.addf %360, %359 : vector<8x128xf32>
    %362 = arith.divf %360, %361 : vector<8x128xf32>
    %363 = vector.extract_strided_slice %356 {offsets = [0, 128], sizes = [8, 128], strides = [1, 1]} : vector<8x512xf32> to vector<8x128xf32>
    %364 = arith.negf %363 : vector<8x128xf32>
    %365 = math.exp %364 : vector<8x128xf32>
    %cst_89 = arith.constant 1.000000e+00 : f32
    %366 = vector.broadcast %cst_89 : f32 to vector<8x128xf32>
    %367 = arith.addf %366, %365 : vector<8x128xf32>
    %368 = arith.divf %366, %367 : vector<8x128xf32>
    %369 = vector.extract_strided_slice %356 {offsets = [0, 256], sizes = [8, 128], strides = [1, 1]} : vector<8x512xf32> to vector<8x128xf32>
    %370 = math.tanh %369 : vector<8x128xf32>
    %371 = vector.extract_strided_slice %356 {offsets = [0, 384], sizes = [8, 128], strides = [1, 1]} : vector<8x512xf32> to vector<8x128xf32>
    %372 = arith.negf %371 : vector<8x128xf32>
    %373 = math.exp %372 : vector<8x128xf32>
    %cst_90 = arith.constant 1.000000e+00 : f32
    %374 = vector.broadcast %cst_90 : f32 to vector<8x128xf32>
    %375 = arith.addf %374, %373 : vector<8x128xf32>
    %376 = arith.divf %374, %375 : vector<8x128xf32>
    %377 = arith.mulf %368, %351 : vector<8x128xf32>
    %378 = arith.mulf %362, %370 : vector<8x128xf32>
    %379 = arith.addf %377, %378 : vector<8x128xf32>
    %380 = math.tanh %379 : vector<8x128xf32>
    %381 = arith.mulf %376, %380 : vector<8x128xf32>
    %c32_91 = arith.constant 32 : index
    %c0_92 = arith.constant 0 : index
    %382 = vector.load %arg12[%c32_91, %c0_92] : memref<64x128xf32, #tpu.memory_space<vmem>>, vector<8x128xf32>
    tpu.vector_store %arg12[%c32_91, %c0_92], %381 {strides = array<i32>} : memref<64x128xf32, #tpu.memory_space<vmem>>, vector<8x128xf32>,
    %cst_93 = arith.constant dense<0.000000e+00> : vector<8x512xf32>
    %383 = tpu.matmul %381, %240, %cst_93 {dimension_numbers = #tpu.dot_dimension_numbers<[1], [0], [0], [1], [0, 0, 1, 1], [], []>} : vector<8x128xf32>, vector<128x512xf32>, vector<8x512xf32> -> vector<8x512xf32>
    %384 = arith.addf %239, %383 : vector<8x512xf32>
    %385 = vector.extract_strided_slice %384 {offsets = [0, 0], sizes = [8, 128], strides = [1, 1]} : vector<8x512xf32> to vector<8x128xf32>
    %386 = arith.negf %385 : vector<8x128xf32>
    %387 = math.exp %386 : vector<8x128xf32>
    %cst_94 = arith.constant 1.000000e+00 : f32
    %388 = vector.broadcast %cst_94 : f32 to vector<8x128xf32>
    %389 = arith.addf %388, %387 : vector<8x128xf32>
    %390 = arith.divf %388, %389 : vector<8x128xf32>
    %391 = vector.extract_strided_slice %384 {offsets = [0, 128], sizes = [8, 128], strides = [1, 1]} : vector<8x512xf32> to vector<8x128xf32>
    %392 = arith.negf %391 : vector<8x128xf32>
    %393 = math.exp %392 : vector<8x128xf32>
    %cst_95 = arith.constant 1.000000e+00 : f32
    %394 = vector.broadcast %cst_95 : f32 to vector<8x128xf32>
    %395 = arith.addf %394, %393 : vector<8x128xf32>
    %396 = arith.divf %394, %395 : vector<8x128xf32>
    %397 = vector.extract_strided_slice %384 {offsets = [0, 256], sizes = [8, 128], strides = [1, 1]} : vector<8x512xf32> to vector<8x128xf32>
    %398 = math.tanh %397 : vector<8x128xf32>
    %399 = vector.extract_strided_slice %384 {offsets = [0, 384], sizes = [8, 128], strides = [1, 1]} : vector<8x512xf32> to vector<8x128xf32>
    %400 = arith.negf %399 : vector<8x128xf32>
    %401 = math.exp %400 : vector<8x128xf32>
    %cst_96 = arith.constant 1.000000e+00 : f32
    %402 = vector.broadcast %cst_96 : f32 to vector<8x128xf32>
    %403 = arith.addf %402, %401 : vector<8x128xf32>
    %404 = arith.divf %402, %403 : vector<8x128xf32>
    %405 = arith.mulf %396, %379 : vector<8x128xf32>
    %406 = arith.mulf %390, %398 : vector<8x128xf32>
    %407 = arith.addf %405, %406 : vector<8x128xf32>
    %408 = math.tanh %407 : vector<8x128xf32>
    %409 = arith.mulf %404, %408 : vector<8x128xf32>
    %c40_97 = arith.constant 40 : index
    %c0_98 = arith.constant 0 : index
    %410 = vector.load %arg12[%c40_97, %c0_98] : memref<64x128xf32, #tpu.memory_space<vmem>>, vector<8x128xf32>
    tpu.vector_store %arg12[%c40_97, %c0_98], %409 {strides = array<i32>} : memref<64x128xf32, #tpu.memory_space<vmem>>, vector<8x128xf32>,
    %cst_99 = arith.constant dense<0.000000e+00> : vector<8x512xf32>
    %411 = tpu.matmul %409, %240, %cst_99 {dimension_numbers = #tpu.dot_dimension_numbers<[1], [0], [0], [1], [0, 0, 1, 1], [], []>} : vector<8x128xf32>, vector<128x512xf32>, vector<8x512xf32> -> vector<8x512xf32>
    %412 = arith.addf %239, %411 : vector<8x512xf32>
    %413 = vector.extract_strided_slice %412 {offsets = [0, 0], sizes = [8, 128], strides = [1, 1]} : vector<8x512xf32> to vector<8x128xf32>
    %414 = arith.negf %413 : vector<8x128xf32>
    %415 = math.exp %414 : vector<8x128xf32>
    %cst_100 = arith.constant 1.000000e+00 : f32
    %416 = vector.broadcast %cst_100 : f32 to vector<8x128xf32>
    %417 = arith.addf %416, %415 : vector<8x128xf32>
    %418 = arith.divf %416, %417 : vector<8x128xf32>
    %419 = vector.extract_strided_slice %412 {offsets = [0, 128], sizes = [8, 128], strides = [1, 1]} : vector<8x512xf32> to vector<8x128xf32>
    %420 = arith.negf %419 : vector<8x128xf32>
    %421 = math.exp %420 : vector<8x128xf32>
    %cst_101 = arith.constant 1.000000e+00 : f32
    %422 = vector.broadcast %cst_101 : f32 to vector<8x128xf32>
    %423 = arith.addf %422, %421 : vector<8x128xf32>
    %424 = arith.divf %422, %423 : vector<8x128xf32>
    %425 = vector.extract_strided_slice %412 {offsets = [0, 256], sizes = [8, 128], strides = [1, 1]} : vector<8x512xf32> to vector<8x128xf32>
    %426 = math.tanh %425 : vector<8x128xf32>
    %427 = vector.extract_strided_slice %412 {offsets = [0, 384], sizes = [8, 128], strides = [1, 1]} : vector<8x512xf32> to vector<8x128xf32>
    %428 = arith.negf %427 : vector<8x128xf32>
    %429 = math.exp %428 : vector<8x128xf32>
    %cst_102 = arith.constant 1.000000e+00 : f32
    %430 = vector.broadcast %cst_102 : f32 to vector<8x128xf32>
    %431 = arith.addf %430, %429 : vector<8x128xf32>
    %432 = arith.divf %430, %431 : vector<8x128xf32>
    %433 = arith.mulf %424, %407 : vector<8x128xf32>
    %434 = arith.mulf %418, %426 : vector<8x128xf32>
    %435 = arith.addf %433, %434 : vector<8x128xf32>
    %436 = math.tanh %435 : vector<8x128xf32>
    %437 = arith.mulf %432, %436 : vector<8x128xf32>
    %c48_103 = arith.constant 48 : index
    %c0_104 = arith.constant 0 : index
    %438 = vector.load %arg12[%c48_103, %c0_104] : memref<64x128xf32, #tpu.memory_space<vmem>>, vector<8x128xf32>
    tpu.vector_store %arg12[%c48_103, %c0_104], %437 {strides = array<i32>} : memref<64x128xf32, #tpu.memory_space<vmem>>, vector<8x128xf32>,
    %cst_105 = arith.constant dense<0.000000e+00> : vector<8x512xf32>
    %439 = tpu.matmul %437, %240, %cst_105 {dimension_numbers = #tpu.dot_dimension_numbers<[1], [0], [0], [1], [0, 0, 1, 1], [], []>} : vector<8x128xf32>, vector<128x512xf32>, vector<8x512xf32> -> vector<8x512xf32>
    %440 = arith.addf %239, %439 : vector<8x512xf32>
    %441 = vector.extract_strided_slice %440 {offsets = [0, 0], sizes = [8, 128], strides = [1, 1]} : vector<8x512xf32> to vector<8x128xf32>
    %442 = arith.negf %441 : vector<8x128xf32>
    %443 = math.exp %442 : vector<8x128xf32>
    %cst_106 = arith.constant 1.000000e+00 : f32
    %444 = vector.broadcast %cst_106 : f32 to vector<8x128xf32>
    %445 = arith.addf %444, %443 : vector<8x128xf32>
    %446 = arith.divf %444, %445 : vector<8x128xf32>
    %447 = vector.extract_strided_slice %440 {offsets = [0, 128], sizes = [8, 128], strides = [1, 1]} : vector<8x512xf32> to vector<8x128xf32>
    %448 = arith.negf %447 : vector<8x128xf32>
    %449 = math.exp %448 : vector<8x128xf32>
    %cst_107 = arith.constant 1.000000e+00 : f32
    %450 = vector.broadcast %cst_107 : f32 to vector<8x128xf32>
    %451 = arith.addf %450, %449 : vector<8x128xf32>
    %452 = arith.divf %450, %451 : vector<8x128xf32>
    %453 = vector.extract_strided_slice %440 {offsets = [0, 256], sizes = [8, 128], strides = [1, 1]} : vector<8x512xf32> to vector<8x128xf32>
    %454 = math.tanh %453 : vector<8x128xf32>
    %455 = vector.extract_strided_slice %440 {offsets = [0, 384], sizes = [8, 128], strides = [1, 1]} : vector<8x512xf32> to vector<8x128xf32>
    %456 = arith.negf %455 : vector<8x128xf32>
    %457 = math.exp %456 : vector<8x128xf32>
    %cst_108 = arith.constant 1.000000e+00 : f32
    %458 = vector.broadcast %cst_108 : f32 to vector<8x128xf32>
    %459 = arith.addf %458, %457 : vector<8x128xf32>
    %460 = arith.divf %458, %459 : vector<8x128xf32>
    %461 = arith.mulf %452, %435 : vector<8x128xf32>
    %462 = arith.mulf %446, %454 : vector<8x128xf32>
    %463 = arith.addf %461, %462 : vector<8x128xf32>
    %464 = math.tanh %463 : vector<8x128xf32>
    %465 = arith.mulf %460, %464 : vector<8x128xf32>
    %c56_109 = arith.constant 56 : index
    %c0_110 = arith.constant 0 : index
    %466 = vector.load %arg12[%c56_109, %c0_110] : memref<64x128xf32, #tpu.memory_space<vmem>>, vector<8x128xf32>
    tpu.vector_store %arg12[%c56_109, %c0_110], %465 {strides = array<i32>} : memref<64x128xf32, #tpu.memory_space<vmem>>, vector<8x128xf32>,
    %c0_111 = arith.constant 0 : index
    %c0_112 = arith.constant 0 : index
    %467 = vector.load %arg12[%c0_111, %c0_112] : memref<64x128xf32, #tpu.memory_space<vmem>>, vector<64x128xf32>
    %c0_113 = arith.constant 0 : index
    %c0_114 = arith.constant 0 : index
    %468 = vector.load %arg7[%c0_113, %c0_114] : memref<128x128xf32, #tpu.memory_space<vmem>>, vector<128x128xf32>
    %cst_115 = arith.constant dense<0.000000e+00> : vector<64x128xf32>
    %469 = tpu.matmul %467, %468, %cst_115 {dimension_numbers = #tpu.dot_dimension_numbers<[1], [0], [0], [1], [0, 0, 1, 1], [], []>} : vector<64x128xf32>, vector<128x128xf32>, vector<64x128xf32> -> vector<64x128xf32>
    %c0_116 = arith.constant 0 : index
    %c0_117 = arith.constant 0 : index
    %470 = vector.load %arg8[%c0_116, %c0_117] : memref<1x128xf32, #tpu.memory_space<vmem>>, vector<1x128xf32>
    %471 = vector.broadcast %470 : vector<1x128xf32> to vector<64x128xf32>
    %472 = arith.addf %469, %471 : vector<64x128xf32>
    %c0_118 = arith.constant 0 : index
    %c0_119 = arith.constant 0 : index
    %473 = vector.load %arg10[%c0_118, %c0_119] : memref<64x128xf32, #tpu.memory_space<vmem>>, vector<64x128xf32>
    tpu.vector_store %arg10[%c0_118, %c0_119], %472 {strides = array<i32>} : memref<64x128xf32, #tpu.memory_space<vmem>>, vector<64x128xf32>,
    return
  }
}

</mosaic_0001>

<bundles_post_ra>
// kernel: lstm_ae_forward.1
= control target key start
LH: loop header
LB: loop body
LE: loop exit
PB: predicated region body
PF: predicated region fallthrough
CT: control target
= control target key end

     0   :  { %vm95_vm0 = vcmask 1043456   ;;  %v5211_v1 = vmov 0.0   ;;  %vm70_vm1 = vcmask 31744   ;;  %s6875_s1 = inlined_call_operand.vmem [shape: f32[4,512], index: 1, kind: input, shape index: {}]   ;;  %s6876_s0 = inlined_call_operand.vmem [shape: f32[64,4], index: 0, kind: input, shape index: {}]   ;;  %s6877_s2 = inlined_call_operand.vmem [shape: f32[128,512], index: 2, kind: input, shape index: {}]   ;;  %s6878_s3 = inlined_call_operand.vmem [shape: f32[1,512], index: 3, kind: input, shape index: {}]   ;;  %s6879_s4 = inlined_call_operand.vmem [shape: f32[128,512], index: 4, kind: input, shape index: {}]   ;;  %s6880_s5 = inlined_call_operand.vmem [shape: f32[128,512], index: 5, kind: input, shape index: {}]   ;;  %s6881_s9 = inlined_call_operand.vmem [shape: f32[8,128], index: 9, kind: output, shape index: {0}]   ;;  %s6882_s6 = inlined_call_operand.vmem [shape: f32[1,512], index: 6, kind: input, shape index: {}]   ;;  %s6883_s7 = inlined_call_operand.vmem [shape: f32[128,128], index: 7, kind: input, shape index: {}]   ;;  %s6884_s8 = inlined_call_operand.vmem [shape: f32[1,128], index: 8, kind: input, shape index: {}]   ;;  %s6885_s10 = inlined_call_operand.vmem [shape: f32[64,128], index: 10, kind: output, shape index: {1}]  }
   0x1   :  { %v43_v0 = vld [vmem:[%s6875_s1 + $0x8] sm:$0xff]  ;;  %281 = vmatprep.mubr.f32.mxu1 %v5211_v1  ;;  %168 = vmatprep.mubr.f32.mxu0 %v5211_v1  ;;  %v362_v5 = vld [vmem:[%s6877_s2] sm:$0xff]  ;;  %v5343_v24 = vld [vmem:[%s6876_s0 + $0x10] sm:$0xff] }
   0x2   :  { %v363_v2 = vld [vmem:[%s6877_s2 + $0x8] sm:$0xff]  ;;  %v69_v3 = vcombine.high %v43_v0, %v43_v0  ;;  %v366_v6 = vld [vmem:[%s6877_s2 + $0x20] sm:$0xff]  ;;  %v5372_v33 = vld [vmem:[%s6876_s0 + $0x18] sm:$0xff] }
   0x3   :  { %v367_v4 = vld [vmem:[%s6877_s2 + $0x28] sm:$0xff]  ;;  %v34_v7 = vld [vmem:[%s6876_s0] sm:$0xff]  ;;  %v5289_v9 = vpack.c.bf16 %v366_v6, %v362_v5  ;;  %v40_v54 = vld [vmem:[%s6876_s0 + $0x30] sm:$0xff] }
   0x4   :  { %v5287_v8 = vpack.c.bf16 %v367_v4, %v363_v2  ;;  %v371_v10 = vld [vmem:[%s6877_s2 + $0x48] sm:$0xff]  ;;  %3641 = vmatprep.subr.msk.mxu1 %vm95_vm0, %v69_v3  ;;  %v370_v13 = vld [vmem:[%s6877_s2 + $0x40] sm:$0xff]  ;;  %v365_v59 = vld [vmem:[%s6877_s2 + $0x18] sm:$0xff] }
   0x5   :  { %v375_v11 = vld [vmem:[%s6877_s2 + $0x68] sm:$0xff]  ;;  %v374_v14 = vld [vmem:[%s6877_s2 + $0x60] sm:$0xff]  ;;  %3642 = vmatpush1.msk.msra.mxu1 %vm95_vm0, %v43_v0  ;;  %v369_v60 = vld [vmem:[%s6877_s2 + $0x38] sm:$0xff] }
   0x6   :  { %v5298_v12 = vpack.c.bf16 %v375_v11, %v371_v10  ;;  %v379_v15 = vld [vmem:[%s6877_s2 + $0x88] sm:$0xff]  ;;  %3643 = vmatmul.mubr.msk.f32.vlgmr.msra.gmra.mrb[0].mxu1 %vm70_vm1, %v34_v7  ;;  %3769 = vmatprep.subr.bf16.mxu1 %v5287_v8  ;;  %v5320_v18 = vpack.c.bf16 %v374_v14, %v370_v13  ;;  %v378_v20 = vld [vmem:[%s6877_s2 + $0x80] sm:$0xff]  ;;  %v41_v61 = vld [vmem:[%s6876_s0 + $0x38] sm:$0xff]  ;;  %v5492_v63 = vpack.c.bf16 %v369_v60, %v365_v59 }
   0x7   :  { %v383_v16 = vld [vmem:[%s6877_s2 + $0xa8] sm:$0xff]  ;;  %3771 = vmatpush1.bf16.msra.mxu1 %v5289_v9  ;;  %287 = vmatprep.mubr.f32.mxu1 %v5211_v1  ;;  %v382_v21 = vld [vmem:[%s6877_s2 + $0xa0] sm:$0xff]  ;;  %v364_v0 = vld [vmem:[%s6877_s2 + $0x10] sm:$0xff] }
   0x8   :  { %v35_v17 = vld [vmem:[%s6876_s0 + $0x8] sm:$0xff]  ;;  %3773 = vmatprep.subr.bf16.mxu1 %v5298_v12  ;;  %v5323_v19 = vpack.c.bf16 %v383_v16, %v379_v15  ;;  %v5345_v25 = vpack.c.bf16 %v382_v21, %v378_v20  ;;  %v386_v27 = vld [vmem:[%s6877_s2 + $0xc0] sm:$0xff]  ;;  %v368_v2 = vld [vmem:[%s6877_s2 + $0x30] sm:$0xff] }
   0x9   :  { %v387_v22 = vld [vmem:[%s6877_s2 + $0xc8] sm:$0xff]  ;;  %v390_v28 = vld [vmem:[%s6877_s2 + $0xe0] sm:$0xff]  ;;  %v373_v3 = vld [vmem:[%s6877_s2 + $0x58] sm:$0xff]  ;;  %v5514_v5 = vpack.c.bf16 %v368_v2, %v364_v0  ;;  %v46_v0 = vlaneseq }
   0xa   :  { %v391_v23 = vld [vmem:[%s6877_s2 + $0xe8] sm:$0xff]  ;;  %3644 = vmatmul.mubr.msk.f32.gmra.mrb[2].mxu1 %vm70_vm1, %v35_v17  ;;  %v42_v31 = vld [vmem:[%s6875_s1] sm:$0xff]  ;;  %v5374_v34 = vpack.c.bf16 %v390_v28, %v386_v27  ;;  %v377_v4 = vld [vmem:[%s6877_s2 + $0x78] sm:$0xff] }
   0xb   :  { %3775 = vmatpush1.bf16.msra.mxu1 %v5320_v18  ;;  %293 = vmatprep.mubr.f32.mxu1 %v5211_v1  ;;  %v5348_v26 = vpack.c.bf16 %v391_v23, %v387_v22  ;;  %v395_v29 = vld [vmem:[%s6877_s2 + $0x108] sm:$0xff]  ;;  %v68_v32 = vcombine.high %v42_v31, %v42_v31  ;;  %v394_v36 = vld [vmem:[%s6877_s2 + $0x100] sm:$0xff]  ;;  %v5517_v6 = vpack.c.bf16 %v377_v4, %v373_v3  ;;  %v376_v10 = vld [vmem:[%s6877_s2 + $0x70] sm:$0xff]  ;;  %v5677_v3 = vshrl.u32 %v46_v0, 7 }
   0xc   :  { %3777 = vmatprep.subr.bf16.mxu1 %v5323_v19  ;;  %v399_v30 = vld [vmem:[%s6877_s2 + $0x128] sm:$0xff]  ;;  %v398_v37 = vld [vmem:[%s6877_s2 + $0x120] sm:$0xff]  ;;  %v381_v11 = vld [vmem:[%s6877_s2 + $0x98] sm:$0xff] }
   0xd   :  { %v5377_v35 = vpack.c.bf16 %v399_v30, %v395_v29  ;;  %3631 = vmatprep.subr.msk.mxu0 %vm95_vm0, %v68_v32  ;;  %v403_v38 = vld [vmem:[%s6877_s2 + $0x148] sm:$0xff]  ;;  %v5401_v40 = vld [vmem:[%s6876_s0 + $0x20] sm:$0xff]  ;;  %v5403_v41 = vpack.c.bf16 %v398_v37, %v394_v36  ;;  %v385_v13 = vld [vmem:[%s6877_s2 + $0xb8] sm:$0xff]  ;;  %v48_v4 = vsub.s32 0, %v5677_v3 }
   0xe   :  { %3645 = vmatmul.mubr.msk.f32.gmra.mrb[4].mxu1 %vm70_vm1, %v5343_v24  ;;  %v407_v39 = vld [vmem:[%s6877_s2 + $0x168] sm:$0xff]  ;;  %3632 = vmatpush1.msk.msra.mxu0 %vm95_vm0, %v42_v31  ;;  %v402_v43 = vld [vmem:[%s6877_s2 + $0x140] sm:$0xff]  ;;  %v5542_v15 = vpack.c.bf16 %v385_v13, %v381_v11  ;;  %v380_v16 = vld [vmem:[%s6877_s2 + $0x90] sm:$0xff] }
   0xf   :  { %3779 = vmatpush1.bf16.msra.mxu1 %v5345_v25  ;;  %299 = vmatprep.mubr.f32.mxu1 %v5211_v1  ;;  %v5406_v42 = vpack.c.bf16 %v407_v39, %v403_v38  ;;  %v406_v44 = vld [vmem:[%s6877_s2 + $0x160] sm:$0xff]  ;;  %v411_v45 = vld [vmem:[%s6877_s2 + $0x188] sm:$0xff]  ;;  %v389_v20 = vld [vmem:[%s6877_s2 + $0xd8] sm:$0xff] }
  0x10   :  { %3781 = vmatprep.subr.bf16.mxu1 %v5348_v26  ;;  %3633 = vmatmul.mubr.msk.f32.vlgmr.msra.gmra.mrb[0].mxu0 %vm70_vm1, %v34_v7  ;;  %v415_v46 = vld [vmem:[%s6877_s2 + $0x1a8] sm:$0xff]  ;;  %v5433_v48 = vpack.c.bf16 %v406_v44, %v402_v43  ;;  %v410_v50 = vld [vmem:[%s6877_s2 + $0x180] sm:$0xff]  ;;  %v372_v7 = vld [vmem:[%s6877_s2 + $0x50] sm:$0xff] }
  0x11   :  { %3833 = vmatprep.subr.bf16.mxu0 %v5287_v8  ;;  %174 = vmatprep.mubr.f32.mxu0 %v5211_v1  ;;  %v5431_v47 = vld [vmem:[%s6876_s0 + $0x28] sm:$0xff]  ;;  %v5436_v49 = vpack.c.bf16 %v415_v46, %v411_v45  ;;  %v414_v51 = vld [vmem:[%s6877_s2 + $0x1a0] sm:$0xff]  ;;  %v5538_v14 = vpack.c.bf16 %v376_v10, %v372_v7  ;;  %v393_v21 = vld [vmem:[%s6877_s2 + $0xf8] sm:$0xff]  ;;  %v52_v10 = vsub.s32 1, %v5677_v3 }
  0x12   :  { %3646 = vmatmul.mubr.msk.f32.gmra.mrb[6].mxu1 %vm70_vm1, %v5372_v33  ;;  %3835 = vmatpush1.bf16.msra.mxu0 %v5289_v9  ;;  %v419_v52 = vld [vmem:[%s6877_s2 + $0x1c8] sm:$0xff]  ;;  %v5461_v55 = vpack.c.bf16 %v414_v51, %v410_v50  ;;  %v418_v57 = vld [vmem:[%s6877_s2 + $0x1c0] sm:$0xff]  ;;  %v5565_v23 = vpack.c.bf16 %v393_v21, %v389_v20  ;;  %v392_v27 = vld [vmem:[%s6877_s2 + $0xf0] sm:$0xff] }
  0x13   :  { %3783 = vmatpush1.bf16.msra.mxu1 %v5374_v34  ;;  %305 = vmatprep.mubr.f32.mxu1 %v5211_v1  ;;  %v423_v53 = vld [vmem:[%s6877_s2 + $0x1e8] sm:$0xff]  ;;  %v422_v58 = vld [vmem:[%s6877_s2 + $0x1e0] sm:$0xff]  ;;  %v397_v28 = vld [vmem:[%s6877_s2 + $0x118] sm:$0xff] }
  0x14   :  { %3785 = vmatprep.subr.bf16.mxu1 %v5377_v35  ;;  %3837 = vmatprep.subr.bf16.mxu0 %v5298_v12  ;;  %v5464_v56 = vpack.c.bf16 %v423_v53, %v419_v52  ;;  %v5489_v62 = vpack.c.bf16 %v422_v58, %v418_v57  ;;  %v401_v29 = vld [vmem:[%s6877_s2 + $0x138] sm:$0xff]  ;;  %v396_v32 = vld [vmem:[%s6877_s2 + $0x110] sm:$0xff]  ;;  %v44_v7 = vld [vmem:[%s6878_s3] sm:$0xf] }
  0x15   :  { %3634 = vmatmul.mubr.msk.f32.gmra.mrb[2].mxu0 %vm70_vm1, %v35_v17  ;;  %v384_v17 = vld [vmem:[%s6877_s2 + $0xb0] sm:$0xff]  ;;  %v5587_v31 = vpack.c.bf16 %v401_v29, %v397_v28  ;;  %v405_v36 = vld [vmem:[%s6877_s2 + $0x158] sm:$0xff]  ;;  %v5686_v11 = vrot.slane %v44_v7, %v48_v4  ;;  %v5690_v13 = vrot.slane %v44_v7, %v52_v10 }
  0x16   :  { %3647 = vmatmul.mubr.msk.f32.gmra.mrb[8].mxu1 %vm70_vm1, %v5401_v40  ;;  %3839 = vmatpush1.bf16.msra.mxu0 %v5320_v18  ;;  %v5562_v22 = vpack.c.bf16 %v384_v17, %v380_v16  ;;  %v409_v37 = vld [vmem:[%s6877_s2 + $0x178] sm:$0xff]  ;;  %v408_v43 = vld [vmem:[%s6877_s2 + $0x170] sm:$0xff] }
  0x17   :  { %3787 = vmatpush1.bf16.msra.mxu1 %v5403_v41  ;;  %311 = vmatprep.mubr.f32.mxu1 %v5211_v1  ;;  %v5609_v39 = vpack.c.bf16 %v409_v37, %v405_v36  ;;  %v413_v44 = vld [vmem:[%s6877_s2 + $0x198] sm:$0xff]  ;;  %v412_v50 = vld [vmem:[%s6877_s2 + $0x190] sm:$0xff]  ;;  %v60_v36 = vsub.s32 3, %v5677_v3 }
  0x18   :  { %3789 = vmatprep.subr.bf16.mxu1 %v5406_v42  ;;  %180 = vmatprep.mubr.f32.mxu0 %v5211_v1  ;;  %v417_v45 = vld [vmem:[%s6877_s2 + $0x1b8] sm:$0xff]  ;;  %v416_v51 = vld [vmem:[%s6877_s2 + $0x1b0] sm:$0xff] }
  0x19   :  { %3841 = vmatprep.subr.bf16.mxu0 %v5323_v19  ;;  %3635 = vmatmul.mubr.msk.f32.gmra.mrb[4].mxu0 %vm70_vm1, %v5343_v24  ;;  %v388_v24 = vld [vmem:[%s6877_s2 + $0xd0] sm:$0xff]  ;;  %v421_v52 = vld [vmem:[%s6877_s2 + $0x1d8] sm:$0xff] }
  0x1a   :  { %3648 = vmatmul.mubr.msk.f32.gmra.mrb[10].mxu1 %vm70_vm1, %v5431_v47  ;;  %3843 = vmatpush1.bf16.msra.mxu0 %v5345_v25  ;;  %v5584_v30 = vpack.c.bf16 %v392_v27, %v388_v24  ;;  %v425_v53 = vld [vmem:[%s6877_s2 + $0x1f8] sm:$0xff]  ;;  %v420_v58 = vld [vmem:[%s6877_s2 + $0x1d0] sm:$0xff] }
  0x1b   :  { %3791 = vmatpush1.bf16.msra.mxu1 %v5433_v48  ;;  %317 = vmatprep.mubr.f32.mxu1 %v5211_v1  ;;  %v5645_v57 = vpack.c.bf16 %v425_v53, %v421_v52  ;;  %v424_v59 = vld [vmem:[%s6877_s2 + $0x1f0] sm:$0xff] }
  0x1c   :  { %3793 = vmatprep.subr.bf16.mxu1 %v5436_v49  ;;  %186 = vmatprep.mubr.f32.mxu0 %v5211_v1  ;;  %v5654_v60 = vpack.c.bf16 %v424_v59, %v420_v58 }
  0x1d   :  { %3845 = vmatprep.subr.bf16.mxu0 %v5348_v26  ;;  %3636 = vmatmul.mubr.msk.f32.gmra.mrb[6].mxu0 %vm70_vm1, %v5372_v33  ;;  %v400_v33 = vld [vmem:[%s6877_s2 + $0x130] sm:$0xff] }
  0x1e   :  { %3649 = vmatmul.mubr.msk.f32.gmra.mrb[12].mxu1 %vm70_vm1, %v40_v54  ;;  %3847 = vmatpush1.bf16.msra.mxu0 %v5374_v34  ;;  %v5606_v38 = vpack.c.bf16 %v400_v33, %v396_v32  ;;  %v56_v32 = vsub.s32 2, %v5677_v3 }
  0x1f   :  { %3795 = vmatpush1.bf16.msra.mxu1 %v5461_v55  ;;  %323 = vmatprep.mubr.f32.mxu1 %v5211_v1 }
  0x20   :  { %3797 = vmatprep.subr.bf16.mxu1 %v5464_v56  ;;  %192 = vmatprep.mubr.f32.mxu0 %v5211_v1 }
  0x21   :  { %3849 = vmatprep.subr.bf16.mxu0 %v5377_v35  ;;  %3637 = vmatmul.mubr.msk.f32.gmra.mrb[8].mxu0 %vm70_vm1, %v5401_v40  ;;  %v404_v40 = vld [vmem:[%s6877_s2 + $0x150] sm:$0xff] }
  0x22   :  { %3650 = vmatmul.mubr.msk.f32.gmra.mrb[14].mxu1 %vm70_vm1, %v41_v61  ;;  %3851 = vmatpush1.bf16.msra.mxu0 %v5403_v41  ;;  %v5624_v46 = vpack.c.bf16 %v408_v43, %v404_v40  ;;  %v5698_v43 = vrot.slane %v44_v7, %v56_v32 }
  0x23   :  { %3799 = vmatpush1.bf16.msra.mxu1 %v5489_v62  ;;  %494 = vmatprep.mubr.f32.mxu1 %v5211_v1 }
  0x24   :  { %3801 = vmatprep.subr.bf16.mxu1 %v5492_v63  ;;  %198 = vmatprep.mubr.f32.mxu0 %v5211_v1 }
  0x25   :  { %3853 = vmatprep.subr.bf16.mxu0 %v5406_v42  ;;  %3638 = vmatmul.mubr.msk.f32.gmra.mrb[10].mxu0 %vm70_vm1, %v5431_v47  ;;  %v5627_v47 = vpack.c.bf16 %v417_v45, %v413_v44  ;;  %v5702_v45 = vrot.slane %v44_v7, %v60_v36 }
  0x26   :  { %495 = vmatmul.mubr.f32.vlgmr.msra.gmra.mrb[16].mxu1 %v5211_v1  ;;  %3855 = vmatpush1.bf16.msra.mxu0 %v5433_v48 }
  0x27   :  { %3803 = vmatpush1.bf16.msra.mxu1 %v5514_v5  ;;  %565 = vmatprep.mubr.f32.mxu1 %v5211_v1 }
  0x28   :  { %3805 = vmatprep.subr.bf16.mxu1 %v5517_v6  ;;  %204 = vmatprep.mubr.f32.mxu0 %v5211_v1 }
  0x29   :  { %3857 = vmatprep.subr.bf16.mxu0 %v5436_v49  ;;  %3639 = vmatmul.mubr.msk.f32.gmra.mrb[12].mxu0 %vm70_vm1, %v40_v54  ;;  %v5642_v54 = vpack.c.bf16 %v416_v51, %v412_v50 }
  0x2a   :  { %3859 = vmatpush1.bf16.msra.mxu0 %v5461_v55  ;;  %210 = vmatprep.mubr.f32.mxu0 %v5211_v1 }
  0x2b   :  { %3807 = vmatpush1.bf16.msra.mxu1 %v5538_v14  ;;  %3861 = vmatprep.subr.bf16.mxu0 %v5464_v56 }
  0x2c   :  { %3809 = vmatprep.subr.bf16.mxu1 %v5542_v15 }
  0x2d   :  { %3640 = vmatmul.mubr.msk.f32.gmra.mrb[14].mxu0 %vm70_vm1, %v41_v61 }
  0x2e   :  { %3863 = vmatpush1.bf16.msra.mxu0 %v5489_v62  ;;  %668 = vmatprep.mubr.f32.mxu0 %v5211_v1 }
  0x2f   :  { %3811 = vmatpush1.bf16.msra.mxu1 %v5562_v22  ;;  %3897 = vmatprep.subr.bf16.mxu0 %v5287_v8 }
  0x30   :  { %3813 = vmatprep.subr.bf16.mxu1 %v5565_v23 }
  0x33   :  { %3815 = vmatpush1.bf16.msra.mxu1 %v5584_v30 }
  0x34   :  { %3817 = vmatprep.subr.bf16.mxu1 %v5587_v31 }
  0x37   :  { %3819 = vmatpush1.bf16.msra.mxu1 %v5606_v38 }
  0x38   :  { %3821 = vmatprep.subr.bf16.mxu1 %v5609_v39 }
  0x3b   :  { %3823 = vmatpush1.bf16.msra.mxu1 %v5624_v46 }
  0x3c   :  { %3825 = vmatprep.subr.bf16.mxu1 %v5627_v47 }
  0x3f   :  { %3827 = vmatpush1.bf16.msra.mxu1 %v5642_v54 }
  0x40   :  { %3829 = vmatprep.subr.bf16.mxu1 %v5645_v57 }
  0x43   :  { %3831 = vmatpush1.bf16.msra.mxu1 %v5654_v60 }
  0x44   :  { %3865 = vmatprep.subr.bf16.mxu1 %v5492_v63 }
  0x46   :  { %566 = vmatmul.mubr.f32.vlgmr.msra.gmra.mrb[0].mxu1 %v5211_v1 }
  0x47   :  { %3867 = vmatpush1.bf16.msra.mxu1 %v5514_v5  ;;  %739 = vmatprep.mubr.f32.mxu1 %v5211_v1 }
  0x48   :  { %3869 = vmatprep.subr.bf16.mxu1 %v5517_v6 }
  0x4b   :  { %3871 = vmatpush1.bf16.msra.mxu1 %v5538_v14 }
  0x4c   :  { %3873 = vmatprep.subr.bf16.mxu1 %v5542_v15 }
  0x4f   :  { %3875 = vmatpush1.bf16.msra.mxu1 %v5562_v22 }
  0x50   :  { %3877 = vmatprep.subr.bf16.mxu1 %v5565_v23 }
  0x53   :  { %3879 = vmatpush1.bf16.msra.mxu1 %v5584_v30 }
  0x54   :  { %3881 = vmatprep.subr.bf16.mxu1 %v5587_v31 }
  0x57   :  { %3883 = vmatpush1.bf16.msra.mxu1 %v5606_v38 }
  0x58   :  { %3885 = vmatprep.subr.bf16.mxu1 %v5609_v39 }
  0x5b   :  { %3887 = vmatpush1.bf16.msra.mxu1 %v5624_v46 }
  0x5c   :  { %3889 = vmatprep.subr.bf16.mxu1 %v5627_v47 }
  0x5f   :  { %3891 = vmatpush1.bf16.msra.mxu1 %v5642_v54 }
  0x60   :  { %3893 = vmatprep.subr.bf16.mxu1 %v5645_v57 }
  0x63   :  { %3895 = vmatpush1.bf16.msra.mxu1 %v5654_v60 }
  0x64   :  { %3929 = vmatprep.subr.bf16.mxu1 %v5492_v63 }
  0xe3   :  { %v170_v61 = vpop.f32.mrb[0].mxu0 }
  0xe4   :  { %v172_v2 = vpop.f32.mrb[1].mxu0  ;;  %v171_v16 = vadd.f32 %v170_v61, %v5686_v11 }
  0xe5   :  { %v173_v17 = vadd.f32 %v172_v2, %v5690_v13 }
  0xf9   :  { %v496_v20 = vpop.f32.mrb[16].mxu1 }
  0xfa   :  { %v572_v21 = vadd.f32 %v496_v20, %v171_v16  ;;  %v498_v24 = vpop.f32.mrb[17].mxu1 }
  0xfb   :  { %v573_v27 = vadd.f32 %v498_v24, %v173_v17 }
  0xfc   :  { %v3651_v29 = vmul.f32 -1.442695, %v572_v21 }
  0xfd   :  { %v3652_v28 = vmul.f32 -1.442695, %v573_v27 }
  0xff   :  { %4955 = vpow2.f32 %v3652_v28 }
 0x100   :  { %4957 = vpow2.f32 %v3651_v29 }
 0x109   :  { %v4956_v33 = vpop.eup %4955 }
 0x10a   :  { %v4958_v37 = vpop.eup %4957  ;;  %v585_v40 = vadd.f32 1.0, %v4956_v33 }
 0x10b   :  { %v579_v44 = vadd.f32 1.0, %v4958_v37 }
 0x10c   :  { %4959 = vrcp.f32 %v585_v40 }
 0x10d   :  { %4961 = vrcp.f32 %v579_v44 }
 0x116   :  { %v4960_v59 = vpop.eup %4959 }
 0x117   :  { %v4962_v61 = vpop.eup %4961  ;;  %v595_v2 = vmul.f32 0.0, %v4960_v59 }
 0x119   :  { %v567_v50 = vpop.f32.mrb[0].mxu1 }
 0x11a   :  { %v4906_v51 = vadd.f32 %v567_v50, %v5698_v43  ;;  %v569_v52 = vpop.f32.mrb[1].mxu1 }
 0x11b   :  { %v4907_v53 = vadd.f32 %v569_v52, %v5702_v45 }
 0x11c   :  { %4963 = vtanh.f32 %v4906_v51 }
 0x11d   :  { %v3653_v58 = vmul.f32 -1.442695, %v4907_v53 }
 0x11f   :  { %4965 = vpow2.f32 %v3653_v58 }
 0x126   :  { %v4964_v0 = vpop.eup %4963 }
 0x127   :  { %v596_v16 = vmul.f32 %v4964_v0, %v4962_v61 }
 0x129   :  { %v4966_v17 = vpop.eup %4965  ;;  %v5706_v20 = vadd.f32 %v596_v16, %v595_v2 }
 0x12a   :  { %v592_v7 = vadd.f32 1.0, %v4966_v17 }
 0x12b   :  { %4967 = vtanh.f32 %v5706_v20 }
 0x12c   :  { %4969 = vrcp.f32 %v592_v7 }
 0x135   :  { %v4968_v21 = vpop.eup %4967 }
 0x136   :  { %v4970_v24 = vpop.eup %4969 }
 0x137   :  { %v599_v27 = vmul.f32 %v4970_v24, %v4968_v21 }
 0x139   :  { %669 = vmatmul.mubr.f32.vlgmr.msra.gmra.mrb[2].mxu0 %v599_v27  ;;  %740 = vmatmul.mubr.f32.vlgmr.msra.gmra.mrb[2].mxu1 %v599_v27 }
 0x13a   :  { %3899 = vmatpush1.bf16.msra.mxu0 %v5289_v9  ;;  %3931 = vmatpush1.bf16.msra.mxu1 %v5514_v5 }
 0x13b   :  { %3901 = vmatprep.subr.bf16.mxu0 %v5298_v12  ;;  %3933 = vmatprep.subr.bf16.mxu1 %v5517_v6 }
 0x13c   :  { %842 = vmatprep.mubr.f32.mxu0 %v5211_v1  ;;  %913 = vmatprep.mubr.f32.mxu1 %v5211_v1 }
 0x13e   :  { %3903 = vmatpush1.bf16.msra.mxu0 %v5320_v18  ;;  %3935 = vmatpush1.bf16.msra.mxu1 %v5538_v14 }
 0x13f   :  { %3905 = vmatprep.subr.bf16.mxu0 %v5323_v19  ;;  %3937 = vmatprep.subr.bf16.mxu1 %v5542_v15 }
 0x142   :  { %3907 = vmatpush1.bf16.msra.mxu0 %v5345_v25  ;;  %3939 = vmatpush1.bf16.msra.mxu1 %v5562_v22 }
 0x143   :  { %3909 = vmatprep.subr.bf16.mxu0 %v5348_v26  ;;  %3941 = vmatprep.subr.bf16.mxu1 %v5565_v23 }
 0x146   :  { %3911 = vmatpush1.bf16.msra.mxu0 %v5374_v34  ;;  %3943 = vmatpush1.bf16.msra.mxu1 %v5584_v30 }
 0x147   :  { %3913 = vmatprep.subr.bf16.mxu0 %v5377_v35  ;;  %3945 = vmatprep.subr.bf16.mxu1 %v5587_v31 }
 0x14a   :  { %3915 = vmatpush1.bf16.msra.mxu0 %v5403_v41  ;;  %3947 = vmatpush1.bf16.msra.mxu1 %v5606_v38 }
 0x14b   :  { %3917 = vmatprep.subr.bf16.mxu0 %v5406_v42  ;;  %3949 = vmatprep.subr.bf16.mxu1 %v5609_v39 }
 0x14e   :  { %3919 = vmatpush1.bf16.msra.mxu0 %v5433_v48  ;;  %3951 = vmatpush1.bf16.msra.mxu1 %v5624_v46 }
 0x14f   :  { %3921 = vmatprep.subr.bf16.mxu0 %v5436_v49  ;;  %3953 = vmatprep.subr.bf16.mxu1 %v5627_v47 }
 0x152   :  { %3923 = vmatpush1.bf16.msra.mxu0 %v5461_v55  ;;  %3955 = vmatpush1.bf16.msra.mxu1 %v5642_v54 }
 0x153   :  { %3925 = vmatprep.subr.bf16.mxu0 %v5464_v56  ;;  %3957 = vmatprep.subr.bf16.mxu1 %v5645_v57 }
 0x156   :  { %3927 = vmatpush1.bf16.msra.mxu0 %v5489_v62  ;;  %3959 = vmatpush1.bf16.msra.mxu1 %v5654_v60 }
 0x157   :  { %3961 = vmatprep.subr.bf16.mxu0 %v5287_v8  ;;  %3993 = vmatprep.subr.bf16.mxu1 %v5492_v63 }
 0x20c   :  { %v670_v28 = vpop.f32.mrb[2].mxu0  ;;  %v741_v29 = vpop.f32.mrb[2].mxu1 }
 0x20d   :  { %v4892_v33 = vadd.f32 %v670_v28, %v5686_v11  ;;  %v672_v37 = vpop.f32.mrb[3].mxu0  ;;  %v743_v40 = vpop.f32.mrb[3].mxu1  ;;  %v4908_v58 = vadd.f32 %v741_v29, %v5698_v43 }
 0x20e   :  { %v4893_v44 = vadd.f32 %v672_v37, %v5690_v13  ;;  %v4909_v52 = vadd.f32 %v743_v40, %v5702_v45 }
 0x20f   :  { %v3654_v50 = vmul.f32 -1.442695, %v4892_v33 }
 0x210   :  { %v3655_v51 = vmul.f32 -1.442695, %v4893_v44  ;;  %v3656_v53 = vmul.f32 -1.442695, %v4909_v52 }
 0x211   :  { %4971 = vpow2.f32 %v3654_v50 }
 0x212   :  { %4973 = vpow2.f32 %v3655_v51 }
 0x213   :  { %4975 = vpow2.f32 %v3656_v53 }
 0x214   :  { %4977 = vtanh.f32 %v4908_v58 }
 0x21b   :  { %v4972_v59 = vpop.eup %4971 }
 0x21c   :  { %v4974_v61 = vpop.eup %4973  ;;  %v753_v0 = vadd.f32 1.0, %v4972_v59 }
 0x21d   :  { %v759_v2 = vadd.f32 1.0, %v4974_v61  ;;  %v4976_v16 = vpop.eup %4975 }
 0x21e   :  { %4979 = vrcp.f32 %v753_v0  ;;  %v4978_v17 = vpop.eup %4977  ;;  %v766_v27 = vadd.f32 1.0, %v4976_v16 }
 0x21f   :  { %4981 = vrcp.f32 %v759_v2 }
 0x220   :  { %4983 = vrcp.f32 %v766_v27 }
 0x228   :  { %v4980_v7 = vpop.eup %4979 }
 0x229   :  { %v4982_v21 = vpop.eup %4981  ;;  %v770_v24 = vmul.f32 %v4980_v7, %v4978_v17 }
 0x22a   :  { %v769_v28 = vmul.f32 %v4982_v21, %v5706_v20  ;;  %v4984_v29 = vpop.eup %4983 }
 0x22c   :  { %v5748_v33 = vadd.f32 %v770_v24, %v769_v28 }
 0x22e   :  { %4985 = vtanh.f32 %v5748_v33 }
 0x238   :  { %v4986_v37 = vpop.eup %4985 }
 0x239   :  { %v773_v40 = vmul.f32 %v4986_v37, %v4984_v29 }
 0x23b   :  { %843 = vmatmul.mubr.f32.vlgmr.msra.gmra.mrb[4].mxu0 %v773_v40  ;;  %914 = vmatmul.mubr.f32.vlgmr.msra.gmra.mrb[4].mxu1 %v773_v40 }
 0x23c   :  { %3963 = vmatpush1.bf16.msra.mxu0 %v5289_v9  ;;  %3995 = vmatpush1.bf16.msra.mxu1 %v5514_v5 }
 0x23d   :  { %3965 = vmatprep.subr.bf16.mxu0 %v5298_v12  ;;  %3997 = vmatprep.subr.bf16.mxu1 %v5517_v6 }
 0x23e   :  { %1016 = vmatprep.mubr.f32.mxu0 %v5211_v1  ;;  %1087 = vmatprep.mubr.f32.mxu1 %v5211_v1 }
 0x240   :  { %3967 = vmatpush1.bf16.msra.mxu0 %v5320_v18  ;;  %3999 = vmatpush1.bf16.msra.mxu1 %v5538_v14 }
 0x241   :  { %3969 = vmatprep.subr.bf16.mxu0 %v5323_v19  ;;  %4001 = vmatprep.subr.bf16.mxu1 %v5542_v15 }
 0x244   :  { %3971 = vmatpush1.bf16.msra.mxu0 %v5345_v25  ;;  %4003 = vmatpush1.bf16.msra.mxu1 %v5562_v22 }
 0x245   :  { %3973 = vmatprep.subr.bf16.mxu0 %v5348_v26  ;;  %4005 = vmatprep.subr.bf16.mxu1 %v5565_v23 }
 0x248   :  { %3975 = vmatpush1.bf16.msra.mxu0 %v5374_v34  ;;  %4007 = vmatpush1.bf16.msra.mxu1 %v5584_v30 }
 0x249   :  { %3977 = vmatprep.subr.bf16.mxu0 %v5377_v35  ;;  %4009 = vmatprep.subr.bf16.mxu1 %v5587_v31 }
 0x24c   :  { %3979 = vmatpush1.bf16.msra.mxu0 %v5403_v41  ;;  %4011 = vmatpush1.bf16.msra.mxu1 %v5606_v38 }
 0x24d   :  { %3981 = vmatprep.subr.bf16.mxu0 %v5406_v42  ;;  %4013 = vmatprep.subr.bf16.mxu1 %v5609_v39 }
 0x250   :  { %3983 = vmatpush1.bf16.msra.mxu0 %v5433_v48  ;;  %4015 = vmatpush1.bf16.msra.mxu1 %v5624_v46 }
 0x251   :  { %3985 = vmatprep.subr.bf16.mxu0 %v5436_v49  ;;  %4017 = vmatprep.subr.bf16.mxu1 %v5627_v47 }
 0x254   :  { %3987 = vmatpush1.bf16.msra.mxu0 %v5461_v55  ;;  %4019 = vmatpush1.bf16.msra.mxu1 %v5642_v54 }
 0x255   :  { %3989 = vmatprep.subr.bf16.mxu0 %v5464_v56  ;;  %4021 = vmatprep.subr.bf16.mxu1 %v5645_v57 }
 0x258   :  { %3991 = vmatpush1.bf16.msra.mxu0 %v5489_v62  ;;  %4023 = vmatpush1.bf16.msra.mxu1 %v5654_v60 }
 0x259   :  { %4025 = vmatprep.subr.bf16.mxu0 %v5287_v8  ;;  %4057 = vmatprep.subr.bf16.mxu1 %v5492_v63 }
 0x30e   :  { %v844_v20 = vpop.f32.mrb[4].mxu0  ;;  %v915_v44 = vpop.f32.mrb[4].mxu1 }
 0x30f   :  { %v4894_v50 = vadd.f32 %v844_v20, %v5686_v11  ;;  %v846_v51 = vpop.f32.mrb[5].mxu0  ;;  %v917_v52 = vpop.f32.mrb[5].mxu1  ;;  %v4910_v2 = vadd.f32 %v915_v44, %v5698_v43 }
 0x310   :  { %v4895_v53 = vadd.f32 %v846_v51, %v5690_v13  ;;  %v4911_v61 = vadd.f32 %v917_v52, %v5702_v45 }
 0x311   :  { %v3657_v58 = vmul.f32 -1.442695, %v4894_v50 }
 0x312   :  { %v3658_v59 = vmul.f32 -1.442695, %v4895_v53  ;;  %v3659_v0 = vmul.f32 -1.442695, %v4911_v61 }
 0x313   :  { %4987 = vpow2.f32 %v3657_v58 }
 0x314   :  { %4989 = vpow2.f32 %v3658_v59 }
 0x315   :  { %4991 = vpow2.f32 %v3659_v0 }
 0x316   :  { %4993 = vtanh.f32 %v4910_v2 }
 0x31d   :  { %v4988_v16 = vpop.eup %4987 }
 0x31e   :  { %v4990_v17 = vpop.eup %4989  ;;  %v927_v7 = vadd.f32 1.0, %v4988_v16 }
 0x31f   :  { %v933_v21 = vadd.f32 1.0, %v4990_v17  ;;  %v4992_v24 = vpop.eup %4991 }
 0x320   :  { %4995 = vrcp.f32 %v927_v7  ;;  %v4994_v27 = vpop.eup %4993  ;;  %v940_v40 = vadd.f32 1.0, %v4992_v24 }
 0x321   :  { %4997 = vrcp.f32 %v933_v21 }
 0x322   :  { %4999 = vrcp.f32 %v940_v40 }
 0x32a   :  { %v4996_v28 = vpop.eup %4995 }
 0x32b   :  { %v4998_v29 = vpop.eup %4997  ;;  %v944_v37 = vmul.f32 %v4996_v28, %v4994_v27 }
 0x32c   :  { %v943_v20 = vmul.f32 %v4998_v29, %v5748_v33  ;;  %v5000_v44 = vpop.eup %4999 }
 0x32e   :  { %v5790_v50 = vadd.f32 %v944_v37, %v943_v20 }
 0x330   :  { %5001 = vtanh.f32 %v5790_v50 }
 0x33a   :  { %v5002_v51 = vpop.eup %5001 }
 0x33b   :  { %v947_v52 = vmul.f32 %v5002_v51, %v5000_v44 }
 0x33d   :  { %1017 = vmatmul.mubr.f32.vlgmr.msra.gmra.mrb[6].mxu0 %v947_v52  ;;  %1088 = vmatmul.mubr.f32.vlgmr.msra.gmra.mrb[6].mxu1 %v947_v52 }
 0x33e   :  { %4027 = vmatpush1.bf16.msra.mxu0 %v5289_v9  ;;  %4059 = vmatpush1.bf16.msra.mxu1 %v5514_v5 }
 0x33f   :  { %4029 = vmatprep.subr.bf16.mxu0 %v5298_v12  ;;  %4061 = vmatprep.subr.bf16.mxu1 %v5517_v6 }
 0x340   :  { %1190 = vmatprep.mubr.f32.mxu0 %v5211_v1  ;;  %1261 = vmatprep.mubr.f32.mxu1 %v5211_v1 }
 0x342   :  { %4031 = vmatpush1.bf16.msra.mxu0 %v5320_v18  ;;  %4063 = vmatpush1.bf16.msra.mxu1 %v5538_v14 }
 0x343   :  { %4033 = vmatprep.subr.bf16.mxu0 %v5323_v19  ;;  %4065 = vmatprep.subr.bf16.mxu1 %v5542_v15 }
 0x346   :  { %4035 = vmatpush1.bf16.msra.mxu0 %v5345_v25  ;;  %4067 = vmatpush1.bf16.msra.mxu1 %v5562_v22 }
 0x347   :  { %4037 = vmatprep.subr.bf16.mxu0 %v5348_v26  ;;  %4069 = vmatprep.subr.bf16.mxu1 %v5565_v23 }
 0x34a   :  { %4039 = vmatpush1.bf16.msra.mxu0 %v5374_v34  ;;  %4071 = vmatpush1.bf16.msra.mxu1 %v5584_v30 }
 0x34b   :  { %4041 = vmatprep.subr.bf16.mxu0 %v5377_v35  ;;  %4073 = vmatprep.subr.bf16.mxu1 %v5587_v31 }
 0x34e   :  { %4043 = vmatpush1.bf16.msra.mxu0 %v5403_v41  ;;  %4075 = vmatpush1.bf16.msra.mxu1 %v5606_v38 }
 0x34f   :  { %4045 = vmatprep.subr.bf16.mxu0 %v5406_v42  ;;  %4077 = vmatprep.subr.bf16.mxu1 %v5609_v39 }
 0x352   :  { %4047 = vmatpush1.bf16.msra.mxu0 %v5433_v48  ;;  %4079 = vmatpush1.bf16.msra.mxu1 %v5624_v46 }
 0x353   :  { %4049 = vmatprep.subr.bf16.mxu0 %v5436_v49  ;;  %4081 = vmatprep.subr.bf16.mxu1 %v5627_v47 }
 0x356   :  { %4051 = vmatpush1.bf16.msra.mxu0 %v5461_v55  ;;  %4083 = vmatpush1.bf16.msra.mxu1 %v5642_v54 }
 0x357   :  { %4053 = vmatprep.subr.bf16.mxu0 %v5464_v56  ;;  %4085 = vmatprep.subr.bf16.mxu1 %v5645_v57 }
 0x35a   :  { %4055 = vmatpush1.bf16.msra.mxu0 %v5489_v62  ;;  %4087 = vmatpush1.bf16.msra.mxu1 %v5654_v60 }
 0x35b   :  { %4089 = vmatprep.subr.bf16.mxu0 %v5287_v8  ;;  %4121 = vmatprep.subr.bf16.mxu1 %v5492_v63 }
 0x410   :  { %v1018_v33 = vpop.f32.mrb[6].mxu0  ;;  %v1089_v53 = vpop.f32.mrb[6].mxu1 }
 0x411   :  { %v4896_v58 = vadd.f32 %v1018_v33, %v5686_v11  ;;  %v1020_v59 = vpop.f32.mrb[7].mxu0  ;;  %v1091_v61 = vpop.f32.mrb[7].mxu1  ;;  %v4912_v21 = vadd.f32 %v1089_v53, %v5698_v43 }
 0x412   :  { %v4897_v0 = vadd.f32 %v1020_v59, %v5690_v13  ;;  %v4913_v17 = vadd.f32 %v1091_v61, %v5702_v45 }
 0x413   :  { %v3660_v2 = vmul.f32 -1.442695, %v4896_v58 }
 0x414   :  { %v3661_v16 = vmul.f32 -1.442695, %v4897_v0  ;;  %v3662_v7 = vmul.f32 -1.442695, %v4913_v17 }
 0x415   :  { %5003 = vpow2.f32 %v3660_v2 }
 0x416   :  { %5005 = vpow2.f32 %v3661_v16 }
 0x417   :  { %5007 = vpow2.f32 %v3662_v7 }
 0x418   :  { %5009 = vtanh.f32 %v4912_v21 }
 0x41f   :  { %v5004_v24 = vpop.eup %5003 }
 0x420   :  { %v5006_v27 = vpop.eup %5005  ;;  %v1101_v28 = vadd.f32 1.0, %v5004_v24 }
 0x421   :  { %v1107_v29 = vadd.f32 1.0, %v5006_v27  ;;  %v5008_v37 = vpop.eup %5007 }
 0x422   :  { %5011 = vrcp.f32 %v1101_v28  ;;  %v5010_v40 = vpop.eup %5009  ;;  %v1114_v52 = vadd.f32 1.0, %v5008_v37 }
 0x423   :  { %5013 = vrcp.f32 %v1107_v29 }
 0x424   :  { %5015 = vrcp.f32 %v1114_v52 }
 0x42c   :  { %v5012_v20 = vpop.eup %5011 }
 0x42d   :  { %v5014_v44 = vpop.eup %5013  ;;  %v1118_v51 = vmul.f32 %v5012_v20, %v5010_v40 }
 0x42e   :  { %v1117_v33 = vmul.f32 %v5014_v44, %v5790_v50  ;;  %v5016_v53 = vpop.eup %5015 }
 0x430   :  { %v5832_v58 = vadd.f32 %v1118_v51, %v1117_v33 }
 0x432   :  { %5017 = vtanh.f32 %v5832_v58 }
 0x43c   :  { %v5018_v59 = vpop.eup %5017 }
 0x43d   :  { %v1121_v61 = vmul.f32 %v5018_v59, %v5016_v53 }
 0x43f   :  { %1191 = vmatmul.mubr.f32.vlgmr.msra.gmra.mrb[8].mxu0 %v1121_v61  ;;  %1262 = vmatmul.mubr.f32.vlgmr.msra.gmra.mrb[8].mxu1 %v1121_v61 }
 0x440   :  { %4091 = vmatpush1.bf16.msra.mxu0 %v5289_v9  ;;  %4123 = vmatpush1.bf16.msra.mxu1 %v5514_v5 }
 0x441   :  { %4093 = vmatprep.subr.bf16.mxu0 %v5298_v12  ;;  %4125 = vmatprep.subr.bf16.mxu1 %v5517_v6 }
 0x442   :  { %1364 = vmatprep.mubr.f32.mxu0 %v5211_v1  ;;  %1435 = vmatprep.mubr.f32.mxu1 %v5211_v1 }
 0x444   :  { %4095 = vmatpush1.bf16.msra.mxu0 %v5320_v18  ;;  %4127 = vmatpush1.bf16.msra.mxu1 %v5538_v14 }
 0x445   :  { %4097 = vmatprep.subr.bf16.mxu0 %v5323_v19  ;;  %4129 = vmatprep.subr.bf16.mxu1 %v5542_v15 }
 0x448   :  { %4099 = vmatpush1.bf16.msra.mxu0 %v5345_v25  ;;  %4131 = vmatpush1.bf16.msra.mxu1 %v5562_v22 }
 0x449   :  { %4101 = vmatprep.subr.bf16.mxu0 %v5348_v26  ;;  %4133 = vmatprep.subr.bf16.mxu1 %v5565_v23 }
 0x44c   :  { %4103 = vmatpush1.bf16.msra.mxu0 %v5374_v34  ;;  %4135 = vmatpush1.bf16.msra.mxu1 %v5584_v30 }
 0x44d   :  { %4105 = vmatprep.subr.bf16.mxu0 %v5377_v35  ;;  %4137 = vmatprep.subr.bf16.mxu1 %v5587_v31 }
 0x450   :  { %4107 = vmatpush1.bf16.msra.mxu0 %v5403_v41  ;;  %4139 = vmatpush1.bf16.msra.mxu1 %v5606_v38 }
 0x451   :  { %4109 = vmatprep.subr.bf16.mxu0 %v5406_v42  ;;  %4141 = vmatprep.subr.bf16.mxu1 %v5609_v39 }
 0x454   :  { %4111 = vmatpush1.bf16.msra.mxu0 %v5433_v48  ;;  %4143 = vmatpush1.bf16.msra.mxu1 %v5624_v46 }
 0x455   :  { %4113 = vmatprep.subr.bf16.mxu0 %v5436_v49  ;;  %4145 = vmatprep.subr.bf16.mxu1 %v5627_v47 }
 0x458   :  { %4115 = vmatpush1.bf16.msra.mxu0 %v5461_v55  ;;  %4147 = vmatpush1.bf16.msra.mxu1 %v5642_v54 }
 0x459   :  { %4117 = vmatprep.subr.bf16.mxu0 %v5464_v56  ;;  %4149 = vmatprep.subr.bf16.mxu1 %v5645_v57 }
 0x45c   :  { %4119 = vmatpush1.bf16.msra.mxu0 %v5489_v62  ;;  %4151 = vmatpush1.bf16.msra.mxu1 %v5654_v60 }
 0x45d   :  { %4153 = vmatprep.subr.bf16.mxu0 %v5287_v8  ;;  %4185 = vmatprep.subr.bf16.mxu1 %v5492_v63 }
 0x512   :  { %v1192_v50 = vpop.f32.mrb[8].mxu0  ;;  %v1263_v0 = vpop.f32.mrb[8].mxu1 }
 0x513   :  { %v4898_v2 = vadd.f32 %v1192_v50, %v5686_v11  ;;  %v1194_v16 = vpop.f32.mrb[9].mxu0  ;;  %v1265_v17 = vpop.f32.mrb[9].mxu1  ;;  %v4914_v29 = vadd.f32 %v1263_v0, %v5698_v43 }
 0x514   :  { %v4899_v7 = vadd.f32 %v1194_v16, %v5690_v13  ;;  %v4915_v27 = vadd.f32 %v1265_v17, %v5702_v45 }
 0x515   :  { %v3663_v21 = vmul.f32 -1.442695, %v4898_v2 }
 0x516   :  { %v3664_v24 = vmul.f32 -1.442695, %v4899_v7  ;;  %v3665_v28 = vmul.f32 -1.442695, %v4915_v27 }
 0x517   :  { %5019 = vpow2.f32 %v3663_v21 }
 0x518   :  { %5021 = vpow2.f32 %v3664_v24 }
 0x519   :  { %5023 = vpow2.f32 %v3665_v28 }
 0x51a   :  { %5025 = vtanh.f32 %v4914_v29 }
 0x521   :  { %v5020_v37 = vpop.eup %5019 }
 0x522   :  { %v5022_v40 = vpop.eup %5021  ;;  %v1275_v20 = vadd.f32 1.0, %v5020_v37 }
 0x523   :  { %v1281_v44 = vadd.f32 1.0, %v5022_v40  ;;  %v5024_v51 = vpop.eup %5023 }
 0x524   :  { %5027 = vrcp.f32 %v1275_v20  ;;  %v5026_v52 = vpop.eup %5025  ;;  %v1288_v61 = vadd.f32 1.0, %v5024_v51 }
 0x525   :  { %5029 = vrcp.f32 %v1281_v44 }
 0x526   :  { %5031 = vrcp.f32 %v1288_v61 }
 0x52e   :  { %v5028_v33 = vpop.eup %5027 }
 0x52f   :  { %v5030_v53 = vpop.eup %5029  ;;  %v1292_v59 = vmul.f32 %v5028_v33, %v5026_v52 }
 0x530   :  { %v1291_v50 = vmul.f32 %v5030_v53, %v5832_v58  ;;  %v5032_v0 = vpop.eup %5031 }
 0x532   :  { %v5874_v2 = vadd.f32 %v1292_v59, %v1291_v50 }
 0x534   :  { %5033 = vtanh.f32 %v5874_v2 }
 0x53e   :  { %v5034_v16 = vpop.eup %5033 }
 0x53f   :  { %v1295_v17 = vmul.f32 %v5034_v16, %v5032_v0 }
 0x541   :  { %1365 = vmatmul.mubr.f32.vlgmr.msra.gmra.mrb[10].mxu0 %v1295_v17  ;;  %1436 = vmatmul.mubr.f32.vlgmr.msra.gmra.mrb[10].mxu1 %v1295_v17 }
 0x542   :  { %4155 = vmatpush1.bf16.msra.mxu0 %v5289_v9  ;;  %4187 = vmatpush1.bf16.msra.mxu1 %v5514_v5 }
 0x543   :  { %4157 = vmatprep.subr.bf16.mxu0 %v5298_v12  ;;  %4189 = vmatprep.subr.bf16.mxu1 %v5517_v6 }
 0x544   :  { %1538 = vmatprep.mubr.f32.mxu0 %v5211_v1  ;;  %1609 = vmatprep.mubr.f32.mxu1 %v5211_v1 }
 0x546   :  { %4159 = vmatpush1.bf16.msra.mxu0 %v5320_v18  ;;  %4191 = vmatpush1.bf16.msra.mxu1 %v5538_v14 }
 0x547   :  { %4161 = vmatprep.subr.bf16.mxu0 %v5323_v19  ;;  %4193 = vmatprep.subr.bf16.mxu1 %v5542_v15 }
 0x54a   :  { %4163 = vmatpush1.bf16.msra.mxu0 %v5345_v25  ;;  %4195 = vmatpush1.bf16.msra.mxu1 %v5562_v22 }
 0x54b   :  { %4165 = vmatprep.subr.bf16.mxu0 %v5348_v26  ;;  %4197 = vmatprep.subr.bf16.mxu1 %v5565_v23 }
 0x54e   :  { %4167 = vmatpush1.bf16.msra.mxu0 %v5374_v34  ;;  %4199 = vmatpush1.bf16.msra.mxu1 %v5584_v30 }
 0x54f   :  { %4169 = vmatprep.subr.bf16.mxu0 %v5377_v35  ;;  %4201 = vmatprep.subr.bf16.mxu1 %v5587_v31 }
 0x552   :  { %4171 = vmatpush1.bf16.msra.mxu0 %v5403_v41  ;;  %4203 = vmatpush1.bf16.msra.mxu1 %v5606_v38 }
 0x553   :  { %4173 = vmatprep.subr.bf16.mxu0 %v5406_v42  ;;  %4205 = vmatprep.subr.bf16.mxu1 %v5609_v39 }
 0x556   :  { %4175 = vmatpush1.bf16.msra.mxu0 %v5433_v48  ;;  %4207 = vmatpush1.bf16.msra.mxu1 %v5624_v46 }
 0x557   :  { %4177 = vmatprep.subr.bf16.mxu0 %v5436_v49  ;;  %4209 = vmatprep.subr.bf16.mxu1 %v5627_v47 }
 0x55a   :  { %4179 = vmatpush1.bf16.msra.mxu0 %v5461_v55  ;;  %4211 = vmatpush1.bf16.msra.mxu1 %v5642_v54 }
 0x55b   :  { %4181 = vmatprep.subr.bf16.mxu0 %v5464_v56  ;;  %4213 = vmatprep.subr.bf16.mxu1 %v5645_v57 }
 0x55e   :  { %4183 = vmatpush1.bf16.msra.mxu0 %v5489_v62  ;;  %4215 = vmatpush1.bf16.msra.mxu1 %v5654_v60 }
 0x55f   :  { %4217 = vmatprep.subr.bf16.mxu0 %v5287_v8  ;;  %4249 = vmatprep.subr.bf16.mxu1 %v5492_v63 }
 0x614   :  { %v1366_v58 = vpop.f32.mrb[10].mxu0  ;;  %v1437_v7 = vpop.f32.mrb[10].mxu1 }
 0x615   :  { %v4900_v21 = vadd.f32 %v1366_v58, %v5686_v11  ;;  %v1368_v24 = vpop.f32.mrb[11].mxu0  ;;  %v1439_v27 = vpop.f32.mrb[11].mxu1  ;;  %v4916_v44 = vadd.f32 %v1437_v7, %v5698_v43 }
 0x616   :  { %v4901_v28 = vadd.f32 %v1368_v24, %v5690_v13  ;;  %v4917_v40 = vadd.f32 %v1439_v27, %v5702_v45  ;;  %v1819_v24 = vld [vmem:[%s6879_s4] sm:$0xff] }
 0x617   :  { %v3666_v29 = vmul.f32 -1.442695, %v4900_v21  ;;  %v1823_v27 = vld [vmem:[%s6879_s4 + $0x20] sm:$0xff] }
 0x618   :  { %v3667_v37 = vmul.f32 -1.442695, %v4901_v28  ;;  %v3668_v20 = vmul.f32 -1.442695, %v4917_v40  ;;  %v1825_v40 = vld [vmem:[%s6879_s4 + $0x30] sm:$0xff] }
 0x619   :  { %5035 = vpow2.f32 %v3666_v29  ;;  %v4282_v29 = vpack.c.bf16 %v1823_v27, %v1819_v24  ;;  %v1857_v24 = vld [vmem:[%s6879_s4 + $0x130] sm:$0xff] }
 0x61a   :  { %5037 = vpow2.f32 %v3667_v37  ;;  %v1821_v37 = vld [vmem:[%s6879_s4 + $0x10] sm:$0xff] }
 0x61b   :  { %5039 = vpow2.f32 %v3668_v20  ;;  %v4314_v20 = vpack.c.bf16 %v1825_v40, %v1821_v37  ;;  %v1862_v37 = vld [vmem:[%s6879_s4 + $0x158] sm:$0xff] }
 0x61c   :  { %5041 = vtanh.f32 %v4916_v44  ;;  %v1828_v44 = vld [vmem:[%s6879_s4 + $0x48] sm:$0xff] }
 0x623   :  { %v5036_v8 = vpop.eup %5035 }
 0x624   :  { %v5038_v51 = vpop.eup %5037  ;;  %v1449_v63 = vadd.f32 1.0, %v5036_v8  ;;  %v1832_v8 = vld [vmem:[%s6879_s4 + $0x68] sm:$0xff] }
 0x625   :  { %v1455_v52 = vadd.f32 1.0, %v5038_v51  ;;  %v5040_v33 = vpop.eup %5039  ;;  %v1830_v51 = vld [vmem:[%s6879_s4 + $0x58] sm:$0xff] }
 0x626   :  { %5043 = vrcp.f32 %v1449_v63  ;;  %v5042_v53 = vpop.eup %5041  ;;  %v1462_v0 = vadd.f32 1.0, %v5040_v33  ;;  %v4284_v63 = vpack.c.bf16 %v1832_v8, %v1828_v44  ;;  %v1827_v33 = vld [vmem:[%s6879_s4 + $0x40] sm:$0xff] }
 0x627   :  { %5045 = vrcp.f32 %v1455_v52  ;;  %v1834_v52 = vld [vmem:[%s6879_s4 + $0x78] sm:$0xff]  ;;  %v1859_v44 = vld [vmem:[%s6879_s4 + $0x140] sm:$0xff] }
 0x628   :  { %5047 = vrcp.f32 %v1462_v0  ;;  %v1833_v0 = vld [vmem:[%s6879_s4 + $0x70] sm:$0xff]  ;;  %v1863_v8 = vld [vmem:[%s6879_s4 + $0x160] sm:$0xff] }
 0x630   :  { %v5044_v59 = vpop.eup %5043 }
 0x631   :  { %v5046_v61 = vpop.eup %5045  ;;  %v1466_v50 = vmul.f32 %v5044_v59, %v5042_v53  ;;  %v1831_v53 = vld [vmem:[%s6879_s4 + $0x60] sm:$0xff]  ;;  %v4316_v59 = vpack.c.bf16 %v1834_v52, %v1830_v51  ;;  %v1861_v52 = vld [vmem:[%s6879_s4 + $0x150] sm:$0xff] }
 0x632   :  { %v1465_v16 = vmul.f32 %v5046_v61, %v5874_v2  ;;  %v5048_v58 = vpop.eup %5047  ;;  %v1826_v2 = vld [vmem:[%s6879_s4 + $0x38] sm:$0xff]  ;;  %v4286_v61 = vpack.c.bf16 %v1831_v53, %v1827_v33  ;;  %v1865_v33 = vld [vmem:[%s6879_s4 + $0x170] sm:$0xff]  ;;  %v1868_v53 = vld [vmem:[%s6879_s4 + $0x188] sm:$0xff] }
 0x634   :  { %v5916_v17 = vadd.f32 %v1466_v50, %v1465_v16  ;;  %v1829_v50 = vld [vmem:[%s6879_s4 + $0x50] sm:$0xff] }
 0x635   :  { %v4318_v16 = vpack.c.bf16 %v1833_v0, %v1829_v50  ;;  %v1870_v50 = vld [vmem:[%s6879_s4 + $0x198] sm:$0xff] }
 0x636   :  { %5049 = vtanh.f32 %v5916_v17  ;;  %v1874_v0 = vld [vmem:[%s6879_s4 + $0x1b8] sm:$0xff] }
 0x640   :  { %v5050_v7 = vpop.eup %5049 }
 0x641   :  { %v1469_v21 = vmul.f32 %v5050_v7, %v5048_v58  ;;  %v1840_v58 = vld [vmem:[%s6879_s4 + $0xa8] sm:$0xff]  ;;  %v1838_v7 = vld [vmem:[%s6879_s4 + $0x98] sm:$0xff] }
 0x643   :  { %1539 = vmatmul.mubr.f32.vlgmr.msra.gmra.mrb[12].mxu0 %v1469_v21  ;;  %1610 = vmatmul.mubr.f32.vlgmr.msra.gmra.mrb[12].mxu1 %v1469_v21 }
 0x644   :  { %4219 = vmatpush1.bf16.msra.mxu0 %v5289_v9  ;;  %4251 = vmatpush1.bf16.msra.mxu1 %v5514_v5 }
 0x645   :  { %4221 = vmatprep.subr.bf16.mxu0 %v5298_v12  ;;  %4253 = vmatprep.subr.bf16.mxu1 %v5517_v6 }
 0x646   :  { %1712 = vmatprep.mubr.f32.mxu0 %v5211_v1  ;;  %1783 = vmatprep.mubr.f32.mxu1 %v5211_v1 }
 0x648   :  { %4223 = vmatpush1.bf16.msra.mxu0 %v5320_v18  ;;  %4255 = vmatpush1.bf16.msra.mxu1 %v5538_v14 }
 0x649   :  { %4225 = vmatprep.subr.bf16.mxu0 %v5323_v19  ;;  %4257 = vmatprep.subr.bf16.mxu1 %v5542_v15 }
 0x64c   :  { %4227 = vmatpush1.bf16.msra.mxu0 %v5345_v25  ;;  %4259 = vmatpush1.bf16.msra.mxu1 %v5562_v22 }
 0x64d   :  { %4229 = vmatprep.subr.bf16.mxu0 %v5348_v26  ;;  %4261 = vmatprep.subr.bf16.mxu1 %v5565_v23 }
 0x650   :  { %4231 = vmatpush1.bf16.msra.mxu0 %v5374_v34  ;;  %4263 = vmatpush1.bf16.msra.mxu1 %v5584_v30 }
 0x651   :  { %4233 = vmatprep.subr.bf16.mxu0 %v5377_v35  ;;  %4265 = vmatprep.subr.bf16.mxu1 %v5587_v31 }
 0x654   :  { %4235 = vmatpush1.bf16.msra.mxu0 %v5403_v41  ;;  %4267 = vmatpush1.bf16.msra.mxu1 %v5606_v38 }
 0x655   :  { %4237 = vmatprep.subr.bf16.mxu0 %v5406_v42  ;;  %4269 = vmatprep.subr.bf16.mxu1 %v5609_v39 }
 0x658   :  { %4239 = vmatpush1.bf16.msra.mxu0 %v5433_v48  ;;  %4271 = vmatpush1.bf16.msra.mxu1 %v5624_v46 }
 0x659   :  { %4241 = vmatprep.subr.bf16.mxu0 %v5436_v49  ;;  %4273 = vmatprep.subr.bf16.mxu1 %v5627_v47  ;;  %v1820_v47 = vld [vmem:[%s6879_s4 + $0x8] sm:$0xff] }
 0x65c   :  { %4243 = vmatpush1.bf16.msra.mxu0 %v5461_v55  ;;  %4275 = vmatpush1.bf16.msra.mxu1 %v5642_v54  ;;  %v1824_v54 = vld [vmem:[%s6879_s4 + $0x28] sm:$0xff] }
 0x65d   :  { %4245 = vmatprep.subr.bf16.mxu0 %v5464_v56  ;;  %4277 = vmatprep.subr.bf16.mxu1 %v5645_v57  ;;  %v1822_v57 = vld [vmem:[%s6879_s4 + $0x18] sm:$0xff] }
 0x65e   :  { %v4312_v28 = vpack.c.bf16 %v1826_v2, %v1822_v57  ;;  %v1853_v2 = vld [vmem:[%s6879_s4 + $0x110] sm:$0xff] }
 0x65f   :  { %v4330_v27 = vpack.c.bf16 %v1857_v24, %v1853_v2 }
 0x660   :  { %4247 = vmatpush1.bf16.msra.mxu0 %v5489_v62  ;;  %4279 = vmatpush1.bf16.msra.mxu1 %v5654_v60  ;;  %v4280_v60 = vpack.c.bf16 %v1824_v54, %v1820_v47  ;;  %v1851_v47 = vld [vmem:[%s6879_s4 + $0x100] sm:$0xff] }
 0x661   :  { %4313 = vmatprep.subr.bf16.mxu1 %v4312_v28  ;;  %v1855_v54 = vld [vmem:[%s6879_s4 + $0x120] sm:$0xff]  ;;  %v1860_v28 = vld [vmem:[%s6879_s4 + $0x148] sm:$0xff] }
 0x662   :  { %4281 = vmatprep.subr.bf16.mxu0 %v4280_v60  ;;  %v4298_v60 = vpack.c.bf16 %v1855_v54, %v1851_v47 }
 0x716   :  { %v1540_v9 = vpop.f32.mrb[12].mxu0  ;;  %v1611_v12 = vpop.f32.mrb[12].mxu1 }
 0x717   :  { %v4902_v18 = vadd.f32 %v1540_v9, %v5686_v11  ;;  %v1542_v19 = vpop.f32.mrb[13].mxu0  ;;  %v1613_v25 = vpop.f32.mrb[13].mxu1  ;;  %v4918_v48 = vadd.f32 %v1611_v12, %v5698_v43  ;;  %v1842_v9 = vld [vmem:[%s6879_s4 + $0xb8] sm:$0xff]  ;;  %v1835_v12 = vld [vmem:[%s6879_s4 + $0x80] sm:$0xff] }
 0x718   :  { %v4903_v26 = vadd.f32 %v1542_v19, %v5690_v13  ;;  %v4919_v41 = vadd.f32 %v1613_v25, %v5702_v45  ;;  %v4320_v19 = vpack.c.bf16 %v1842_v9, %v1838_v7  ;;  %v1871_v7 = vld [vmem:[%s6879_s4 + $0x1a0] sm:$0xff] }
 0x719   :  { %v3669_v34 = vmul.f32 -1.442695, %v4902_v18  ;;  %v1839_v18 = vld [vmem:[%s6879_s4 + $0xa0] sm:$0xff] }
 0x71a   :  { %v3670_v35 = vmul.f32 -1.442695, %v4903_v26  ;;  %v3671_v42 = vmul.f32 -1.442695, %v4919_v41  ;;  %v4290_v25 = vpack.c.bf16 %v1839_v18, %v1835_v12  ;;  %v1837_v26 = vld [vmem:[%s6879_s4 + $0x90] sm:$0xff]  ;;  %v1844_v41 = vld [vmem:[%s6879_s4 + $0xc8] sm:$0xff] }
 0x71b   :  { %5051 = vpow2.f32 %v3669_v34  ;;  %v1841_v34 = vld [vmem:[%s6879_s4 + $0xb0] sm:$0xff]  ;;  %v1876_v18 = vld [vmem:[%s6879_s4 + $0x1c8] sm:$0xff] }
 0x71c   :  { %5053 = vpow2.f32 %v3670_v35  ;;  %v4322_v35 = vpack.c.bf16 %v1841_v34, %v1837_v26  ;;  %v1873_v12 = vld [vmem:[%s6879_s4 + $0x1b0] sm:$0xff]  ;;  %v1878_v34 = vld [vmem:[%s6879_s4 + $0x1d8] sm:$0xff] }
 0x71d   :  { %5055 = vpow2.f32 %v3671_v42  ;;  %v1848_v42 = vld [vmem:[%s6879_s4 + $0xe8] sm:$0xff] }
 0x71e   :  { %5057 = vtanh.f32 %v4918_v48  ;;  %v1846_v48 = vld [vmem:[%s6879_s4 + $0xd8] sm:$0xff] }
 0x725   :  { %v5052_v49 = vpop.eup %5051 }
 0x726   :  { %v5054_v55 = vpop.eup %5053  ;;  %v1623_v56 = vadd.f32 1.0, %v5052_v49  ;;  %v4292_v49 = vpack.c.bf16 %v1848_v42, %v1844_v41  ;;  %v1875_v41 = vld [vmem:[%s6879_s4 + $0x1c0] sm:$0xff] }
 0x727   :  { %v1629_v62 = vadd.f32 1.0, %v5054_v55  ;;  %v5056_v5 = vpop.eup %5055  ;;  %v1850_v55 = vld [vmem:[%s6879_s4 + $0xf8] sm:$0xff] }
 0x728   :  { %5059 = vrcp.f32 %v1623_v56  ;;  %v5058_v6 = vpop.eup %5057  ;;  %v1636_v23 = vadd.f32 1.0, %v5056_v5  ;;  %v1843_v56 = vld [vmem:[%s6879_s4 + $0xc0] sm:$0xff]  ;;  %v4324_v5 = vpack.c.bf16 %v1850_v55, %v1846_v48  ;;  %v1881_v55 = vld [vmem:[%s6879_s4 + $0x1f0] sm:$0xff] }
 0x729   :  { %5061 = vrcp.f32 %v1629_v62  ;;  %v1847_v62 = vld [vmem:[%s6879_s4 + $0xe0] sm:$0xff] }
 0x72a   :  { %5063 = vrcp.f32 %v1636_v23  ;;  %v1852_v23 = vld [vmem:[%s6879_s4 + $0x108] sm:$0xff]  ;;  %v1879_v48 = vld [vmem:[%s6879_s4 + $0x1e0] sm:$0xff] }
 0x732   :  { %v5060_v14 = vpop.eup %5059 }
 0x733   :  { %v5062_v15 = vpop.eup %5061  ;;  %v1640_v22 = vmul.f32 %v5060_v14, %v5058_v6  ;;  %v4294_v6 = vpack.c.bf16 %v1847_v62, %v1843_v56  ;;  %v1845_v14 = vld [vmem:[%s6879_s4 + $0xd0] sm:$0xff]  ;;  %v4310_v56 = vpack.c.bf16 %v1879_v48, %v1875_v41  ;;  %v2048_v62 = vld [vmem:[%s6880_s5 + $0x8] sm:$0xff]  ;;  %v2070_v41 = vld [vmem:[%s6880_s5 + $0xb8] sm:$0xff] }
 0x734   :  { %v1639_v30 = vmul.f32 %v5062_v15, %v5916_v17  ;;  %v5064_v38 = vpop.eup %5063  ;;  %v1836_v17 = vld [vmem:[%s6879_s4 + $0x88] sm:$0xff]  ;;  %v1849_v15 = vld [vmem:[%s6879_s4 + $0xf0] sm:$0xff] }
 0x735   :  { %v4288_v21 = vpack.c.bf16 %v1840_v58, %v1836_v17  ;;  %v4336_v17 = vpack.c.bf16 %v1874_v0, %v1870_v50  ;;  %v1867_v58 = vld [vmem:[%s6879_s4 + $0x180] sm:$0xff]  ;;  %v2062_v50 = vld [vmem:[%s6880_s5 + $0x78] sm:$0xff] }
 0x736   :  { %v5956_v31 = vadd.f32 %v1640_v22, %v1639_v30  ;;  %v4326_v22 = vpack.c.bf16 %v1849_v15, %v1845_v14  ;;  %v1856_v30 = vld [vmem:[%s6879_s4 + $0x128] sm:$0xff]  ;;  %v4306_v9 = vpack.c.bf16 %v1871_v7, %v1867_v58  ;;  %v2055_v7 = vld [vmem:[%s6880_s5 + $0x40] sm:$0xff] }
 0x738   :  { %5065 = vtanh.f32 %v5956_v31 }
 0x742   :  { %v5066_v39 = vpop.eup %5065 }
 0x743   :  { %v1643_v46 = vmul.f32 %v5066_v39, %v5064_v38  ;;  %v1854_v38 = vld [vmem:[%s6879_s4 + $0x118] sm:$0xff]  ;;  %v4296_v39 = vpack.c.bf16 %v1856_v30, %v1852_v23 }
 0x745   :  { %1713 = vmatmul.mubr.f32.vlgmr.msra.gmra.mrb[14].mxu0 %v1643_v46  ;;  %1784 = vmatmul.mubr.f32.vlgmr.msra.gmra.mrb[14].mxu1 %v1643_v46  ;;  %v1858_v46 = vld [vmem:[%s6879_s4 + $0x138] sm:$0xff] }
 0x746   :  { %1969 = vmatprep.mubr.f32.mxu0 %v5211_v1  ;;  %2040 = vmatprep.mubr.f32.mxu1 %v5211_v1  ;;  %v4328_v57 = vpack.c.bf16 %v1858_v46, %v1854_v38 }
 0x747   :  { %4283 = vmatpush1.bf16.msra.mxu0 %v4282_v29  ;;  %4315 = vmatpush1.bf16.msra.mxu1 %v4314_v20  ;;  %v1864_v29 = vld [vmem:[%s6879_s4 + $0x168] sm:$0xff]  ;;  %v1866_v20 = vld [vmem:[%s6879_s4 + $0x178] sm:$0xff] }
 0x748   :  { %4285 = vmatprep.subr.bf16.mxu0 %v4284_v63  ;;  %4317 = vmatprep.subr.bf16.mxu1 %v4316_v59  ;;  %v4300_v40 = vpack.c.bf16 %v1864_v29, %v1860_v28  ;;  %v4332_v51 = vpack.c.bf16 %v1866_v20, %v1862_v37  ;;  %v4302_v63 = vpack.c.bf16 %v1863_v8, %v1859_v44 }
 0x749   :  { %v4334_v59 = vpack.c.bf16 %v1865_v33, %v1861_v52  ;;  %v2051_v52 = vld [vmem:[%s6880_s5 + $0x20] sm:$0xff]  ;;  %v2049_v33 = vld [vmem:[%s6880_s5 + $0x10] sm:$0xff] }
 0x74b   :  { %4287 = vmatpush1.bf16.msra.mxu0 %v4286_v61  ;;  %4319 = vmatpush1.bf16.msra.mxu1 %v4318_v16  ;;  %v1872_v61 = vld [vmem:[%s6879_s4 + $0x1a8] sm:$0xff] }
 0x74c   :  { %4289 = vmatprep.subr.bf16.mxu0 %v4288_v21  ;;  %4321 = vmatprep.subr.bf16.mxu1 %v4320_v19  ;;  %v4304_v16 = vpack.c.bf16 %v1872_v61, %v1868_v53  ;;  %v1869_v21 = vld [vmem:[%s6879_s4 + $0x190] sm:$0xff]  ;;  %v1880_v19 = vld [vmem:[%s6879_s4 + $0x1e8] sm:$0xff]  ;;  %v2058_v61 = vld [vmem:[%s6880_s5 + $0x58] sm:$0xff] }
 0x74d   :  { %v4308_v26 = vpack.c.bf16 %v1880_v19, %v1876_v18  ;;  %v2053_v53 = vld [vmem:[%s6880_s5 + $0x30] sm:$0xff]  ;;  %v6212_v18 = vpack.c.bf16 %v2062_v50, %v2058_v61  ;;  %v2091_v61 = vld [vmem:[%s6880_s5 + $0x160] sm:$0xff] }
 0x74e   :  { %v6202_v58 = vpack.c.bf16 %v2053_v53, %v2049_v33  ;;  %v2057_v19 = vld [vmem:[%s6880_s5 + $0x50] sm:$0xff]  ;;  %v2094_v33 = vld [vmem:[%s6880_s5 + $0x178] sm:$0xff] }
 0x74f   :  { %4291 = vmatpush1.bf16.msra.mxu0 %v4290_v25  ;;  %4323 = vmatpush1.bf16.msra.mxu1 %v4322_v35  ;;  %v4338_v25 = vpack.c.bf16 %v1873_v12, %v1869_v21  ;;  %v1882_v35 = vld [vmem:[%s6879_s4 + $0x1f8] sm:$0xff]  ;;  %v2059_v21 = vld [vmem:[%s6880_s5 + $0x60] sm:$0xff] }
 0x750   :  { %4293 = vmatprep.subr.bf16.mxu0 %v4292_v49  ;;  %4325 = vmatprep.subr.bf16.mxu1 %v4324_v5  ;;  %v4340_v42 = vpack.c.bf16 %v1882_v35, %v1878_v34  ;;  %v1877_v49 = vld [vmem:[%s6879_s4 + $0x1d0] sm:$0xff]  ;;  %v2052_v5 = vld [vmem:[%s6880_s5 + $0x28] sm:$0xff]  ;;  %v2066_v35 = vld [vmem:[%s6880_s5 + $0x98] sm:$0xff] }
 0x751   :  { %v4342_v14 = vpack.c.bf16 %v1881_v55, %v1877_v49  ;;  %v6162_v15 = vpack.c.bf16 %v2052_v5, %v2048_v62  ;;  %v2068_v34 = vld [vmem:[%s6880_s5 + $0xa8] sm:$0xff]  ;;  %v2063_v49 = vld [vmem:[%s6880_s5 + $0x80] sm:$0xff]  ;;  %v6251_v62 = vpack.c.bf16 %v2070_v41, %v2066_v35  ;;  %v2065_v5 = vld [vmem:[%s6880_s5 + $0x90] sm:$0xff] }
 0x752   :  { %v2067_v55 = vld [vmem:[%s6880_s5 + $0xa0] sm:$0xff] }
 0x753   :  { %4295 = vmatpush1.bf16.msra.mxu0 %v4294_v6  ;;  %4327 = vmatpush1.bf16.msra.mxu1 %v4326_v22  ;;  %v2050_v6 = vld [vmem:[%s6880_s5 + $0x18] sm:$0xff]  ;;  %v2095_v35 = vld [vmem:[%s6880_s5 + $0x180] sm:$0xff] }
 0x754   :  { %4297 = vmatprep.subr.bf16.mxu0 %v4296_v39  ;;  %4329 = vmatprep.subr.bf16.mxu1 %v4328_v57  ;;  %v2054_v22 = vld [vmem:[%s6880_s5 + $0x38] sm:$0xff]  ;;  %v2099_v41 = vld [vmem:[%s6880_s5 + $0x1a0] sm:$0xff] }
 0x755   :  { %v6167_v23 = vpack.c.bf16 %v2054_v22, %v2050_v6  ;;  %v2069_v6 = vld [vmem:[%s6880_s5 + $0xb0] sm:$0xff]  ;;  %v2076_v22 = vld [vmem:[%s6880_s5 + $0xe8] sm:$0xff] }
 0x757   :  { %4299 = vmatpush1.bf16.msra.mxu0 %v4298_v60  ;;  %4331 = vmatpush1.bf16.msra.mxu1 %v4330_v27 }
 0x758   :  { %4301 = vmatprep.subr.bf16.mxu0 %v4300_v40  ;;  %4333 = vmatprep.subr.bf16.mxu1 %v4332_v51 }
 0x75b   :  { %4303 = vmatpush1.bf16.msra.mxu0 %v4302_v63  ;;  %4335 = vmatpush1.bf16.msra.mxu1 %v4334_v59  ;;  %v2060_v59 = vld [vmem:[%s6880_s5 + $0x68] sm:$0xff] }
 0x75c   :  { %4305 = vmatprep.subr.bf16.mxu0 %v4304_v16  ;;  %4337 = vmatprep.subr.bf16.mxu1 %v4336_v17 }
 0x75f   :  { %4307 = vmatpush1.bf16.msra.mxu0 %v4306_v9  ;;  %4339 = vmatpush1.bf16.msra.mxu1 %v4338_v25  ;;  %v2061_v25 = vld [vmem:[%s6880_s5 + $0x70] sm:$0xff] }
 0x760   :  { %4309 = vmatprep.subr.bf16.mxu0 %v4308_v26  ;;  %4341 = vmatprep.subr.bf16.mxu1 %v4340_v42  ;;  %v2064_v26 = vld [vmem:[%s6880_s5 + $0x88] sm:$0xff]  ;;  %v6237_v42 = vpack.c.bf16 %v2059_v21, %v2055_v7  ;;  %v6239_v48 = vpack.c.bf16 %v2061_v25, %v2057_v19  ;;  %v2093_v7 = vld [vmem:[%s6880_s5 + $0x170] sm:$0xff]  ;;  %v2098_v19 = vld [vmem:[%s6880_s5 + $0x198] sm:$0xff] }
 0x761   :  { %v2096_v21 = vld [vmem:[%s6880_s5 + $0x188] sm:$0xff]  ;;  %v2102_v25 = vld [vmem:[%s6880_s5 + $0x1b8] sm:$0xff] }
 0x763   :  { %4311 = vmatpush1.bf16.msra.mxu0 %v4310_v56  ;;  %4343 = vmatpush1.bf16.msra.mxu1 %v4342_v14  ;;  %v6249_v56 = vpack.c.bf16 %v2068_v34, %v2064_v26  ;;  %v2072_v14 = vld [vmem:[%s6880_s5 + $0xc8] sm:$0xff] }
 0x764   :  { %4345 = vmatprep.subr.bf16.mxu0 %v6162_v15  ;;  %4377 = vmatprep.subr.bf16.mxu1 %v6167_v23 }
 0x818   :  { %v1714_v30 = vpop.f32.mrb[14].mxu0  ;;  %v1785_v38 = vpop.f32.mrb[14].mxu1 }
 0x819   :  { %v4904_v39 = vadd.f32 %v1714_v30, %v5686_v11  ;;  %v1716_v46 = vpop.f32.mrb[15].mxu0  ;;  %v1787_v47 = vpop.f32.mrb[15].mxu1  ;;  %v4920_v27 = vadd.f32 %v1785_v38, %v5698_v43  ;;  %v2047_v43 = vld [vmem:[%s6880_s5] sm:$0xff]  ;;  %v2074_v30 = vld [vmem:[%s6880_s5 + $0xd8] sm:$0xff] }
 0x81a   :  { %v4905_v54 = vadd.f32 %v1716_v46, %v5690_v13  ;;  %v4921_v2 = vadd.f32 %v1787_v47, %v5702_v45  ;;  %v6200_v17 = vpack.c.bf16 %v2051_v52, %v2047_v43  ;;  %v2078_v38 = vld [vmem:[%s6880_s5 + $0xf8] sm:$0xff]  ;;  %v6277_v46 = vpack.c.bf16 %v2069_v6, %v2065_v5  ;;  %v2071_v47 = vld [vmem:[%s6880_s5 + $0xc0] sm:$0xff]  ;;  %v2092_v43 = vld [vmem:[%s6880_s5 + $0x168] sm:$0xff] }
 0x81b   :  { %v3672_v57 = vmul.f32 -1.442695, %v4904_v39  ;;  %v6275_v39 = vpack.c.bf16 %v2067_v55, %v2063_v49  ;;  %v2090_v52 = vld [vmem:[%s6880_s5 + $0x158] sm:$0xff]  ;;  %v6397_v55 = vpack.c.bf16 %v2102_v25, %v2098_v19  ;;  %v2097_v5 = vld [vmem:[%s6880_s5 + $0x190] sm:$0xff] }
 0x81c   :  { %v3673_v60 = vmul.f32 -1.442695, %v4905_v54  ;;  %v3674_v24 = vmul.f32 -1.442695, %v4921_v2  ;;  %v2075_v54 = vld [vmem:[%s6880_s5 + $0xe0] sm:$0xff]  ;;  %v2073_v2 = vld [vmem:[%s6880_s5 + $0xd0] sm:$0xff] }
 0x81d   :  { %5067 = vpow2.f32 %v3672_v57  ;;  %v6287_v57 = vpack.c.bf16 %v2076_v22, %v2072_v14  ;;  %v2101_v6 = vld [vmem:[%s6880_s5 + $0x1b0] sm:$0xff]  ;;  %v2104_v14 = vld [vmem:[%s6880_s5 + $0x1c8] sm:$0xff] }
 0x81e   :  { %5069 = vpow2.f32 %v3673_v60  ;;  %v6289_v60 = vpack.c.bf16 %v2078_v38, %v2074_v30  ;;  %v2108_v22 = vld [vmem:[%s6880_s5 + $0x1e8] sm:$0xff]  ;;  %v2106_v30 = vld [vmem:[%s6880_s5 + $0x1d8] sm:$0xff] }
 0x81f   :  { %5071 = vpow2.f32 %v3674_v24  ;;  %v2077_v24 = vld [vmem:[%s6880_s5 + $0xf0] sm:$0xff]  ;;  %v2110_v38 = vld [vmem:[%s6880_s5 + $0x1f8] sm:$0xff] }
 0x820   :  { %5073 = vtanh.f32 %v4920_v27  ;;  %v2080_v27 = vld [vmem:[%s6880_s5 + $0x108] sm:$0xff] }
 0x827   :  { %v5068_v28 = vpop.eup %5067 }
 0x828   :  { %v5070_v29 = vpop.eup %5069  ;;  %v1797_v37 = vadd.f32 1.0, %v5068_v28  ;;  %v2084_v28 = vld [vmem:[%s6880_s5 + $0x128] sm:$0xff] }
 0x829   :  { %v1803_v40 = vadd.f32 1.0, %v5070_v29  ;;  %v5072_v11 = vpop.eup %5071  ;;  %v2082_v29 = vld [vmem:[%s6880_s5 + $0x118] sm:$0xff] }
 0x82a   :  { %5075 = vrcp.f32 %v1797_v37  ;;  %v5074_v20 = vpop.eup %5073  ;;  %v1810_v51 = vadd.f32 1.0, %v5072_v11  ;;  %v2086_v37 = vld [vmem:[%s6880_s5 + $0x138] sm:$0xff]  ;;  %v6313_v11 = vpack.c.bf16 %v2077_v24, %v2073_v2  ;;  %v2103_v2 = vld [vmem:[%s6880_s5 + $0x1c0] sm:$0xff]  ;;  %v6428_v24 = vpack.c.bf16 %v2108_v22, %v2104_v14 }
 0x82b   :  { %5077 = vrcp.f32 %v1803_v40  ;;  %v6311_v40 = vpack.c.bf16 %v2075_v54, %v2071_v47  ;;  %v6419_v47 = vpack.c.bf16 %v2099_v41, %v2095_v35  ;;  %v6421_v54 = vpack.c.bf16 %v2101_v6, %v2097_v5 }
 0x82c   :  { %5079 = vrcp.f32 %v1810_v51  ;;  %v2081_v51 = vld [vmem:[%s6880_s5 + $0x110] sm:$0xff] }
 0x834   :  { %v5076_v13 = vpop.eup %5075 }
 0x835   :  { %v5078_v44 = vpop.eup %5077  ;;  %v1814_v8 = vmul.f32 %v5076_v13, %v5074_v20  ;;  %v2079_v20 = vld [vmem:[%s6880_s5 + $0x100] sm:$0xff] }
 0x836   :  { %v1813_v63 = vmul.f32 %v5078_v44, %v5956_v31  ;;  %v2056_v31 = vld [vmem:[%s6880_s5 + $0x48] sm:$0xff]  ;;  %v5080_v0 = vpop.eup %5079  ;;  %v2083_v13 = vld [vmem:[%s6880_s5 + $0x120] sm:$0xff]  ;;  %v6323_v44 = vpack.c.bf16 %v2084_v28, %v2080_v27  ;;  %v6430_v27 = vpack.c.bf16 %v2110_v38, %v2106_v30 }
 0x837   :  { %v6210_v12 = vpack.c.bf16 %v2060_v59, %v2056_v31  ;;  %v6347_v53 = vpack.c.bf16 %v2083_v13, %v2079_v20  ;;  %v2087_v59 = vld [vmem:[%s6880_s5 + $0x140] sm:$0xff] }
 0x838   :  { %v1815_v45 = vadd.f32 %v1814_v8, %v1813_v63  ;;  %v6325_v8 = vpack.c.bf16 %v2086_v37, %v2082_v29  ;;  %v2085_v63 = vld [vmem:[%s6880_s5 + $0x130] sm:$0xff]  ;;  %v6383_v26 = vpack.c.bf16 %v2091_v61, %v2087_v59  ;;  %v2107_v28 = vld [vmem:[%s6880_s5 + $0x1e0] sm:$0xff] }
 0x839   :  { %v6349_v31 = vpack.c.bf16 %v2085_v63, %v2081_v51  ;;  %v2105_v29 = vld [vmem:[%s6880_s5 + $0x1d0] sm:$0xff]  ;;  %v6443_v20 = vpack.c.bf16 %v2107_v28, %v2103_v2 }
 0x83a   :  { %5081 = vtanh.f32 %v1815_v45  ;;  %v2088_v45 = vld [vmem:[%s6880_s5 + $0x148] sm:$0xff]  ;;  %v2109_v37 = vld [vmem:[%s6880_s5 + $0x1f0] sm:$0xff] }
 0x83b   :  { %v6359_v50 = vpack.c.bf16 %v2092_v43, %v2088_v45  ;;  %v6445_v13 = vpack.c.bf16 %v2109_v37, %v2105_v29 }
 0x844   :  { %v5082_v16 = vpop.eup %5081 }
 0x845   :  { %v1817_v9 = vmul.f32 %v5082_v16, %v5080_v0  ;;  %v6361_v0 = vpack.c.bf16 %v2094_v33, %v2090_v52  ;;  %v2089_v16 = vld [vmem:[%s6880_s5 + $0x150] sm:$0xff]  ;;  %v1883_v52 = vld [vmem:[%s6882_s6] sm:$0xf] }
 0x846   :  { %v6385_v34 = vpack.c.bf16 %v2093_v7, %v2089_v16  ;;  %v1888_v33 = vrot.slane %v1883_v52, %v48_v4  ;;  %v1892_v59 = vrot.slane %v1883_v52, %v52_v10  ;;  %v1900_v35 = vrot.slane %v1883_v52, %v60_v36 }
 0x847   :  { %1818 = vst [vmem:[%s6881_s9] sm:$0xff] %v1817_v9  ;;  %1970 = vmatmul.mubr.f32.vlgmr.msra.gmra.mrb[16].mxu0 %v1817_v9  ;;  %2041 = vmatmul.mubr.f32.vlgmr.msra.gmra.mrb[18].mxu1 %v1817_v9  ;;  %v2100_v9 = vld [vmem:[%s6880_s5 + $0x1a8] sm:$0xff]  ;;  %v1896_v10 = vrot.slane %v1883_v52, %v56_v32 }
 0x848   :  { %4347 = vmatpush1.bf16.msra.mxu0 %v6200_v17  ;;  %4379 = vmatpush1.bf16.msra.mxu1 %v6202_v58  ;;  %v6395_v49 = vpack.c.bf16 %v2100_v9, %v2096_v21 }
 0x849   :  { %4349 = vmatprep.subr.bf16.mxu0 %v6210_v12  ;;  %4381 = vmatprep.subr.bf16.mxu1 %v6212_v18 }
 0x84a   :  { %2175 = vmatprep.mubr.f32.mxu0 %v5211_v1  ;;  %2246 = vmatprep.mubr.f32.mxu1 %v5211_v1 }
 0x84c   :  { %4351 = vmatpush1.bf16.msra.mxu0 %v6237_v42  ;;  %4383 = vmatpush1.bf16.msra.mxu1 %v6239_v48 }
 0x84d   :  { %4353 = vmatprep.subr.bf16.mxu0 %v6249_v56  ;;  %4385 = vmatprep.subr.bf16.mxu1 %v6251_v62 }
 0x850   :  { %4355 = vmatpush1.bf16.msra.mxu0 %v6275_v39  ;;  %4387 = vmatpush1.bf16.msra.mxu1 %v6277_v46 }
 0x851   :  { %4357 = vmatprep.subr.bf16.mxu0 %v6287_v57  ;;  %4389 = vmatprep.subr.bf16.mxu1 %v6289_v60 }
 0x854   :  { %4359 = vmatpush1.bf16.msra.mxu0 %v6311_v40  ;;  %4391 = vmatpush1.bf16.msra.mxu1 %v6313_v11 }
 0x855   :  { %4361 = vmatprep.subr.bf16.mxu0 %v6323_v44  ;;  %4393 = vmatprep.subr.bf16.mxu1 %v6325_v8 }
 0x858   :  { %4363 = vmatpush1.bf16.msra.mxu0 %v6347_v53  ;;  %4395 = vmatpush1.bf16.msra.mxu1 %v6349_v31 }
 0x859   :  { %4365 = vmatprep.subr.bf16.mxu0 %v6359_v50  ;;  %4397 = vmatprep.subr.bf16.mxu1 %v6361_v0 }
 0x85c   :  { %4367 = vmatpush1.bf16.msra.mxu0 %v6383_v26  ;;  %4399 = vmatpush1.bf16.msra.mxu1 %v6385_v34 }
 0x85d   :  { %4369 = vmatprep.subr.bf16.mxu0 %v6395_v49  ;;  %4401 = vmatprep.subr.bf16.mxu1 %v6397_v55 }
 0x860   :  { %4371 = vmatpush1.bf16.msra.mxu0 %v6419_v47  ;;  %4403 = vmatpush1.bf16.msra.mxu1 %v6421_v54 }
 0x861   :  { %4373 = vmatprep.subr.bf16.mxu0 %v6428_v24  ;;  %4405 = vmatprep.subr.bf16.mxu1 %v6430_v27 }
 0x864   :  { %4375 = vmatpush1.bf16.msra.mxu0 %v6443_v20  ;;  %4407 = vmatpush1.bf16.msra.mxu1 %v6445_v13 }
 0x865   :  { %4409 = vmatprep.subr.bf16.mxu0 %v6162_v15  ;;  %4441 = vmatprep.subr.bf16.mxu1 %v6167_v23 }
 0x867   :  { %2176 = vmatmul.mubr.f32.vlgmr.msra.gmra.mrb[18].mxu0 %v5211_v1  ;;  %2247 = vmatmul.mubr.f32.vlgmr.msra.gmra.mrb[20].mxu1 %v5211_v1 }
 0x868   :  { %4411 = vmatpush1.bf16.msra.mxu0 %v6200_v17  ;;  %4443 = vmatpush1.bf16.msra.mxu1 %v6202_v58 }
 0x869   :  { %4413 = vmatprep.subr.bf16.mxu0 %v6210_v12  ;;  %4445 = vmatprep.subr.bf16.mxu1 %v6212_v18 }
 0x86a   :  { %2346 = vmatprep.mubr.f32.mxu0 %v5211_v1  ;;  %2417 = vmatprep.mubr.f32.mxu1 %v5211_v1 }
 0x86c   :  { %4415 = vmatpush1.bf16.msra.mxu0 %v6237_v42  ;;  %4447 = vmatpush1.bf16.msra.mxu1 %v6239_v48 }
 0x86d   :  { %4417 = vmatprep.subr.bf16.mxu0 %v6249_v56  ;;  %4449 = vmatprep.subr.bf16.mxu1 %v6251_v62 }
 0x870   :  { %4419 = vmatpush1.bf16.msra.mxu0 %v6275_v39  ;;  %4451 = vmatpush1.bf16.msra.mxu1 %v6277_v46 }
 0x871   :  { %4421 = vmatprep.subr.bf16.mxu0 %v6287_v57  ;;  %4453 = vmatprep.subr.bf16.mxu1 %v6289_v60 }
 0x874   :  { %4423 = vmatpush1.bf16.msra.mxu0 %v6311_v40  ;;  %4455 = vmatpush1.bf16.msra.mxu1 %v6313_v11 }
 0x875   :  { %4425 = vmatprep.subr.bf16.mxu0 %v6323_v44  ;;  %4457 = vmatprep.subr.bf16.mxu1 %v6325_v8 }
 0x878   :  { %4427 = vmatpush1.bf16.msra.mxu0 %v6347_v53  ;;  %4459 = vmatpush1.bf16.msra.mxu1 %v6349_v31 }
 0x879   :  { %4429 = vmatprep.subr.bf16.mxu0 %v6359_v50  ;;  %4461 = vmatprep.subr.bf16.mxu1 %v6361_v0 }
 0x87c   :  { %4431 = vmatpush1.bf16.msra.mxu0 %v6383_v26  ;;  %4463 = vmatpush1.bf16.msra.mxu1 %v6385_v34 }
 0x87d   :  { %4433 = vmatprep.subr.bf16.mxu0 %v6395_v49  ;;  %4465 = vmatprep.subr.bf16.mxu1 %v6397_v55 }
 0x880   :  { %4435 = vmatpush1.bf16.msra.mxu0 %v6419_v47  ;;  %4467 = vmatpush1.bf16.msra.mxu1 %v6421_v54 }
 0x881   :  { %4437 = vmatprep.subr.bf16.mxu0 %v6428_v24  ;;  %4469 = vmatprep.subr.bf16.mxu1 %v6430_v27 }
 0x884   :  { %4439 = vmatpush1.bf16.msra.mxu0 %v6443_v20  ;;  %4471 = vmatpush1.bf16.msra.mxu1 %v6445_v13 }
 0x885   :  { %4473 = vmatprep.subr.bf16.mxu0 %v6162_v15  ;;  %4505 = vmatprep.subr.bf16.mxu1 %v6167_v23 }
 0x91a   :  { %v1971_v51 = vpop.f32.mrb[16].mxu0  ;;  %v2042_v63 = vpop.f32.mrb[18].mxu1 }
 0x91b   :  { %v1973_v45 = vpop.f32.mrb[17].mxu0  ;;  %v2044_v43 = vpop.f32.mrb[19].mxu1  ;;  %v6496_v61 = vadd.f32 %v1971_v51, %v1888_v33  ;;  %v6509_v22 = vadd.f32 %v2042_v63, %v1896_v10 }
 0x91c   :  { %v6498_v16 = vadd.f32 %v1973_v45, %v1892_v59  ;;  %v6504_v6 = vadd.f32 %v2044_v43, %v1900_v35 }
 0x93a   :  { %v2177_v7 = vpop.f32.mrb[18].mxu0  ;;  %v2248_v21 = vpop.f32.mrb[20].mxu1 }
 0x93b   :  { %v2253_v9 = vadd.f32 %v2177_v7, %v6496_v61  ;;  %v2179_v19 = vpop.f32.mrb[19].mxu0  ;;  %v2250_v25 = vpop.f32.mrb[21].mxu1  ;;  %v2255_v38 = vadd.f32 %v2248_v21, %v6509_v22 }
 0x93c   :  { %v2254_v41 = vadd.f32 %v2179_v19, %v6498_v16  ;;  %v2256_v14 = vadd.f32 %v2250_v25, %v6504_v6 }
 0x93d   :  { %v3675_v5 = vmul.f32 -1.442695, %v2253_v9 }
 0x93e   :  { %v3676_v4 = vmul.f32 -1.442695, %v2254_v41  ;;  %v3677_v30 = vmul.f32 -1.442695, %v2256_v14 }
 0x93f   :  { %5083 = vpow2.f32 %v3675_v5 }
 0x940   :  { %5085 = vpow2.f32 %v3676_v4 }
 0x941   :  { %5087 = vpow2.f32 %v3677_v30 }
 0x942   :  { %5089 = vtanh.f32 %v2255_v38 }
 0x949   :  { %v5084_v2 = vpop.eup %5083 }
 0x94a   :  { %v5086_v36 = vpop.eup %5085  ;;  %v2260_v28 = vadd.f32 1.0, %v5084_v2 }
 0x94b   :  { %v2266_v29 = vadd.f32 1.0, %v5086_v36  ;;  %v5088_v37 = vpop.eup %5087 }
 0x94c   :  { %5091 = vrcp.f32 %v2260_v28  ;;  %v5090_v51 = vpop.eup %5089  ;;  %v2273_v43 = vadd.f32 1.0, %v5088_v37 }
 0x94d   :  { %5093 = vrcp.f32 %v2266_v29 }
 0x94e   :  { %5095 = vrcp.f32 %v2273_v43 }
 0x956   :  { %v5092_v45 = vpop.eup %5091 }
 0x957   :  { %v5094_v3 = vpop.eup %5093  ;;  %v2277_v32 = vmul.f32 %v5092_v45, %v5090_v51 }
 0x958   :  { %v2276_v52 = vmul.f32 0.0, %v5094_v3  ;;  %v5096_v33 = vpop.eup %5095 }
 0x95a   :  { %v6512_v63 = vadd.f32 %v2277_v32, %v2276_v52 }
 0x95c   :  { %5097 = vtanh.f32 %v6512_v63 }
 0x966   :  { %v5098_v59 = vpop.eup %5097 }
 0x967   :  { %v6515_v7 = vmul.f32 %v5098_v59, %v5096_v33 }
 0x969   :  { %2347 = vmatmul.mubr.f32.vlgmr.msra.gmra.mrb[20].mxu0 %v6515_v7  ;;  %2418 = vmatmul.mubr.f32.vlgmr.msra.gmra.mrb[22].mxu1 %v6515_v7 }
 0x96a   :  { %4475 = vmatpush1.bf16.msra.mxu0 %v6200_v17  ;;  %4507 = vmatpush1.bf16.msra.mxu1 %v6202_v58 }
 0x96b   :  { %4477 = vmatprep.subr.bf16.mxu0 %v6210_v12  ;;  %4509 = vmatprep.subr.bf16.mxu1 %v6212_v18 }
 0x96c   :  { %2517 = vmatprep.mubr.f32.mxu0 %v5211_v1  ;;  %2588 = vmatprep.mubr.f32.mxu1 %v5211_v1 }
 0x96e   :  { %4479 = vmatpush1.bf16.msra.mxu0 %v6237_v42  ;;  %4511 = vmatpush1.bf16.msra.mxu1 %v6239_v48 }
 0x96f   :  { %4481 = vmatprep.subr.bf16.mxu0 %v6249_v56  ;;  %4513 = vmatprep.subr.bf16.mxu1 %v6251_v62 }
 0x972   :  { %4483 = vmatpush1.bf16.msra.mxu0 %v6275_v39  ;;  %4515 = vmatpush1.bf16.msra.mxu1 %v6277_v46 }
 0x973   :  { %4485 = vmatprep.subr.bf16.mxu0 %v6287_v57  ;;  %4517 = vmatprep.subr.bf16.mxu1 %v6289_v60 }
 0x976   :  { %4487 = vmatpush1.bf16.msra.mxu0 %v6311_v40  ;;  %4519 = vmatpush1.bf16.msra.mxu1 %v6313_v11 }
 0x977   :  { %4489 = vmatprep.subr.bf16.mxu0 %v6323_v44  ;;  %4521 = vmatprep.subr.bf16.mxu1 %v6325_v8 }
 0x97a   :  { %4491 = vmatpush1.bf16.msra.mxu0 %v6347_v53  ;;  %4523 = vmatpush1.bf16.msra.mxu1 %v6349_v31 }
 0x97b   :  { %4493 = vmatprep.subr.bf16.mxu0 %v6359_v50  ;;  %4525 = vmatprep.subr.bf16.mxu1 %v6361_v0 }
 0x97e   :  { %4495 = vmatpush1.bf16.msra.mxu0 %v6383_v26  ;;  %4527 = vmatpush1.bf16.msra.mxu1 %v6385_v34 }
 0x97f   :  { %4497 = vmatprep.subr.bf16.mxu0 %v6395_v49  ;;  %4529 = vmatprep.subr.bf16.mxu1 %v6397_v55 }
 0x982   :  { %4499 = vmatpush1.bf16.msra.mxu0 %v6419_v47  ;;  %4531 = vmatpush1.bf16.msra.mxu1 %v6421_v54 }
 0x983   :  { %4501 = vmatprep.subr.bf16.mxu0 %v6428_v24  ;;  %4533 = vmatprep.subr.bf16.mxu1 %v6430_v27 }
 0x986   :  { %4503 = vmatpush1.bf16.msra.mxu0 %v6443_v20  ;;  %4535 = vmatpush1.bf16.msra.mxu1 %v6445_v13 }
 0x987   :  { %4537 = vmatprep.subr.bf16.mxu0 %v6162_v15  ;;  %4569 = vmatprep.subr.bf16.mxu1 %v6167_v23 }
 0xa3c   :  { %v2348_v21 = vpop.f32.mrb[20].mxu0  ;;  %v2419_v9 = vpop.f32.mrb[22].mxu1 }
 0xa3d   :  { %v2424_v19 = vadd.f32 %v2348_v21, %v6496_v61  ;;  %v2350_v25 = vpop.f32.mrb[21].mxu0  ;;  %v2421_v35 = vpop.f32.mrb[23].mxu1  ;;  %v2426_v30 = vadd.f32 %v2419_v9, %v6509_v22 }
 0xa3e   :  { %v2425_v41 = vadd.f32 %v2350_v25, %v6498_v16  ;;  %v2427_v10 = vadd.f32 %v2421_v35, %v6504_v6 }
 0xa3f   :  { %v3678_v5 = vmul.f32 -1.442695, %v2424_v19 }
 0xa40   :  { %v3679_v4 = vmul.f32 -1.442695, %v2425_v41  ;;  %v3680_v14 = vmul.f32 -1.442695, %v2427_v10 }
 0xa41   :  { %5099 = vpow2.f32 %v3678_v5 }
 0xa42   :  { %5101 = vpow2.f32 %v3679_v4 }
 0xa43   :  { %5103 = vpow2.f32 %v3680_v14 }
 0xa44   :  { %5105 = vtanh.f32 %v2426_v30 }
 0xa4b   :  { %v5100_v38 = vpop.eup %5099 }
 0xa4c   :  { %v5102_v2 = vpop.eup %5101  ;;  %v2431_v36 = vadd.f32 1.0, %v5100_v38 }
 0xa4d   :  { %v2437_v28 = vadd.f32 1.0, %v5102_v2  ;;  %v5104_v29 = vpop.eup %5103 }
 0xa4e   :  { %5107 = vrcp.f32 %v2431_v36  ;;  %v5106_v37 = vpop.eup %5105  ;;  %v2444_v32 = vadd.f32 1.0, %v5104_v29 }
 0xa4f   :  { %5109 = vrcp.f32 %v2437_v28 }
 0xa50   :  { %5111 = vrcp.f32 %v2444_v32 }
 0xa58   :  { %v5108_v51 = vpop.eup %5107 }
 0xa59   :  { %v5110_v45 = vpop.eup %5109  ;;  %v2448_v3 = vmul.f32 %v5108_v51, %v5106_v37 }
 0xa5a   :  { %v2447_v43 = vmul.f32 %v5110_v45, %v6512_v63  ;;  %v5112_v33 = vpop.eup %5111 }
 0xa5c   :  { %v6558_v52 = vadd.f32 %v2448_v3, %v2447_v43 }
 0xa5e   :  { %5113 = vtanh.f32 %v6558_v52 }
 0xa68   :  { %v5114_v59 = vpop.eup %5113 }
 0xa69   :  { %v6561_v21 = vmul.f32 %v5114_v59, %v5112_v33 }
 0xa6b   :  { %2518 = vmatmul.mubr.f32.vlgmr.msra.gmra.mrb[22].mxu0 %v6561_v21  ;;  %2589 = vmatmul.mubr.f32.vlgmr.msra.gmra.mrb[24].mxu1 %v6561_v21 }
 0xa6c   :  { %4539 = vmatpush1.bf16.msra.mxu0 %v6200_v17  ;;  %4571 = vmatpush1.bf16.msra.mxu1 %v6202_v58 }
 0xa6d   :  { %4541 = vmatprep.subr.bf16.mxu0 %v6210_v12  ;;  %4573 = vmatprep.subr.bf16.mxu1 %v6212_v18 }
 0xa6e   :  { %2688 = vmatprep.mubr.f32.mxu0 %v5211_v1  ;;  %2759 = vmatprep.mubr.f32.mxu1 %v5211_v1 }
 0xa70   :  { %4543 = vmatpush1.bf16.msra.mxu0 %v6237_v42  ;;  %4575 = vmatpush1.bf16.msra.mxu1 %v6239_v48 }
 0xa71   :  { %4545 = vmatprep.subr.bf16.mxu0 %v6249_v56  ;;  %4577 = vmatprep.subr.bf16.mxu1 %v6251_v62 }
 0xa74   :  { %4547 = vmatpush1.bf16.msra.mxu0 %v6275_v39  ;;  %4579 = vmatpush1.bf16.msra.mxu1 %v6277_v46 }
 0xa75   :  { %4549 = vmatprep.subr.bf16.mxu0 %v6287_v57  ;;  %4581 = vmatprep.subr.bf16.mxu1 %v6289_v60 }
 0xa78   :  { %4551 = vmatpush1.bf16.msra.mxu0 %v6311_v40  ;;  %4583 = vmatpush1.bf16.msra.mxu1 %v6313_v11 }
 0xa79   :  { %4553 = vmatprep.subr.bf16.mxu0 %v6323_v44  ;;  %4585 = vmatprep.subr.bf16.mxu1 %v6325_v8 }
 0xa7c   :  { %4555 = vmatpush1.bf16.msra.mxu0 %v6347_v53  ;;  %4587 = vmatpush1.bf16.msra.mxu1 %v6349_v31 }
 0xa7d   :  { %4557 = vmatprep.subr.bf16.mxu0 %v6359_v50  ;;  %4589 = vmatprep.subr.bf16.mxu1 %v6361_v0 }
 0xa80   :  { %4559 = vmatpush1.bf16.msra.mxu0 %v6383_v26  ;;  %4591 = vmatpush1.bf16.msra.mxu1 %v6385_v34 }
 0xa81   :  { %4561 = vmatprep.subr.bf16.mxu0 %v6395_v49  ;;  %4593 = vmatprep.subr.bf16.mxu1 %v6397_v55 }
 0xa84   :  { %4563 = vmatpush1.bf16.msra.mxu0 %v6419_v47  ;;  %4595 = vmatpush1.bf16.msra.mxu1 %v6421_v54 }
 0xa85   :  { %4565 = vmatprep.subr.bf16.mxu0 %v6428_v24  ;;  %4597 = vmatprep.subr.bf16.mxu1 %v6430_v27 }
 0xa88   :  { %4567 = vmatpush1.bf16.msra.mxu0 %v6443_v20  ;;  %4599 = vmatpush1.bf16.msra.mxu1 %v6445_v13 }
 0xa89   :  { %4601 = vmatprep.subr.bf16.mxu0 %v6162_v15  ;;  %4633 = vmatprep.subr.bf16.mxu1 %v6167_v23 }
 0xb3e   :  { %v2519_v63 = vpop.f32.mrb[22].mxu0  ;;  %v2590_v9 = vpop.f32.mrb[24].mxu1 }
 0xb3f   :  { %v2595_v19 = vadd.f32 %v2519_v63, %v6496_v61  ;;  %v2521_v25 = vpop.f32.mrb[23].mxu0  ;;  %v2592_v35 = vpop.f32.mrb[25].mxu1  ;;  %v2597_v30 = vadd.f32 %v2590_v9, %v6509_v22 }
 0xb40   :  { %v2596_v41 = vadd.f32 %v2521_v25, %v6498_v16  ;;  %v2598_v10 = vadd.f32 %v2592_v35, %v6504_v6 }
 0xb41   :  { %v3681_v5 = vmul.f32 -1.442695, %v2595_v19 }
 0xb42   :  { %v3682_v4 = vmul.f32 -1.442695, %v2596_v41  ;;  %v3683_v14 = vmul.f32 -1.442695, %v2598_v10 }
 0xb43   :  { %5115 = vpow2.f32 %v3681_v5 }
 0xb44   :  { %5117 = vpow2.f32 %v3682_v4 }
 0xb45   :  { %5119 = vpow2.f32 %v3683_v14 }
 0xb46   :  { %5121 = vtanh.f32 %v2597_v30 }
 0xb4d   :  { %v5116_v38 = vpop.eup %5115 }
 0xb4e   :  { %v5118_v2 = vpop.eup %5117  ;;  %v2602_v36 = vadd.f32 1.0, %v5116_v38 }
 0xb4f   :  { %v2608_v28 = vadd.f32 1.0, %v5118_v2  ;;  %v5120_v29 = vpop.eup %5119 }
 0xb50   :  { %5123 = vrcp.f32 %v2602_v36  ;;  %v5122_v37 = vpop.eup %5121  ;;  %v2615_v32 = vadd.f32 1.0, %v5120_v29 }
 0xb51   :  { %5125 = vrcp.f32 %v2608_v28 }
 0xb52   :  { %5127 = vrcp.f32 %v2615_v32 }
 0xb5a   :  { %v5124_v51 = vpop.eup %5123 }
 0xb5b   :  { %v5126_v45 = vpop.eup %5125  ;;  %v2619_v3 = vmul.f32 %v5124_v51, %v5122_v37 }
 0xb5c   :  { %v2618_v43 = vmul.f32 %v5126_v45, %v6558_v52  ;;  %v5128_v59 = vpop.eup %5127 }
 0xb5e   :  { %v6604_v33 = vadd.f32 %v2619_v3, %v2618_v43 }
 0xb60   :  { %5129 = vtanh.f32 %v6604_v33 }
 0xb6a   :  { %v5130_v63 = vpop.eup %5129 }
 0xb6b   :  { %v6607_v9 = vmul.f32 %v5130_v63, %v5128_v59 }
 0xb6d   :  { %2689 = vmatmul.mubr.f32.vlgmr.msra.gmra.mrb[24].mxu0 %v6607_v9  ;;  %2760 = vmatmul.mubr.f32.vlgmr.msra.gmra.mrb[26].mxu1 %v6607_v9 }
 0xb6e   :  { %4603 = vmatpush1.bf16.msra.mxu0 %v6200_v17  ;;  %4635 = vmatpush1.bf16.msra.mxu1 %v6202_v58 }
 0xb6f   :  { %4605 = vmatprep.subr.bf16.mxu0 %v6210_v12  ;;  %4637 = vmatprep.subr.bf16.mxu1 %v6212_v18 }
 0xb70   :  { %2859 = vmatprep.mubr.f32.mxu0 %v5211_v1  ;;  %2930 = vmatprep.mubr.f32.mxu1 %v5211_v1 }
 0xb72   :  { %4607 = vmatpush1.bf16.msra.mxu0 %v6237_v42  ;;  %4639 = vmatpush1.bf16.msra.mxu1 %v6239_v48 }
 0xb73   :  { %4609 = vmatprep.subr.bf16.mxu0 %v6249_v56  ;;  %4641 = vmatprep.subr.bf16.mxu1 %v6251_v62 }
 0xb76   :  { %4611 = vmatpush1.bf16.msra.mxu0 %v6275_v39  ;;  %4643 = vmatpush1.bf16.msra.mxu1 %v6277_v46 }
 0xb77   :  { %4613 = vmatprep.subr.bf16.mxu0 %v6287_v57  ;;  %4645 = vmatprep.subr.bf16.mxu1 %v6289_v60 }
 0xb7a   :  { %4615 = vmatpush1.bf16.msra.mxu0 %v6311_v40  ;;  %4647 = vmatpush1.bf16.msra.mxu1 %v6313_v11 }
 0xb7b   :  { %4617 = vmatprep.subr.bf16.mxu0 %v6323_v44  ;;  %4649 = vmatprep.subr.bf16.mxu1 %v6325_v8 }
 0xb7e   :  { %4619 = vmatpush1.bf16.msra.mxu0 %v6347_v53  ;;  %4651 = vmatpush1.bf16.msra.mxu1 %v6349_v31 }
 0xb7f   :  { %4621 = vmatprep.subr.bf16.mxu0 %v6359_v50  ;;  %4653 = vmatprep.subr.bf16.mxu1 %v6361_v0 }
 0xb82   :  { %4623 = vmatpush1.bf16.msra.mxu0 %v6383_v26  ;;  %4655 = vmatpush1.bf16.msra.mxu1 %v6385_v34 }
 0xb83   :  { %4625 = vmatprep.subr.bf16.mxu0 %v6395_v49  ;;  %4657 = vmatprep.subr.bf16.mxu1 %v6397_v55 }
 0xb86   :  { %4627 = vmatpush1.bf16.msra.mxu0 %v6419_v47  ;;  %4659 = vmatpush1.bf16.msra.mxu1 %v6421_v54 }
 0xb87   :  { %4629 = vmatprep.subr.bf16.mxu0 %v6428_v24  ;;  %4661 = vmatprep.subr.bf16.mxu1 %v6430_v27 }
 0xb8a   :  { %4631 = vmatpush1.bf16.msra.mxu0 %v6443_v20  ;;  %4663 = vmatpush1.bf16.msra.mxu1 %v6445_v13 }
 0xb8b   :  { %4665 = vmatprep.subr.bf16.mxu0 %v6162_v15  ;;  %4697 = vmatprep.subr.bf16.mxu1 %v6167_v23 }
 0xc40   :  { %v2690_v52 = vpop.f32.mrb[24].mxu0  ;;  %v2761_v19 = vpop.f32.mrb[26].mxu1 }
 0xc41   :  { %v2766_v25 = vadd.f32 %v2690_v52, %v6496_v61  ;;  %v2692_v35 = vpop.f32.mrb[25].mxu0  ;;  %v2763_v41 = vpop.f32.mrb[27].mxu1  ;;  %v2768_v38 = vadd.f32 %v2761_v19, %v6509_v22 }
 0xc42   :  { %v2767_v5 = vadd.f32 %v2692_v35, %v6498_v16  ;;  %v2769_v14 = vadd.f32 %v2763_v41, %v6504_v6 }
 0xc43   :  { %v3684_v4 = vmul.f32 -1.442695, %v2766_v25 }
 0xc44   :  { %v3685_v10 = vmul.f32 -1.442695, %v2767_v5  ;;  %v3686_v30 = vmul.f32 -1.442695, %v2769_v14 }
 0xc45   :  { %5131 = vpow2.f32 %v3684_v4 }
 0xc46   :  { %5133 = vpow2.f32 %v3685_v10 }
 0xc47   :  { %5135 = vpow2.f32 %v3686_v30 }
 0xc48   :  { %5137 = vtanh.f32 %v2768_v38 }
 0xc4f   :  { %v5132_v2 = vpop.eup %5131 }
 0xc50   :  { %v5134_v36 = vpop.eup %5133  ;;  %v2773_v28 = vadd.f32 1.0, %v5132_v2 }
 0xc51   :  { %v2779_v29 = vadd.f32 1.0, %v5134_v36  ;;  %v5136_v37 = vpop.eup %5135 }
 0xc52   :  { %5139 = vrcp.f32 %v2773_v28  ;;  %v5138_v51 = vpop.eup %5137  ;;  %v2786_v43 = vadd.f32 1.0, %v5136_v37 }
 0xc53   :  { %5141 = vrcp.f32 %v2779_v29 }
 0xc54   :  { %5143 = vrcp.f32 %v2786_v43 }
 0xc5c   :  { %v5140_v45 = vpop.eup %5139 }
 0xc5d   :  { %v5142_v3 = vpop.eup %5141  ;;  %v2790_v32 = vmul.f32 %v5140_v45, %v5138_v51 }
 0xc5e   :  { %v2789_v59 = vmul.f32 %v5142_v3, %v6604_v33  ;;  %v5144_v52 = vpop.eup %5143 }
 0xc60   :  { %v6650_v63 = vadd.f32 %v2790_v32, %v2789_v59 }
 0xc62   :  { %5145 = vtanh.f32 %v6650_v63 }
 0xc6c   :  { %v5146_v19 = vpop.eup %5145 }
 0xc6d   :  { %v6653_v25 = vmul.f32 %v5146_v19, %v5144_v52 }
 0xc6f   :  { %2860 = vmatmul.mubr.f32.vlgmr.msra.gmra.mrb[26].mxu0 %v6653_v25  ;;  %2931 = vmatmul.mubr.f32.vlgmr.msra.gmra.mrb[28].mxu1 %v6653_v25 }
 0xc70   :  { %4667 = vmatpush1.bf16.msra.mxu0 %v6200_v17  ;;  %4699 = vmatpush1.bf16.msra.mxu1 %v6202_v58 }
 0xc71   :  { %4669 = vmatprep.subr.bf16.mxu0 %v6210_v12  ;;  %4701 = vmatprep.subr.bf16.mxu1 %v6212_v18 }
 0xc72   :  { %3030 = vmatprep.mubr.f32.mxu0 %v5211_v1  ;;  %3101 = vmatprep.mubr.f32.mxu1 %v5211_v1 }
 0xc74   :  { %4671 = vmatpush1.bf16.msra.mxu0 %v6237_v42  ;;  %4703 = vmatpush1.bf16.msra.mxu1 %v6239_v48 }
 0xc75   :  { %4673 = vmatprep.subr.bf16.mxu0 %v6249_v56  ;;  %4705 = vmatprep.subr.bf16.mxu1 %v6251_v62 }
 0xc78   :  { %4675 = vmatpush1.bf16.msra.mxu0 %v6275_v39  ;;  %4707 = vmatpush1.bf16.msra.mxu1 %v6277_v46 }
 0xc79   :  { %4677 = vmatprep.subr.bf16.mxu0 %v6287_v57  ;;  %4709 = vmatprep.subr.bf16.mxu1 %v6289_v60 }
 0xc7c   :  { %4679 = vmatpush1.bf16.msra.mxu0 %v6311_v40  ;;  %4711 = vmatpush1.bf16.msra.mxu1 %v6313_v11 }
 0xc7d   :  { %4681 = vmatprep.subr.bf16.mxu0 %v6323_v44  ;;  %4713 = vmatprep.subr.bf16.mxu1 %v6325_v8 }
 0xc80   :  { %4683 = vmatpush1.bf16.msra.mxu0 %v6347_v53  ;;  %4715 = vmatpush1.bf16.msra.mxu1 %v6349_v31 }
 0xc81   :  { %4685 = vmatprep.subr.bf16.mxu0 %v6359_v50  ;;  %4717 = vmatprep.subr.bf16.mxu1 %v6361_v0 }
 0xc84   :  { %4687 = vmatpush1.bf16.msra.mxu0 %v6383_v26  ;;  %4719 = vmatpush1.bf16.msra.mxu1 %v6385_v34 }
 0xc85   :  { %4689 = vmatprep.subr.bf16.mxu0 %v6395_v49  ;;  %4721 = vmatprep.subr.bf16.mxu1 %v6397_v55 }
 0xc88   :  { %4691 = vmatpush1.bf16.msra.mxu0 %v6419_v47  ;;  %4723 = vmatpush1.bf16.msra.mxu1 %v6421_v54 }
 0xc89   :  { %4693 = vmatprep.subr.bf16.mxu0 %v6428_v24  ;;  %4725 = vmatprep.subr.bf16.mxu1 %v6430_v27 }
 0xc8c   :  { %4695 = vmatpush1.bf16.msra.mxu0 %v6443_v20  ;;  %4727 = vmatpush1.bf16.msra.mxu1 %v6445_v13 }
 0xc8d   :  { %4729 = vmatprep.subr.bf16.mxu0 %v6162_v15  ;;  %4761 = vmatprep.subr.bf16.mxu1 %v6167_v23 }
 0xd42   :  { %v2861_v33 = vpop.f32.mrb[26].mxu0  ;;  %v2932_v35 = vpop.f32.mrb[28].mxu1 }
 0xd43   :  { %v2937_v41 = vadd.f32 %v2861_v33, %v6496_v61  ;;  %v2863_v5 = vpop.f32.mrb[27].mxu0  ;;  %v2934_v4 = vpop.f32.mrb[29].mxu1  ;;  %v2939_v36 = vadd.f32 %v2932_v35, %v6509_v22 }
 0xd44   :  { %v2938_v10 = vadd.f32 %v2863_v5, %v6498_v16  ;;  %v2940_v38 = vadd.f32 %v2934_v4, %v6504_v6 }
 0xd45   :  { %v3687_v14 = vmul.f32 -1.442695, %v2937_v41 }
 0xd46   :  { %v3688_v30 = vmul.f32 -1.442695, %v2938_v10  ;;  %v3689_v2 = vmul.f32 -1.442695, %v2940_v38 }
 0xd47   :  { %5147 = vpow2.f32 %v3687_v14 }
 0xd48   :  { %5149 = vpow2.f32 %v3688_v30 }
 0xd49   :  { %5151 = vpow2.f32 %v3689_v2 }
 0xd4a   :  { %5153 = vtanh.f32 %v2939_v36 }
 0xd51   :  { %v5148_v28 = vpop.eup %5147 }
 0xd52   :  { %v5150_v29 = vpop.eup %5149  ;;  %v2944_v37 = vadd.f32 1.0, %v5148_v28 }
 0xd53   :  { %v2950_v51 = vadd.f32 1.0, %v5150_v29  ;;  %v5152_v45 = vpop.eup %5151 }
 0xd54   :  { %5155 = vrcp.f32 %v2944_v37  ;;  %v5154_v3 = vpop.eup %5153  ;;  %v2957_v52 = vadd.f32 1.0, %v5152_v45 }
 0xd55   :  { %5157 = vrcp.f32 %v2950_v51 }
 0xd56   :  { %5159 = vrcp.f32 %v2957_v52 }
 0xd5e   :  { %v5156_v32 = vpop.eup %5155 }
 0xd5f   :  { %v5158_v43 = vpop.eup %5157  ;;  %v2961_v59 = vmul.f32 %v5156_v32, %v5154_v3 }
 0xd60   :  { %v2960_v19 = vmul.f32 %v5158_v43, %v6650_v63  ;;  %v5160_v35 = vpop.eup %5159 }
 0xd62   :  { %v6696_v33 = vadd.f32 %v2961_v59, %v2960_v19 }
 0xd64   :  { %5161 = vtanh.f32 %v6696_v33 }
 0xd6e   :  { %v5162_v41 = vpop.eup %5161 }
 0xd6f   :  { %v6699_v5 = vmul.f32 %v5162_v41, %v5160_v35 }
 0xd71   :  { %3031 = vmatmul.mubr.f32.vlgmr.msra.gmra.mrb[28].mxu0 %v6699_v5  ;;  %3102 = vmatmul.mubr.f32.vlgmr.msra.gmra.mrb[30].mxu1 %v6699_v5 }
 0xd72   :  { %4731 = vmatpush1.bf16.msra.mxu0 %v6200_v17  ;;  %4763 = vmatpush1.bf16.msra.mxu1 %v6202_v58 }
 0xd73   :  { %4733 = vmatprep.subr.bf16.mxu0 %v6210_v12  ;;  %4765 = vmatprep.subr.bf16.mxu1 %v6212_v18 }
 0xd74   :  { %3201 = vmatprep.mubr.f32.mxu0 %v5211_v1  ;;  %3272 = vmatprep.mubr.f32.mxu1 %v5211_v1 }
 0xd76   :  { %4735 = vmatpush1.bf16.msra.mxu0 %v6237_v42  ;;  %4767 = vmatpush1.bf16.msra.mxu1 %v6239_v48 }
 0xd77   :  { %4737 = vmatprep.subr.bf16.mxu0 %v6249_v56  ;;  %4769 = vmatprep.subr.bf16.mxu1 %v6251_v62 }
 0xd7a   :  { %4739 = vmatpush1.bf16.msra.mxu0 %v6275_v39  ;;  %4771 = vmatpush1.bf16.msra.mxu1 %v6277_v46 }
 0xd7b   :  { %4741 = vmatprep.subr.bf16.mxu0 %v6287_v57  ;;  %4773 = vmatprep.subr.bf16.mxu1 %v6289_v60 }
 0xd7e   :  { %4743 = vmatpush1.bf16.msra.mxu0 %v6311_v40  ;;  %4775 = vmatpush1.bf16.msra.mxu1 %v6313_v11 }
 0xd7f   :  { %4745 = vmatprep.subr.bf16.mxu0 %v6323_v44  ;;  %4777 = vmatprep.subr.bf16.mxu1 %v6325_v8 }
 0xd82   :  { %4747 = vmatpush1.bf16.msra.mxu0 %v6347_v53  ;;  %4779 = vmatpush1.bf16.msra.mxu1 %v6349_v31 }
 0xd83   :  { %4749 = vmatprep.subr.bf16.mxu0 %v6359_v50  ;;  %4781 = vmatprep.subr.bf16.mxu1 %v6361_v0 }
 0xd86   :  { %4751 = vmatpush1.bf16.msra.mxu0 %v6383_v26  ;;  %4783 = vmatpush1.bf16.msra.mxu1 %v6385_v34 }
 0xd87   :  { %4753 = vmatprep.subr.bf16.mxu0 %v6395_v49  ;;  %4785 = vmatprep.subr.bf16.mxu1 %v6397_v55 }
 0xd8a   :  { %4755 = vmatpush1.bf16.msra.mxu0 %v6419_v47  ;;  %4787 = vmatpush1.bf16.msra.mxu1 %v6421_v54 }
 0xd8b   :  { %4757 = vmatprep.subr.bf16.mxu0 %v6428_v24  ;;  %4789 = vmatprep.subr.bf16.mxu1 %v6430_v27 }
 0xd8e   :  { %4759 = vmatpush1.bf16.msra.mxu0 %v6443_v20  ;;  %4791 = vmatpush1.bf16.msra.mxu1 %v6445_v13 }
 0xd8f   :  { %4793 = vmatprep.subr.bf16.mxu0 %v6162_v15  ;;  %4825 = vmatprep.subr.bf16.mxu1 %v6167_v23 }
 0xe44   :  { %v3032_v63 = vpop.f32.mrb[28].mxu0  ;;  %v3103_v4 = vpop.f32.mrb[30].mxu1 }
 0xe45   :  { %v3108_v10 = vadd.f32 %v3032_v63, %v6496_v61  ;;  %v3034_v14 = vpop.f32.mrb[29].mxu0  ;;  %v3105_v30 = vpop.f32.mrb[31].mxu1  ;;  %v3110_v37 = vadd.f32 %v3103_v4, %v6509_v22 }
 0xe46   :  { %v3109_v38 = vadd.f32 %v3034_v14, %v6498_v16  ;;  %v3111_v28 = vadd.f32 %v3105_v30, %v6504_v6  ;;  %v3491_v14 = vld [vmem:[%s6883_s7 + $0x20] sm:$0xff]  ;;  %v3492_v30 = vld [vmem:[%s6883_s7 + $0x28] sm:$0xff] }
 0xe47   :  { %v3690_v2 = vmul.f32 -1.442695, %v3108_v10 }
 0xe48   :  { %v3691_v36 = vmul.f32 -1.442695, %v3109_v38  ;;  %v3692_v29 = vmul.f32 -1.442695, %v3111_v28  ;;  %v4864_v38 = vpack.c.bf16 %v3492_v30, %v3491_v14 }
 0xe49   :  { %5163 = vpow2.f32 %v3690_v2  ;;  %v3493_v2 = vld [vmem:[%s6883_s7 + $0x30] sm:$0xff] }
 0xe4a   :  { %5165 = vpow2.f32 %v3691_v36  ;;  %v3494_v36 = vld [vmem:[%s6883_s7 + $0x38] sm:$0xff] }
 0xe4b   :  { %5167 = vpow2.f32 %v3692_v29  ;;  %v4868_v28 = vpack.c.bf16 %v3494_v36, %v3493_v2  ;;  %v3495_v29 = vld [vmem:[%s6883_s7 + $0x40] sm:$0xff] }
 0xe4c   :  { %5169 = vtanh.f32 %v3110_v37 }
 0xe53   :  { %v5164_v15 = vpop.eup %5163 }
 0xe54   :  { %v5166_v51 = vpop.eup %5165  ;;  %v3115_v23 = vadd.f32 1.0, %v5164_v15  ;;  %v3497_v15 = vld [vmem:[%s6883_s7 + $0x50] sm:$0xff] }
 0xe55   :  { %v3121_v45 = vadd.f32 1.0, %v5166_v51  ;;  %v5168_v3 = vpop.eup %5167  ;;  %v3498_v51 = vld [vmem:[%s6883_s7 + $0x58] sm:$0xff] }
 0xe56   :  { %5171 = vrcp.f32 %v3115_v23  ;;  %v5170_v32 = vpop.eup %5169  ;;  %v3128_v19 = vadd.f32 1.0, %v5168_v3  ;;  %v4876_v23 = vpack.c.bf16 %v3498_v51, %v3497_v15  ;;  %v3500_v3 = vld [vmem:[%s6883_s7 + $0x68] sm:$0xff] }
 0xe57   :  { %5173 = vrcp.f32 %v3121_v45  ;;  %v3499_v45 = vld [vmem:[%s6883_s7 + $0x60] sm:$0xff] }
 0xe58   :  { %5175 = vrcp.f32 %v3128_v19 }
 0xe60   :  { %v5172_v43 = vpop.eup %5171 }
 0xe61   :  { %v5174_v59 = vpop.eup %5173  ;;  %v3132_v52 = vmul.f32 %v5172_v43, %v5170_v32  ;;  %v4880_v32 = vpack.c.bf16 %v3500_v3, %v3499_v45  ;;  %v3501_v43 = vld [vmem:[%s6883_s7 + $0x70] sm:$0xff] }
 0xe62   :  { %v3131_v35 = vmul.f32 %v5174_v59, %v6696_v33  ;;  %v5176_v63 = vpop.eup %5175  ;;  %v3502_v59 = vld [vmem:[%s6883_s7 + $0x78] sm:$0xff] }
 0xe64   :  { %v6742_v41 = vadd.f32 %v3132_v52, %v3131_v35  ;;  %v4884_v52 = vpack.c.bf16 %v3502_v59, %v3501_v43 }
 0xe66   :  { %5177 = vtanh.f32 %v6742_v41 }
 0xe70   :  { %v5178_v4 = vpop.eup %5177 }
 0xe71   :  { %v6745_v10 = vmul.f32 %v5178_v4, %v5176_v63 }
 0xe73   :  { %3202 = vmatmul.mubr.f32.vlgmr.msra.gmra.mrb[30].mxu0 %v6745_v10  ;;  %3273 = vmatmul.mubr.f32.vlgmr.msra.gmra.mrb[32].mxu1 %v6745_v10 }
 0xe74   :  { %4795 = vmatpush1.bf16.msra.mxu0 %v6200_v17  ;;  %4827 = vmatpush1.bf16.msra.mxu1 %v6202_v58  ;;  %v3488_v17 = vld [vmem:[%s6883_s7 + $0x8] sm:$0xff] }
 0xe75   :  { %4797 = vmatprep.subr.bf16.mxu0 %v6210_v12  ;;  %4829 = vmatprep.subr.bf16.mxu1 %v6212_v18 }
 0xe76   :  { %3372 = vmatprep.mubr.f32.mxu0 %v5211_v1  ;;  %3443 = vmatprep.mubr.f32.mxu1 %v5211_v1  ;;  %v3487_v1 = vld [vmem:[%s6883_s7] sm:$0xff] }
 0xe77   :  { %v4856_v58 = vpack.c.bf16 %v3488_v17, %v3487_v1 }
 0xe78   :  { %4799 = vmatpush1.bf16.msra.mxu0 %v6237_v42  ;;  %4831 = vmatpush1.bf16.msra.mxu1 %v6239_v48 }
 0xe79   :  { %4801 = vmatprep.subr.bf16.mxu0 %v6249_v56  ;;  %4833 = vmatprep.subr.bf16.mxu1 %v6251_v62 }
 0xe7c   :  { %4803 = vmatpush1.bf16.msra.mxu0 %v6275_v39  ;;  %4835 = vmatpush1.bf16.msra.mxu1 %v6277_v46 }
 0xe7d   :  { %4805 = vmatprep.subr.bf16.mxu0 %v6287_v57  ;;  %4837 = vmatprep.subr.bf16.mxu1 %v6289_v60 }
 0xe80   :  { %4807 = vmatpush1.bf16.msra.mxu0 %v6311_v40  ;;  %4839 = vmatpush1.bf16.msra.mxu1 %v6313_v11 }
 0xe81   :  { %4809 = vmatprep.subr.bf16.mxu0 %v6323_v44  ;;  %4841 = vmatprep.subr.bf16.mxu1 %v6325_v8 }
 0xe84   :  { %4811 = vmatpush1.bf16.msra.mxu0 %v6347_v53  ;;  %4843 = vmatpush1.bf16.msra.mxu1 %v6349_v31 }
 0xe85   :  { %4813 = vmatprep.subr.bf16.mxu0 %v6359_v50  ;;  %4845 = vmatprep.subr.bf16.mxu1 %v6361_v0 }
 0xe88   :  { %4815 = vmatpush1.bf16.msra.mxu0 %v6383_v26  ;;  %4847 = vmatpush1.bf16.msra.mxu1 %v6385_v34 }
 0xe89   :  { %4817 = vmatprep.subr.bf16.mxu0 %v6395_v49  ;;  %4849 = vmatprep.subr.bf16.mxu1 %v6397_v55 }
 0xe8c   :  { %4819 = vmatpush1.bf16.msra.mxu0 %v6419_v47  ;;  %4851 = vmatpush1.bf16.msra.mxu1 %v6421_v54  ;;  %v3489_v54 = vld [vmem:[%s6883_s7 + $0x10] sm:$0xff] }
 0xe8d   :  { %4821 = vmatprep.subr.bf16.mxu0 %v6428_v24  ;;  %4853 = vmatprep.subr.bf16.mxu1 %v6430_v27  ;;  %v3490_v24 = vld [vmem:[%s6883_s7 + $0x18] sm:$0xff] }
 0xe8e   :  { %v4860_v33 = vpack.c.bf16 %v3490_v24, %v3489_v54 }
 0xe90   :  { %4823 = vmatpush1.bf16.msra.mxu0 %v6443_v20  ;;  %4855 = vmatpush1.bf16.msra.mxu1 %v6445_v13 }
 0xe91   :  { %4857 = vmatprep.subr.bf16.mxu0 %v4856_v58 }
 0xf46   :  { %v3203_v12 = vpop.f32.mrb[30].mxu0  ;;  %v3274_v18 = vpop.f32.mrb[32].mxu1 }
 0xf47   :  { %v3279_v42 = vadd.f32 %v3203_v12, %v6496_v61  ;;  %v3205_v48 = vpop.f32.mrb[31].mxu0  ;;  %v3276_v56 = vpop.f32.mrb[33].mxu1  ;;  %v3281_v40 = vadd.f32 %v3274_v18, %v6509_v22 }
 0xf48   :  { %v3280_v62 = vadd.f32 %v3205_v48, %v6498_v16  ;;  %v3282_v57 = vadd.f32 %v3276_v56, %v6504_v6 }
 0xf49   :  { %v3693_v39 = vmul.f32 -1.442695, %v3279_v42 }
 0xf4a   :  { %v3694_v46 = vmul.f32 -1.442695, %v3280_v62  ;;  %v3695_v60 = vmul.f32 -1.442695, %v3282_v57 }
 0xf4b   :  { %5179 = vpow2.f32 %v3693_v39 }
 0xf4c   :  { %5181 = vpow2.f32 %v3694_v46 }
 0xf4d   :  { %5183 = vpow2.f32 %v3695_v60 }
 0xf4e   :  { %5185 = vtanh.f32 %v3281_v40 }
 0xf55   :  { %v5180_v11 = vpop.eup %5179 }
 0xf56   :  { %v5182_v44 = vpop.eup %5181  ;;  %v3286_v8 = vadd.f32 1.0, %v5180_v11 }
 0xf57   :  { %v3292_v53 = vadd.f32 1.0, %v5182_v44  ;;  %v5184_v31 = vpop.eup %5183 }
 0xf58   :  { %5187 = vrcp.f32 %v3286_v8  ;;  %v5186_v50 = vpop.eup %5185  ;;  %v3299_v49 = vadd.f32 1.0, %v5184_v31 }
 0xf59   :  { %5189 = vrcp.f32 %v3292_v53 }
 0xf5a   :  { %5191 = vrcp.f32 %v3299_v49 }
 0xf62   :  { %v5188_v0 = vpop.eup %5187 }
 0xf63   :  { %v5190_v26 = vpop.eup %5189  ;;  %v3303_v34 = vmul.f32 %v5188_v0, %v5186_v50 }
 0xf64   :  { %v3302_v55 = vmul.f32 %v5190_v26, %v6742_v41  ;;  %v5192_v27 = vpop.eup %5191 }
 0xf66   :  { %v6792_v47 = vadd.f32 %v3303_v34, %v3302_v55 }
 0xf68   :  { %5193 = vtanh.f32 %v6792_v47 }
 0xf72   :  { %v5194_v20 = vpop.eup %5193 }
 0xf73   :  { %v3306_v13 = vmul.f32 %v5194_v20, %v5192_v27 }
 0xf75   :  { %3373 = vmatmul.mubr.f32.vlgmr.msra.gmra.mrb[32].mxu0 %v3306_v13  ;;  %3444 = vmatmul.mubr.f32.vlgmr.msra.gmra.mrb[34].mxu1 %v3306_v13 }
 0xf76   :  { %4859 = vmatpush3.bf16.msra.mxu0 %v4856_v58  ;;  %3756 = vmatprep.mubr.f32.mxu0 %v6515_v7  ;;  %v3496_v7 = vld [vmem:[%s6883_s7 + $0x48] sm:$0xff] }
 0xf77   :  { %4861 = vmatprep.subr.bf16.mxu0 %v4860_v33  ;;  %v4872_v37 = vpack.c.bf16 %v3496_v7, %v3495_v29 }
 0xf7a   :  { %4863 = vmatpush3.bf16.msra.mxu0 %v4860_v33 }
 0xf7b   :  { %4865 = vmatprep.subr.bf16.mxu0 %v4864_v38 }
 0xf7e   :  { %4867 = vmatpush3.bf16.msra.mxu0 %v4864_v38 }
 0xf7f   :  { %4869 = vmatprep.subr.bf16.mxu0 %v4868_v28 }
 0xf82   :  { %4871 = vmatpush3.bf16.msra.mxu0 %v4868_v28 }
 0xf83   :  { %4873 = vmatprep.subr.bf16.mxu0 %v4872_v37 }
 0xf86   :  { %4875 = vmatpush3.bf16.msra.mxu0 %v4872_v37 }
 0xf87   :  { %4877 = vmatprep.subr.bf16.mxu0 %v4876_v23 }
 0xf8a   :  { %4879 = vmatpush3.bf16.msra.mxu0 %v4876_v23 }
 0xf8b   :  { %4881 = vmatprep.subr.bf16.mxu0 %v4880_v32 }
 0xf8e   :  { %4883 = vmatpush3.bf16.msra.mxu0 %v4880_v32 }
 0xf8f   :  { %4885 = vmatprep.subr.bf16.mxu0 %v4884_v52 }
 0xf92   :  { %4887 = vmatpush3.bf16.msra.mxu0 %v4884_v52 }
 0xf95   :  { %3757 = vmatmul.mubr.f32.vlgmr.msra.gmra.mrb[34].mxu0 %v6561_v21 }
 0xf96   :  { %3759 = vmatprep.mubr.f32.mxu0 %v6607_v9 }
 0xf99   :  { %3760 = vmatmul.mubr.f32.gmra.mrb[36].mxu0 %v6653_v25 }
 0xf9a   :  { %3762 = vmatprep.mubr.f32.mxu0 %v6699_v5 }
 0xf9d   :  { %3763 = vmatmul.mubr.f32.gmra.mrb[38].mxu0 %v6745_v10 }
 0xf9e   :  { %3765 = vmatprep.mubr.f32.mxu0 %v3306_v13 }
0x1048   :  { %v3374_v19 = vpop.f32.mrb[32].mxu0  ;;  %v3445_v35 = vpop.f32.mrb[34].mxu1 }
0x1049   :  { %v3450_v41 = vadd.f32 %v3374_v19, %v6496_v61  ;;  %v3376_v63 = vpop.f32.mrb[33].mxu0  ;;  %v3447_v4 = vpop.f32.mrb[35].mxu1  ;;  %v3452_v25 = vadd.f32 %v3445_v35, %v6509_v22 }
0x104a   :  { %v3451_v1 = vadd.f32 %v3376_v63, %v6498_v16  ;;  %v3453_v21 = vadd.f32 %v3447_v4, %v6504_v6  ;;  %v3699_v6 = vld [vmem:[%s6884_s8] ss:$0 sm:$0xff] }
0x104b   :  { %v3696_v17 = vmul.f32 -1.442695, %v3450_v41 }
0x104c   :  { %v3697_v58 = vmul.f32 -1.442695, %v3451_v1  ;;  %v3698_v9 = vmul.f32 -1.442695, %v3453_v21 }
0x104d   :  { %5195 = vpow2.f32 %v3696_v17 }
0x104e   :  { %5197 = vpow2.f32 %v3697_v58 }
0x104f   :  { %5199 = vpow2.f32 %v3698_v9 }
0x1050   :  { %5201 = vtanh.f32 %v3452_v25 }
0x1057   :  { %v5196_v5 = vpop.eup %5195 }
0x1058   :  { %v5198_v10 = vpop.eup %5197  ;;  %v3457_v12 = vadd.f32 1.0, %v5196_v5 }
0x1059   :  { %v3463_v18 = vadd.f32 1.0, %v5198_v10  ;;  %v5200_v61 = vpop.eup %5199 }
0x105a   :  { %5203 = vrcp.f32 %v3457_v12  ;;  %v5202_v42 = vpop.eup %5201  ;;  %v3470_v62 = vadd.f32 1.0, %v5200_v61 }
0x105b   :  { %5205 = vrcp.f32 %v3463_v18 }
0x105c   :  { %5207 = vrcp.f32 %v3470_v62 }
0x1064   :  { %v5204_v16 = vpop.eup %5203 }
0x1065   :  { %v5206_v48 = vpop.eup %5205  ;;  %v3474_v56 = vmul.f32 %v5204_v16, %v5202_v42 }
0x1066   :  { %v3473_v39 = vmul.f32 %v5206_v48, %v6792_v47  ;;  %v5208_v34 = vpop.eup %5207 }
0x1068   :  { %v3758_v22 = vpop.f32.mrb[34].mxu0  ;;  %v3475_v46 = vadd.f32 %v3474_v56, %v3473_v39 }
0x1069   :  { %v3582_v57 = vadd.f32 %v3758_v22, %v3699_v6  ;;  %v3576_v60 = vpop.f32.mrb[35].mxu0 }
0x106a   :  { %v3577_v40 = vadd.f32 %v3699_v6, %v3576_v60  ;;  %5209 = vtanh.f32 %v3475_v46 }
0x106b   :  { %3616 = vst [vmem:[%s6885_s10 + $0x8] sm:$0xff] %v3582_v57 }
0x106c   :  { %3615 = vst [vmem:[%s6885_s10] sm:$0xff] %v3577_v40  ;;  %v3761_v11 = vpop.f32.mrb[36].mxu0 }
0x106d   :  { %v3592_v44 = vadd.f32 %v3761_v11, %v3699_v6  ;;  %v3586_v8 = vpop.f32.mrb[37].mxu0 }
0x106e   :  { %v3587_v53 = vadd.f32 %v3699_v6, %v3586_v8 }
0x106f   :  { %3618 = vst [vmem:[%s6885_s10 + $0x18] sm:$0xff] %v3592_v44 }
0x1070   :  { %3617 = vst [vmem:[%s6885_s10 + $0x10] sm:$0xff] %v3587_v53  ;;  %v3764_v31 = vpop.f32.mrb[38].mxu0 }
0x1071   :  { %v3602_v50 = vadd.f32 %v3764_v31, %v3699_v6  ;;  %v3596_v0 = vpop.f32.mrb[39].mxu0 }
0x1072   :  { %v3597_v26 = vadd.f32 %v3699_v6, %v3596_v0 }
0x1073   :  { %3620 = vst [vmem:[%s6885_s10 + $0x28] sm:$0xff] %v3602_v50 }
0x1074   :  { %v5210_v49 = vpop.eup %5209  ;;  %3619 = vst [vmem:[%s6885_s10 + $0x20] sm:$0xff] %v3597_v26 }
0x1075   :  { %v3477_v55 = vmul.f32 %v5210_v49, %v5208_v34 }
0x1077   :  { %3766 = vmatmul.mubr.f32.gmra.mrb[40].mxu0 %v3477_v55 }
0x114a   :  { %v3767_v47 = vpop.f32.mrb[40].mxu0 }
0x114b   :  { %v3612_v54 = vadd.f32 %v3767_v47, %v3699_v6  ;;  %v3606_v24 = vpop.f32.mrb[41].mxu0 }
0x114c   :  { %v3607_v27 = vadd.f32 %v3699_v6, %v3606_v24 }
0x114d   :  { %3622 = vst [vmem:[%s6885_s10 + $0x38] sm:$0xff] %v3612_v54 }
0x114e   :  { %3621 = vst [vmem:[%s6885_s10 + $0x30] sm:$0xff] %v3607_v27 }

</bundles_post_ra>
